<compile_context>
chip_gen: v7x
topology: tpu7x:2x2x1
jax: 0.10.0
libtpu: 0.0.40
codegen_flags: <defaults>
</compile_context>

<pallas_src>
import functools

import jax
import jax.numpy as jnp
from jax.experimental import pallas as pl
from jax.experimental.pallas import tpu as pltpu

GRU_LEN = 128        # hidden size H
INPUT_SIZE = 300     # input feature size
K_PAD = 384          # input size padded to a multiple of 128 (incl. bias col)


# ----------------------------- Pallas kernel --------------------------------
def _gru_bidir_kernel(x_ref,        # (T*Bp, 384)  bf16  (ones/bias col folded)
                      wih_ref,      # (384, 6H)    bf16  [fwd 3H | bwd 3H]
                      whh_ref,      # (2H, 6H)     bf16  block-diag(whh_f, whh_b)
                      bhn_ref,      # (1, 2H)      f32   [b_hn_f | b_hn_b]
                      out_ref,      # (T*Bp, 2H)   f32
                      hn_ref,       # (2, Bp, H)   f32
                      gi_scratch,   # VMEM (T*Bp, 6H) f32
                      *, combine_hh: bool):
    H = GRU_LEN
    Bp = hn_ref.shape[1]
    T = out_ref.shape[0] // Bp

    # ---- hoisted input projection: one matmul for all timesteps, both dirs,
    #      with all foldable biases (b_ih + b_h{r,z}) already inside W_ih.
    gi_scratch[...] = jnp.dot(x_ref[...], wih_ref[...],
                              preferred_element_type=jnp.float32)

    # b_hn cannot be folded into gi (it is scaled by r); hoist its broadcast.
    bhn_f = jnp.broadcast_to(bhn_ref[0:1, 0:H], (Bp, H))
    bhn_b = jnp.broadcast_to(bhn_ref[0:1, H:2 * H], (Bp, H))

    def gates(gi, gh, h, bhn):
        # PyTorch GRU cell (gate order r, z, n):
        #   r  = sigmoid(gi_r + gh_r)            (b_ih, b_hr already in gi)
        #   z  = sigmoid(gi_z + gh_z)
        #   n  = tanh   (gi_n + r * (gh_n + b_hn))
        #   h' = (1 - z) * n + z * h  ==  n + z * (h - n)
        r = jax.nn.sigmoid(gi[:, 0:H] + gh[:, 0:H])
        z = jax.nn.sigmoid(gi[:, H:2 * H] + gh[:, H:2 * H])
        n = jnp.tanh(gi[:, 2 * H:3 * H] + r * (gh[:, 2 * H:3 * H] + bhn))
        return n + z * (h - n)

    def step(i, carry):
        h_f, h_b = carry                           # (Bp, H) f32 each
        rf = pl.multiple_of(i * Bp, Bp)            # forward rows:  timestep i
        rb = pl.multiple_of((T - 1 - i) * Bp, Bp)  # backward rows: T-1-i

        gi_f = gi_scratch[pl.ds(rf, Bp), 0:3 * H]
        gi_b = gi_scratch[pl.ds(rb, Bp), 3 * H:6 * H]

        if combine_hh:
            # v6e/v7x: one K=256 block-diagonal matmul fills the 256-deep MXU
            # and halves pushes/pops on the serial chain.
            h_cat = jnp.concatenate([h_f, h_b], axis=1).astype(jnp.bfloat16)
            gh = jnp.dot(h_cat, whh_ref[...], preferred_element_type=jnp.float32)
            gh_f = gh[:, 0:3 * H]
            gh_b = gh[:, 3 * H:6 * H]
        else:
            # v5e: two K=128 matmuls map better onto the 128-deep MXUs.
            gh_f = jnp.dot(h_f.astype(jnp.bfloat16), whh_ref[0:H, 0:3 * H],
                           preferred_element_type=jnp.float32)
            gh_b = jnp.dot(h_b.astype(jnp.bfloat16), whh_ref[H:2 * H, 3 * H:6 * H],
                           preferred_element_type=jnp.float32)

        h_f_new = gates(gi_f, gh_f, h_f, bhn_f)
        h_b_new = gates(gi_b, gh_b, h_b, bhn_b)

        # 128-lane-aligned halves of the 256-lane output: unmasked stores.
        out_ref[pl.ds(rf, Bp), 0:H] = h_f_new
        out_ref[pl.ds(rb, Bp), H:2 * H] = h_b_new
        return h_f_new, h_b_new

    h0 = jnp.zeros((Bp, H), jnp.float32)
    h_f_last, h_b_last = jax.lax.fori_loop(0, T, step, (h0, h0), unroll=True)

    hn_ref[0] = h_f_last
    hn_ref[1] = h_b_last


def _use_combined_hh():
    """Block-diag K=256 hidden matmul only on chips with a 256-deep MXU."""
    try:
        kind = jax.devices()[0].device_kind.lower()
    except Exception:
        return False
    return ("v6" in kind) or ("v7" in kind)


# ------------------------------- wrapper -------------------------------------
def gru_layer(x, params):
    """x: (T, B, 300) f32, params in PyTorch layout.
       Returns (output, h_n) like nn.GRU: output (T, B, 256), h_n (2, B, 128)."""
    (w_ih_f, w_hh_f, b_ih_f, b_hh_f,
     w_ih_b, w_hh_b, b_ih_b, b_hh_b) = params
    T, B, _ = x.shape
    H = GRU_LEN

    # Pad batch to a multiple of 8 sublanes.
    Bp = ((B + 7) // 8) * 8
    if Bp != B:
        x = jnp.pad(x, ((0, 0), (0, Bp - B), (0, 0)))

    # --- parameter preprocessing (cheap, fused by XLA under jit) -------------
    # Fold b_ih (all gates) + b_hh (r, z gates) into W_ih via a bias row;
    # b_hn stays separate — it is multiplied by r inside the cell.
    def fold(b_ih, b_hh):
        return b_ih + jnp.concatenate([b_hh[:2 * H], jnp.zeros((H,), b_hh.dtype)])

    gi_bias = jnp.concatenate([fold(b_ih_f, b_hh_f),
                               fold(b_ih_b, b_hh_b)])[None, :]          # (1, 768)

    # Input-projection weights (both dirs side by side), K padded 300 -> 384:
    # rows [0:300] = W_ih^T, row [300] = folded bias, rows [301:384] = 0.
    wih_core = jnp.concatenate([w_ih_f.T, w_ih_b.T], axis=1)            # (300, 768)
    wih = jnp.concatenate(
        [wih_core, gi_bias,
         jnp.zeros((K_PAD - INPUT_SIZE - 1, 6 * H), wih_core.dtype)],
        axis=0).astype(jnp.bfloat16)                                    # (384, 768)

    # Block-diagonal hidden weights: (256, 768) bf16 (zero blocks are exact).
    zblk = jnp.zeros((H, 3 * H), w_hh_f.dtype)
    whh_bd = jnp.concatenate(
        [jnp.concatenate([w_hh_f.T, zblk], axis=1),
         jnp.concatenate([zblk, w_hh_b.T], axis=1)],
        axis=0).astype(jnp.bfloat16)                                    # (256, 768)

    bhn = jnp.concatenate([b_hh_f[2 * H:], b_hh_b[2 * H:]])[None, :].astype(jnp.float32)

    # x padded along K: columns [0:300] = x, [300] = 1.0 (bias), [301:384] = 0.
    x2d = x.reshape(T * Bp, INPUT_SIZE)
    x2d = jnp.concatenate(
        [x2d,
         jnp.ones((T * Bp, 1), x2d.dtype),
         jnp.zeros((T * Bp, K_PAD - INPUT_SIZE - 1), x2d.dtype)],
        axis=1).astype(jnp.bfloat16)                                    # (T*Bp, 384)

    # Explicit VMEM budget (avoids the 16/32 MiB default scoped limit when
    # T*B grows); generous 2x headroom, capped at v7x's 64 MiB physical VMEM.
    vmem_bytes = (T * Bp * K_PAD * 2        # x bf16
                  + K_PAD * 6 * H * 2       # wih bf16
                  + 2 * H * 6 * H * 2       # whh bf16
                  + 2 * H * 4               # bhn f32
                  + T * Bp * 2 * H * 4      # out f32
                  + 2 * Bp * H * 4          # h_n f32
                  + T * Bp * 6 * H * 4)     # gi scratch f32
    vmem_limit = min(2 * vmem_bytes + (8 << 20), 64 << 20)

    kernel = functools.partial(_gru_bidir_kernel, combine_hh=_use_combined_hh())
    vmem = pl.BlockSpec(memory_space=pltpu.MemorySpace.VMEM)
    out2d, hn = pl.pallas_call(
        kernel,
        out_shape=(jax.ShapeDtypeStruct((T * Bp, 2 * H), jnp.float32),
                   jax.ShapeDtypeStruct((2, Bp, H), jnp.float32)),
        in_specs=[vmem] * 4,
        out_specs=(vmem, vmem),
        scratch_shapes=[pltpu.VMEM((T * Bp, 6 * H), jnp.float32)],
        compiler_params=pltpu.CompilerParams(vmem_limit_bytes=vmem_limit),
    )(x2d, wih, whh_bd, bhn)

    output = out2d.reshape(T, Bp, 2 * H)[:, :B, :]
    h_n = hn[:, :B, :]
    return output, h_n


# ------------------------- deterministic parameter init ----------------------
def init_params(key):
    """PyTorch-layout params for nn.GRU(300, 128, bidirectional=True):
       weight_ih_l0{,_reverse}: (384, 300); weight_hh_l0{,_reverse}: (384, 128);
       bias_ih / bias_hh: (384,).  Synthetic deterministic init (xavier-ish
       W_ih, scaled-normal W_hh).  Biases are NONZERO here on purpose so the
       bias-folding path in the kernel is actually exercised (the module's
       init_weights() would zero them)."""
    H3 = 3 * GRU_LEN
    ks = jax.random.split(key, 8)

    def xavier(kk, shape):
        fan_out, fan_in = shape
        limit = jnp.sqrt(6.0 / (fan_in + fan_out))
        return jax.random.uniform(kk, shape, jnp.float32, -limit, limit)

    w_ih_f = xavier(ks[0], (H3, INPUT_SIZE))
    w_hh_f = 0.1 * jax.random.normal(ks[1], (H3, GRU_LEN), jnp.float32)
    w_ih_b = xavier(ks[2], (H3, INPUT_SIZE))
    w_hh_b = 0.1 * jax.random.normal(ks[3], (H3, GRU_LEN), jnp.float32)
    b_ih_f = 0.05 * jax.random.normal(ks[4], (H3,), jnp.float32)
    b_hh_f = 0.05 * jax.random.normal(ks[5], (H3,), jnp.float32)
    b_ih_b = 0.05 * jax.random.normal(ks[6], (H3,), jnp.float32)
    b_hh_b = 0.05 * jax.random.normal(ks[7], (H3,), jnp.float32)
    return (w_ih_f, w_hh_f, b_ih_f, b_hh_f, w_ih_b, w_hh_b, b_ih_b, b_hh_b)


# ------------------------------ pure-JAX reference ---------------------------
def gru_ref(x, params, matmul_dtype=jnp.float32):
    """PyTorch-semantics bidirectional GRU.  `matmul_dtype` optionally rounds
       the matmul operands (as the kernel does with bf16); accumulation is f32."""
    (w_ih_f, w_hh_f, b_ih_f, b_hh_f,
     w_ih_b, w_hh_b, b_ih_b, b_hh_b) = params
    H = GRU_LEN
    T, B, _ = x.shape

    def mm(a, b):
        return jnp.dot(a.astype(matmul_dtype), b.astype(matmul_dtype),
                       preferred_element_type=jnp.float32)

    def cell(x_t, h, w_ih, w_hh, b_ih, b_hh):
        gi = mm(x_t, w_ih.T) + b_ih
        gh = mm(h, w_hh.T) + b_hh
        r = jax.nn.sigmoid(gi[:, :H] + gh[:, :H])
        z = jax.nn.sigmoid(gi[:, H:2 * H] + gh[:, H:2 * H])
        n = jnp.tanh(gi[:, 2 * H:] + r * gh[:, 2 * H:])
        return (1.0 - z) * n + z * h

    h = jnp.zeros((B, H), jnp.float32)
    outs_f = []
    for t in range(T):
        h = cell(x[t], h, w_ih_f, w_hh_f, b_ih_f, b_hh_f)
        outs_f.append(h)
    h = jnp.zeros((B, H), jnp.float32)
    outs_b = [None] * T
    for t in range(T - 1, -1, -1):
        h = cell(x[t], h, w_ih_b, w_hh_b, b_ih_b, b_hh_b)
        outs_b[t] = h
    out = jnp.concatenate([jnp.stack(outs_f), jnp.stack(outs_b)], axis=-1)
    h_n = jnp.stack([outs_f[-1], outs_b[0]], axis=0)
    return out, h_n


# --------------------------------- main ---------------------------------------
if __name__ == "__main__":
    key = jax.random.PRNGKey(0)
    k_x, k_p = jax.random.split(key)

    T, B = 8, 4
    x = jax.random.normal(k_x, (T, B, INPUT_SIZE), jnp.float32)
    params = init_params(k_p)

    out, h_n = jax.jit(gru_layer)(x, params)
    jax.block_until_ready((out, h_n))

    assert out.shape == (T, B, 2 * GRU_LEN)
    assert h_n.shape == (2, B, GRU_LEN)

    # Tight check: reference with the same bf16 operand rounding (kernel
    # mechanics).  Slightly looser than exact-bf16 because the kernel also
    # routes the (small) biases through the bf16 weight matrix.
    out_bf, hn_bf = gru_ref(x, params, matmul_dtype=jnp.bfloat16)
    assert jnp.allclose(out, out_bf, atol=3e-3, rtol=3e-3)
    assert jnp.allclose(h_n, hn_bf, atol=3e-3, rtol=3e-3)

    # Looser sanity check: pure-f32 PyTorch-semantics reference
    # (slack accounts for bf16 MXU operands vs f32 math).
    out_f32, hn_f32 = gru_ref(x, params, matmul_dtype=jnp.float32)
    assert jnp.allclose(out, out_f32, atol=5e-2, rtol=5e-2)
    assert jnp.allclose(h_n, hn_f32, atol=5e-2, rtol=5e-2)

    print("KERNEL_OK")
</pallas_src>

<mosaic_0001>
module attributes {stable_mosaic.version = 11 : i64} {
  func.func @_gru_bidir_kernel(%arg0: memref<64x384xbf16, #tpu.memory_space<vmem>>, %arg1: memref<384x768xbf16, #tpu.memory_space<vmem>>, %arg2: memref<256x768xbf16, #tpu.memory_space<vmem>>, %arg3: memref<1x256xf32, #tpu.memory_space<vmem>>, %arg4: memref<64x256xf32, #tpu.memory_space<vmem>>, %arg5: memref<2x8x128xf32, #tpu.memory_space<vmem>>, %arg6: memref<64x768xf32, #tpu.memory_space<vmem>>) attributes {dimension_semantics = [], scalar_prefetch = 0 : i64, scratch_operands = 1 : i64, tpu.core_type = #tpu.core_type<tc>} {
    %c0 = arith.constant 0 : index
    %c0_0 = arith.constant 0 : index
    %0 = vector.load %arg0[%c0, %c0_0] : memref<64x384xbf16, #tpu.memory_space<vmem>>, vector<64x384xbf16>
    %c0_1 = arith.constant 0 : index
    %c0_2 = arith.constant 0 : index
    %1 = vector.load %arg1[%c0_1, %c0_2] : memref<384x768xbf16, #tpu.memory_space<vmem>>, vector<384x768xbf16>
    %cst = arith.constant dense<0.000000e+00> : vector<64x768xf32>
    %2 = tpu.matmul %0, %1, %cst {dimension_numbers = #tpu.dot_dimension_numbers<[1], [0], [0], [1], [0, 0, 1, 1], [], []>} : vector<64x384xbf16>, vector<384x768xbf16>, vector<64x768xf32> -> vector<64x768xf32>
    %c0_3 = arith.constant 0 : index
    %c0_4 = arith.constant 0 : index
    %3 = vector.load %arg6[%c0_3, %c0_4] : memref<64x768xf32, #tpu.memory_space<vmem>>, vector<64x768xf32>
    tpu.vector_store %arg6[%c0_3, %c0_4], %2 {strides = array<i32>} : memref<64x768xf32, #tpu.memory_space<vmem>>, vector<64x768xf32>,
    %c0_5 = arith.constant 0 : index
    %c0_6 = arith.constant 0 : index
    %4 = vector.load %arg3[%c0_5, %c0_6] : memref<1x256xf32, #tpu.memory_space<vmem>>, vector<1x128xf32>
    %5 = vector.shape_cast %4 : vector<1x128xf32> to vector<1x128xf32>
    %6 = vector.broadcast %5 : vector<1x128xf32> to vector<8x128xf32>
    %c0_7 = arith.constant 0 : index
    %c128 = arith.constant 128 : index
    %7 = vector.load %arg3[%c0_7, %c128] : memref<1x256xf32, #tpu.memory_space<vmem>>, vector<1x128xf32>
    %8 = vector.shape_cast %7 : vector<1x128xf32> to vector<1x128xf32>
    %9 = vector.broadcast %8 : vector<1x128xf32> to vector<8x128xf32>
    %cst_8 = arith.constant 0.000000e+00 : f32
    %10 = vector.broadcast %cst_8 : f32 to vector<8x128xf32>
    %c0_i32 = arith.constant 0 : i32
    %c8_i32 = arith.constant 8 : i32
    %11 = arith.muli %c0_i32, %c8_i32 : i32
    %12 = tpu.assume_multiple %11, 8 : i32
    %c7_i32 = arith.constant 7 : i32
    %13 = arith.subi %c7_i32, %c0_i32 : i32
    %c8_i32_9 = arith.constant 8 : i32
    %14 = arith.muli %13, %c8_i32_9 : i32
    %15 = tpu.assume_multiple %14, 8 : i32
    %16 = arith.index_cast %12 : i32 to index
    %c0_10 = arith.constant 0 : index
    %17 = vector.load %arg6[%16, %c0_10] : memref<64x768xf32, #tpu.memory_space<vmem>>, vector<8x384xf32>
    %18 = arith.index_cast %15 : i32 to index
    %c384 = arith.constant 384 : index
    %19 = vector.load %arg6[%18, %c384] : memref<64x768xf32, #tpu.memory_space<vmem>>, vector<8x384xf32>
    %20 = arith.truncf %10 : vector<8x128xf32> to vector<8x128xbf16>
    %c0_11 = arith.constant 0 : index
    %c0_12 = arith.constant 0 : index
    %21 = vector.load %arg2[%c0_11, %c0_12] : memref<256x768xbf16, #tpu.memory_space<vmem>>, vector<128x384xbf16>
    %cst_13 = arith.constant dense<0.000000e+00> : vector<8x384xf32>
    %22 = tpu.matmul %20, %21, %cst_13 {dimension_numbers = #tpu.dot_dimension_numbers<[1], [0], [0], [1], [0, 0, 1, 1], [], []>} : vector<8x128xbf16>, vector<128x384xbf16>, vector<8x384xf32> -> vector<8x384xf32>
    %23 = arith.truncf %10 : vector<8x128xf32> to vector<8x128xbf16>
    %c128_14 = arith.constant 128 : index
    %c384_15 = arith.constant 384 : index
    %24 = vector.load %arg2[%c128_14, %c384_15] : memref<256x768xbf16, #tpu.memory_space<vmem>>, vector<128x384xbf16>
    %cst_16 = arith.constant dense<0.000000e+00> : vector<8x384xf32>
    %25 = tpu.matmul %23, %24, %cst_16 {dimension_numbers = #tpu.dot_dimension_numbers<[1], [0], [0], [1], [0, 0, 1, 1], [], []>} : vector<8x128xbf16>, vector<128x384xbf16>, vector<8x384xf32> -> vector<8x384xf32>
    %26 = vector.extract_strided_slice %17 {offsets = [0, 0], sizes = [8, 128], strides = [1, 1]} : vector<8x384xf32> to vector<8x128xf32>
    %27 = vector.extract_strided_slice %22 {offsets = [0, 0], sizes = [8, 128], strides = [1, 1]} : vector<8x384xf32> to vector<8x128xf32>
    %28 = arith.addf %26, %27 : vector<8x128xf32>
    %29 = arith.negf %28 : vector<8x128xf32>
    %30 = math.exp %29 : vector<8x128xf32>
    %cst_17 = arith.constant 1.000000e+00 : f32
    %31 = vector.broadcast %cst_17 : f32 to vector<8x128xf32>
    %32 = arith.addf %31, %30 : vector<8x128xf32>
    %33 = arith.divf %31, %32 : vector<8x128xf32>
    %34 = vector.extract_strided_slice %17 {offsets = [0, 128], sizes = [8, 128], strides = [1, 1]} : vector<8x384xf32> to vector<8x128xf32>
    %35 = vector.extract_strided_slice %22 {offsets = [0, 128], sizes = [8, 128], strides = [1, 1]} : vector<8x384xf32> to vector<8x128xf32>
    %36 = arith.addf %34, %35 : vector<8x128xf32>
    %37 = arith.negf %36 : vector<8x128xf32>
    %38 = math.exp %37 : vector<8x128xf32>
    %cst_18 = arith.constant 1.000000e+00 : f32
    %39 = vector.broadcast %cst_18 : f32 to vector<8x128xf32>
    %40 = arith.addf %39, %38 : vector<8x128xf32>
    %41 = arith.divf %39, %40 : vector<8x128xf32>
    %42 = vector.extract_strided_slice %17 {offsets = [0, 256], sizes = [8, 128], strides = [1, 1]} : vector<8x384xf32> to vector<8x128xf32>
    %43 = vector.extract_strided_slice %22 {offsets = [0, 256], sizes = [8, 128], strides = [1, 1]} : vector<8x384xf32> to vector<8x128xf32>
    %44 = arith.addf %43, %6 : vector<8x128xf32>
    %45 = arith.mulf %33, %44 : vector<8x128xf32>
    %46 = arith.addf %42, %45 : vector<8x128xf32>
    %47 = math.tanh %46 : vector<8x128xf32>
    %48 = arith.subf %10, %47 : vector<8x128xf32>
    %49 = arith.mulf %41, %48 : vector<8x128xf32>
    %50 = arith.addf %47, %49 : vector<8x128xf32>
    %51 = vector.extract_strided_slice %19 {offsets = [0, 0], sizes = [8, 128], strides = [1, 1]} : vector<8x384xf32> to vector<8x128xf32>
    %52 = vector.extract_strided_slice %25 {offsets = [0, 0], sizes = [8, 128], strides = [1, 1]} : vector<8x384xf32> to vector<8x128xf32>
    %53 = arith.addf %51, %52 : vector<8x128xf32>
    %54 = arith.negf %53 : vector<8x128xf32>
    %55 = math.exp %54 : vector<8x128xf32>
    %cst_19 = arith.constant 1.000000e+00 : f32
    %56 = vector.broadcast %cst_19 : f32 to vector<8x128xf32>
    %57 = arith.addf %56, %55 : vector<8x128xf32>
    %58 = arith.divf %56, %57 : vector<8x128xf32>
    %59 = vector.extract_strided_slice %19 {offsets = [0, 128], sizes = [8, 128], strides = [1, 1]} : vector<8x384xf32> to vector<8x128xf32>
    %60 = vector.extract_strided_slice %25 {offsets = [0, 128], sizes = [8, 128], strides = [1, 1]} : vector<8x384xf32> to vector<8x128xf32>
    %61 = arith.addf %59, %60 : vector<8x128xf32>
    %62 = arith.negf %61 : vector<8x128xf32>
    %63 = math.exp %62 : vector<8x128xf32>
    %cst_20 = arith.constant 1.000000e+00 : f32
    %64 = vector.broadcast %cst_20 : f32 to vector<8x128xf32>
    %65 = arith.addf %64, %63 : vector<8x128xf32>
    %66 = arith.divf %64, %65 : vector<8x128xf32>
    %67 = vector.extract_strided_slice %19 {offsets = [0, 256], sizes = [8, 128], strides = [1, 1]} : vector<8x384xf32> to vector<8x128xf32>
    %68 = vector.extract_strided_slice %25 {offsets = [0, 256], sizes = [8, 128], strides = [1, 1]} : vector<8x384xf32> to vector<8x128xf32>
    %69 = arith.addf %68, %9 : vector<8x128xf32>
    %70 = arith.mulf %58, %69 : vector<8x128xf32>
    %71 = arith.addf %67, %70 : vector<8x128xf32>
    %72 = math.tanh %71 : vector<8x128xf32>
    %73 = arith.subf %10, %72 : vector<8x128xf32>
    %74 = arith.mulf %66, %73 : vector<8x128xf32>
    %75 = arith.addf %72, %74 : vector<8x128xf32>
    %76 = arith.index_cast %12 : i32 to index
    %c0_21 = arith.constant 0 : index
    %77 = vector.load %arg4[%76, %c0_21] : memref<64x256xf32, #tpu.memory_space<vmem>>, vector<8x128xf32>
    tpu.vector_store %arg4[%76, %c0_21], %50 {strides = array<i32>} : memref<64x256xf32, #tpu.memory_space<vmem>>, vector<8x128xf32>,
    %78 = arith.index_cast %15 : i32 to index
    %c128_22 = arith.constant 128 : index
    %79 = vector.load %arg4[%78, %c128_22] : memref<64x256xf32, #tpu.memory_space<vmem>>, vector<8x128xf32>
    tpu.vector_store %arg4[%78, %c128_22], %75 {strides = array<i32>} : memref<64x256xf32, #tpu.memory_space<vmem>>, vector<8x128xf32>,
    %c1_i32 = arith.constant 1 : i32
    %c8_i32_23 = arith.constant 8 : i32
    %80 = arith.muli %c1_i32, %c8_i32_23 : i32
    %81 = tpu.assume_multiple %80, 8 : i32
    %c7_i32_24 = arith.constant 7 : i32
    %82 = arith.subi %c7_i32_24, %c1_i32 : i32
    %c8_i32_25 = arith.constant 8 : i32
    %83 = arith.muli %82, %c8_i32_25 : i32
    %84 = tpu.assume_multiple %83, 8 : i32
    %85 = arith.index_cast %81 : i32 to index
    %c0_26 = arith.constant 0 : index
    %86 = vector.load %arg6[%85, %c0_26] : memref<64x768xf32, #tpu.memory_space<vmem>>, vector<8x384xf32>
    %87 = arith.index_cast %84 : i32 to index
    %c384_27 = arith.constant 384 : index
    %88 = vector.load %arg6[%87, %c384_27] : memref<64x768xf32, #tpu.memory_space<vmem>>, vector<8x384xf32>
    %89 = arith.truncf %50 : vector<8x128xf32> to vector<8x128xbf16>
    %c0_28 = arith.constant 0 : index
    %c0_29 = arith.constant 0 : index
    %90 = vector.load %arg2[%c0_28, %c0_29] : memref<256x768xbf16, #tpu.memory_space<vmem>>, vector<128x384xbf16>
    %cst_30 = arith.constant dense<0.000000e+00> : vector<8x384xf32>
    %91 = tpu.matmul %89, %90, %cst_30 {dimension_numbers = #tpu.dot_dimension_numbers<[1], [0], [0], [1], [0, 0, 1, 1], [], []>} : vector<8x128xbf16>, vector<128x384xbf16>, vector<8x384xf32> -> vector<8x384xf32>
    %92 = arith.truncf %75 : vector<8x128xf32> to vector<8x128xbf16>
    %c128_31 = arith.constant 128 : index
    %c384_32 = arith.constant 384 : index
    %93 = vector.load %arg2[%c128_31, %c384_32] : memref<256x768xbf16, #tpu.memory_space<vmem>>, vector<128x384xbf16>
    %cst_33 = arith.constant dense<0.000000e+00> : vector<8x384xf32>
    %94 = tpu.matmul %92, %93, %cst_33 {dimension_numbers = #tpu.dot_dimension_numbers<[1], [0], [0], [1], [0, 0, 1, 1], [], []>} : vector<8x128xbf16>, vector<128x384xbf16>, vector<8x384xf32> -> vector<8x384xf32>
    %95 = vector.extract_strided_slice %86 {offsets = [0, 0], sizes = [8, 128], strides = [1, 1]} : vector<8x384xf32> to vector<8x128xf32>
    %96 = vector.extract_strided_slice %91 {offsets = [0, 0], sizes = [8, 128], strides = [1, 1]} : vector<8x384xf32> to vector<8x128xf32>
    %97 = arith.addf %95, %96 : vector<8x128xf32>
    %98 = arith.negf %97 : vector<8x128xf32>
    %99 = math.exp %98 : vector<8x128xf32>
    %cst_34 = arith.constant 1.000000e+00 : f32
    %100 = vector.broadcast %cst_34 : f32 to vector<8x128xf32>
    %101 = arith.addf %100, %99 : vector<8x128xf32>
    %102 = arith.divf %100, %101 : vector<8x128xf32>
    %103 = vector.extract_strided_slice %86 {offsets = [0, 128], sizes = [8, 128], strides = [1, 1]} : vector<8x384xf32> to vector<8x128xf32>
    %104 = vector.extract_strided_slice %91 {offsets = [0, 128], sizes = [8, 128], strides = [1, 1]} : vector<8x384xf32> to vector<8x128xf32>
    %105 = arith.addf %103, %104 : vector<8x128xf32>
    %106 = arith.negf %105 : vector<8x128xf32>
    %107 = math.exp %106 : vector<8x128xf32>
    %cst_35 = arith.constant 1.000000e+00 : f32
    %108 = vector.broadcast %cst_35 : f32 to vector<8x128xf32>
    %109 = arith.addf %108, %107 : vector<8x128xf32>
    %110 = arith.divf %108, %109 : vector<8x128xf32>
    %111 = vector.extract_strided_slice %86 {offsets = [0, 256], sizes = [8, 128], strides = [1, 1]} : vector<8x384xf32> to vector<8x128xf32>
    %112 = vector.extract_strided_slice %91 {offsets = [0, 256], sizes = [8, 128], strides = [1, 1]} : vector<8x384xf32> to vector<8x128xf32>
    %113 = arith.addf %112, %6 : vector<8x128xf32>
    %114 = arith.mulf %102, %113 : vector<8x128xf32>
    %115 = arith.addf %111, %114 : vector<8x128xf32>
    %116 = math.tanh %115 : vector<8x128xf32>
    %117 = arith.subf %50, %116 : vector<8x128xf32>
    %118 = arith.mulf %110, %117 : vector<8x128xf32>
    %119 = arith.addf %116, %118 : vector<8x128xf32>
    %120 = vector.extract_strided_slice %88 {offsets = [0, 0], sizes = [8, 128], strides = [1, 1]} : vector<8x384xf32> to vector<8x128xf32>
    %121 = vector.extract_strided_slice %94 {offsets = [0, 0], sizes = [8, 128], strides = [1, 1]} : vector<8x384xf32> to vector<8x128xf32>
    %122 = arith.addf %120, %121 : vector<8x128xf32>
    %123 = arith.negf %122 : vector<8x128xf32>
    %124 = math.exp %123 : vector<8x128xf32>
    %cst_36 = arith.constant 1.000000e+00 : f32
    %125 = vector.broadcast %cst_36 : f32 to vector<8x128xf32>
    %126 = arith.addf %125, %124 : vector<8x128xf32>
    %127 = arith.divf %125, %126 : vector<8x128xf32>
    %128 = vector.extract_strided_slice %88 {offsets = [0, 128], sizes = [8, 128], strides = [1, 1]} : vector<8x384xf32> to vector<8x128xf32>
    %129 = vector.extract_strided_slice %94 {offsets = [0, 128], sizes = [8, 128], strides = [1, 1]} : vector<8x384xf32> to vector<8x128xf32>
    %130 = arith.addf %128, %129 : vector<8x128xf32>
    %131 = arith.negf %130 : vector<8x128xf32>
    %132 = math.exp %131 : vector<8x128xf32>
    %cst_37 = arith.constant 1.000000e+00 : f32
    %133 = vector.broadcast %cst_37 : f32 to vector<8x128xf32>
    %134 = arith.addf %133, %132 : vector<8x128xf32>
    %135 = arith.divf %133, %134 : vector<8x128xf32>
    %136 = vector.extract_strided_slice %88 {offsets = [0, 256], sizes = [8, 128], strides = [1, 1]} : vector<8x384xf32> to vector<8x128xf32>
    %137 = vector.extract_strided_slice %94 {offsets = [0, 256], sizes = [8, 128], strides = [1, 1]} : vector<8x384xf32> to vector<8x128xf32>
    %138 = arith.addf %137, %9 : vector<8x128xf32>
    %139 = arith.mulf %127, %138 : vector<8x128xf32>
    %140 = arith.addf %136, %139 : vector<8x128xf32>
    %141 = math.tanh %140 : vector<8x128xf32>
    %142 = arith.subf %75, %141 : vector<8x128xf32>
    %143 = arith.mulf %135, %142 : vector<8x128xf32>
    %144 = arith.addf %141, %143 : vector<8x128xf32>
    %145 = arith.index_cast %81 : i32 to index
    %c0_38 = arith.constant 0 : index
    %146 = vector.load %arg4[%145, %c0_38] : memref<64x256xf32, #tpu.memory_space<vmem>>, vector<8x128xf32>
    tpu.vector_store %arg4[%145, %c0_38], %119 {strides = array<i32>} : memref<64x256xf32, #tpu.memory_space<vmem>>, vector<8x128xf32>,
    %147 = arith.index_cast %84 : i32 to index
    %c128_39 = arith.constant 128 : index
    %148 = vector.load %arg4[%147, %c128_39] : memref<64x256xf32, #tpu.memory_space<vmem>>, vector<8x128xf32>
    tpu.vector_store %arg4[%147, %c128_39], %144 {strides = array<i32>} : memref<64x256xf32, #tpu.memory_space<vmem>>, vector<8x128xf32>,
    %c2_i32 = arith.constant 2 : i32
    %c8_i32_40 = arith.constant 8 : i32
    %149 = arith.muli %c2_i32, %c8_i32_40 : i32
    %150 = tpu.assume_multiple %149, 8 : i32
    %c7_i32_41 = arith.constant 7 : i32
    %151 = arith.subi %c7_i32_41, %c2_i32 : i32
    %c8_i32_42 = arith.constant 8 : i32
    %152 = arith.muli %151, %c8_i32_42 : i32
    %153 = tpu.assume_multiple %152, 8 : i32
    %154 = arith.index_cast %150 : i32 to index
    %c0_43 = arith.constant 0 : index
    %155 = vector.load %arg6[%154, %c0_43] : memref<64x768xf32, #tpu.memory_space<vmem>>, vector<8x384xf32>
    %156 = arith.index_cast %153 : i32 to index
    %c384_44 = arith.constant 384 : index
    %157 = vector.load %arg6[%156, %c384_44] : memref<64x768xf32, #tpu.memory_space<vmem>>, vector<8x384xf32>
    %158 = arith.truncf %119 : vector<8x128xf32> to vector<8x128xbf16>
    %c0_45 = arith.constant 0 : index
    %c0_46 = arith.constant 0 : index
    %159 = vector.load %arg2[%c0_45, %c0_46] : memref<256x768xbf16, #tpu.memory_space<vmem>>, vector<128x384xbf16>
    %cst_47 = arith.constant dense<0.000000e+00> : vector<8x384xf32>
    %160 = tpu.matmul %158, %159, %cst_47 {dimension_numbers = #tpu.dot_dimension_numbers<[1], [0], [0], [1], [0, 0, 1, 1], [], []>} : vector<8x128xbf16>, vector<128x384xbf16>, vector<8x384xf32> -> vector<8x384xf32>
    %161 = arith.truncf %144 : vector<8x128xf32> to vector<8x128xbf16>
    %c128_48 = arith.constant 128 : index
    %c384_49 = arith.constant 384 : index
    %162 = vector.load %arg2[%c128_48, %c384_49] : memref<256x768xbf16, #tpu.memory_space<vmem>>, vector<128x384xbf16>
    %cst_50 = arith.constant dense<0.000000e+00> : vector<8x384xf32>
    %163 = tpu.matmul %161, %162, %cst_50 {dimension_numbers = #tpu.dot_dimension_numbers<[1], [0], [0], [1], [0, 0, 1, 1], [], []>} : vector<8x128xbf16>, vector<128x384xbf16>, vector<8x384xf32> -> vector<8x384xf32>
    %164 = vector.extract_strided_slice %155 {offsets = [0, 0], sizes = [8, 128], strides = [1, 1]} : vector<8x384xf32> to vector<8x128xf32>
    %165 = vector.extract_strided_slice %160 {offsets = [0, 0], sizes = [8, 128], strides = [1, 1]} : vector<8x384xf32> to vector<8x128xf32>
    %166 = arith.addf %164, %165 : vector<8x128xf32>
    %167 = arith.negf %166 : vector<8x128xf32>
    %168 = math.exp %167 : vector<8x128xf32>
    %cst_51 = arith.constant 1.000000e+00 : f32
    %169 = vector.broadcast %cst_51 : f32 to vector<8x128xf32>
    %170 = arith.addf %169, %168 : vector<8x128xf32>
    %171 = arith.divf %169, %170 : vector<8x128xf32>
    %172 = vector.extract_strided_slice %155 {offsets = [0, 128], sizes = [8, 128], strides = [1, 1]} : vector<8x384xf32> to vector<8x128xf32>
    %173 = vector.extract_strided_slice %160 {offsets = [0, 128], sizes = [8, 128], strides = [1, 1]} : vector<8x384xf32> to vector<8x128xf32>
    %174 = arith.addf %172, %173 : vector<8x128xf32>
    %175 = arith.negf %174 : vector<8x128xf32>
    %176 = math.exp %175 : vector<8x128xf32>
    %cst_52 = arith.constant 1.000000e+00 : f32
    %177 = vector.broadcast %cst_52 : f32 to vector<8x128xf32>
    %178 = arith.addf %177, %176 : vector<8x128xf32>
    %179 = arith.divf %177, %178 : vector<8x128xf32>
    %180 = vector.extract_strided_slice %155 {offsets = [0, 256], sizes = [8, 128], strides = [1, 1]} : vector<8x384xf32> to vector<8x128xf32>
    %181 = vector.extract_strided_slice %160 {offsets = [0, 256], sizes = [8, 128], strides = [1, 1]} : vector<8x384xf32> to vector<8x128xf32>
    %182 = arith.addf %181, %6 : vector<8x128xf32>
    %183 = arith.mulf %171, %182 : vector<8x128xf32>
    %184 = arith.addf %180, %183 : vector<8x128xf32>
    %185 = math.tanh %184 : vector<8x128xf32>
    %186 = arith.subf %119, %185 : vector<8x128xf32>
    %187 = arith.mulf %179, %186 : vector<8x128xf32>
    %188 = arith.addf %185, %187 : vector<8x128xf32>
    %189 = vector.extract_strided_slice %157 {offsets = [0, 0], sizes = [8, 128], strides = [1, 1]} : vector<8x384xf32> to vector<8x128xf32>
    %190 = vector.extract_strided_slice %163 {offsets = [0, 0], sizes = [8, 128], strides = [1, 1]} : vector<8x384xf32> to vector<8x128xf32>
    %191 = arith.addf %189, %190 : vector<8x128xf32>
    %192 = arith.negf %191 : vector<8x128xf32>
    %193 = math.exp %192 : vector<8x128xf32>
    %cst_53 = arith.constant 1.000000e+00 : f32
    %194 = vector.broadcast %cst_53 : f32 to vector<8x128xf32>
    %195 = arith.addf %194, %193 : vector<8x128xf32>
    %196 = arith.divf %194, %195 : vector<8x128xf32>
    %197 = vector.extract_strided_slice %157 {offsets = [0, 128], sizes = [8, 128], strides = [1, 1]} : vector<8x384xf32> to vector<8x128xf32>
    %198 = vector.extract_strided_slice %163 {offsets = [0, 128], sizes = [8, 128], strides = [1, 1]} : vector<8x384xf32> to vector<8x128xf32>
    %199 = arith.addf %197, %198 : vector<8x128xf32>
    %200 = arith.negf %199 : vector<8x128xf32>
    %201 = math.exp %200 : vector<8x128xf32>
    %cst_54 = arith.constant 1.000000e+00 : f32
    %202 = vector.broadcast %cst_54 : f32 to vector<8x128xf32>
    %203 = arith.addf %202, %201 : vector<8x128xf32>
    %204 = arith.divf %202, %203 : vector<8x128xf32>
    %205 = vector.extract_strided_slice %157 {offsets = [0, 256], sizes = [8, 128], strides = [1, 1]} : vector<8x384xf32> to vector<8x128xf32>
    %206 = vector.extract_strided_slice %163 {offsets = [0, 256], sizes = [8, 128], strides = [1, 1]} : vector<8x384xf32> to vector<8x128xf32>
    %207 = arith.addf %206, %9 : vector<8x128xf32>
    %208 = arith.mulf %196, %207 : vector<8x128xf32>
    %209 = arith.addf %205, %208 : vector<8x128xf32>
    %210 = math.tanh %209 : vector<8x128xf32>
    %211 = arith.subf %144, %210 : vector<8x128xf32>
    %212 = arith.mulf %204, %211 : vector<8x128xf32>
    %213 = arith.addf %210, %212 : vector<8x128xf32>
    %214 = arith.index_cast %150 : i32 to index
    %c0_55 = arith.constant 0 : index
    %215 = vector.load %arg4[%214, %c0_55] : memref<64x256xf32, #tpu.memory_space<vmem>>, vector<8x128xf32>
    tpu.vector_store %arg4[%214, %c0_55], %188 {strides = array<i32>} : memref<64x256xf32, #tpu.memory_space<vmem>>, vector<8x128xf32>,
    %216 = arith.index_cast %153 : i32 to index
    %c128_56 = arith.constant 128 : index
    %217 = vector.load %arg4[%216, %c128_56] : memref<64x256xf32, #tpu.memory_space<vmem>>, vector<8x128xf32>
    tpu.vector_store %arg4[%216, %c128_56], %213 {strides = array<i32>} : memref<64x256xf32, #tpu.memory_space<vmem>>, vector<8x128xf32>,
    %c3_i32 = arith.constant 3 : i32
    %c8_i32_57 = arith.constant 8 : i32
    %218 = arith.muli %c3_i32, %c8_i32_57 : i32
    %219 = tpu.assume_multiple %218, 8 : i32
    %c7_i32_58 = arith.constant 7 : i32
    %220 = arith.subi %c7_i32_58, %c3_i32 : i32
    %c8_i32_59 = arith.constant 8 : i32
    %221 = arith.muli %220, %c8_i32_59 : i32
    %222 = tpu.assume_multiple %221, 8 : i32
    %223 = arith.index_cast %219 : i32 to index
    %c0_60 = arith.constant 0 : index
    %224 = vector.load %arg6[%223, %c0_60] : memref<64x768xf32, #tpu.memory_space<vmem>>, vector<8x384xf32>
    %225 = arith.index_cast %222 : i32 to index
    %c384_61 = arith.constant 384 : index
    %226 = vector.load %arg6[%225, %c384_61] : memref<64x768xf32, #tpu.memory_space<vmem>>, vector<8x384xf32>
    %227 = arith.truncf %188 : vector<8x128xf32> to vector<8x128xbf16>
    %c0_62 = arith.constant 0 : index
    %c0_63 = arith.constant 0 : index
    %228 = vector.load %arg2[%c0_62, %c0_63] : memref<256x768xbf16, #tpu.memory_space<vmem>>, vector<128x384xbf16>
    %cst_64 = arith.constant dense<0.000000e+00> : vector<8x384xf32>
    %229 = tpu.matmul %227, %228, %cst_64 {dimension_numbers = #tpu.dot_dimension_numbers<[1], [0], [0], [1], [0, 0, 1, 1], [], []>} : vector<8x128xbf16>, vector<128x384xbf16>, vector<8x384xf32> -> vector<8x384xf32>
    %230 = arith.truncf %213 : vector<8x128xf32> to vector<8x128xbf16>
    %c128_65 = arith.constant 128 : index
    %c384_66 = arith.constant 384 : index
    %231 = vector.load %arg2[%c128_65, %c384_66] : memref<256x768xbf16, #tpu.memory_space<vmem>>, vector<128x384xbf16>
    %cst_67 = arith.constant dense<0.000000e+00> : vector<8x384xf32>
    %232 = tpu.matmul %230, %231, %cst_67 {dimension_numbers = #tpu.dot_dimension_numbers<[1], [0], [0], [1], [0, 0, 1, 1], [], []>} : vector<8x128xbf16>, vector<128x384xbf16>, vector<8x384xf32> -> vector<8x384xf32>
    %233 = vector.extract_strided_slice %224 {offsets = [0, 0], sizes = [8, 128], strides = [1, 1]} : vector<8x384xf32> to vector<8x128xf32>
    %234 = vector.extract_strided_slice %229 {offsets = [0, 0], sizes = [8, 128], strides = [1, 1]} : vector<8x384xf32> to vector<8x128xf32>
    %235 = arith.addf %233, %234 : vector<8x128xf32>
    %236 = arith.negf %235 : vector<8x128xf32>
    %237 = math.exp %236 : vector<8x128xf32>
    %cst_68 = arith.constant 1.000000e+00 : f32
    %238 = vector.broadcast %cst_68 : f32 to vector<8x128xf32>
    %239 = arith.addf %238, %237 : vector<8x128xf32>
    %240 = arith.divf %238, %239 : vector<8x128xf32>
    %241 = vector.extract_strided_slice %224 {offsets = [0, 128], sizes = [8, 128], strides = [1, 1]} : vector<8x384xf32> to vector<8x128xf32>
    %242 = vector.extract_strided_slice %229 {offsets = [0, 128], sizes = [8, 128], strides = [1, 1]} : vector<8x384xf32> to vector<8x128xf32>
    %243 = arith.addf %241, %242 : vector<8x128xf32>
    %244 = arith.negf %243 : vector<8x128xf32>
    %245 = math.exp %244 : vector<8x128xf32>
    %cst_69 = arith.constant 1.000000e+00 : f32
    %246 = vector.broadcast %cst_69 : f32 to vector<8x128xf32>
    %247 = arith.addf %246, %245 : vector<8x128xf32>
    %248 = arith.divf %246, %247 : vector<8x128xf32>
    %249 = vector.extract_strided_slice %224 {offsets = [0, 256], sizes = [8, 128], strides = [1, 1]} : vector<8x384xf32> to vector<8x128xf32>
    %250 = vector.extract_strided_slice %229 {offsets = [0, 256], sizes = [8, 128], strides = [1, 1]} : vector<8x384xf32> to vector<8x128xf32>
    %251 = arith.addf %250, %6 : vector<8x128xf32>
    %252 = arith.mulf %240, %251 : vector<8x128xf32>
    %253 = arith.addf %249, %252 : vector<8x128xf32>
    %254 = math.tanh %253 : vector<8x128xf32>
    %255 = arith.subf %188, %254 : vector<8x128xf32>
    %256 = arith.mulf %248, %255 : vector<8x128xf32>
    %257 = arith.addf %254, %256 : vector<8x128xf32>
    %258 = vector.extract_strided_slice %226 {offsets = [0, 0], sizes = [8, 128], strides = [1, 1]} : vector<8x384xf32> to vector<8x128xf32>
    %259 = vector.extract_strided_slice %232 {offsets = [0, 0], sizes = [8, 128], strides = [1, 1]} : vector<8x384xf32> to vector<8x128xf32>
    %260 = arith.addf %258, %259 : vector<8x128xf32>
    %261 = arith.negf %260 : vector<8x128xf32>
    %262 = math.exp %261 : vector<8x128xf32>
    %cst_70 = arith.constant 1.000000e+00 : f32
    %263 = vector.broadcast %cst_70 : f32 to vector<8x128xf32>
    %264 = arith.addf %263, %262 : vector<8x128xf32>
    %265 = arith.divf %263, %264 : vector<8x128xf32>
    %266 = vector.extract_strided_slice %226 {offsets = [0, 128], sizes = [8, 128], strides = [1, 1]} : vector<8x384xf32> to vector<8x128xf32>
    %267 = vector.extract_strided_slice %232 {offsets = [0, 128], sizes = [8, 128], strides = [1, 1]} : vector<8x384xf32> to vector<8x128xf32>
    %268 = arith.addf %266, %267 : vector<8x128xf32>
    %269 = arith.negf %268 : vector<8x128xf32>
    %270 = math.exp %269 : vector<8x128xf32>
    %cst_71 = arith.constant 1.000000e+00 : f32
    %271 = vector.broadcast %cst_71 : f32 to vector<8x128xf32>
    %272 = arith.addf %271, %270 : vector<8x128xf32>
    %273 = arith.divf %271, %272 : vector<8x128xf32>
    %274 = vector.extract_strided_slice %226 {offsets = [0, 256], sizes = [8, 128], strides = [1, 1]} : vector<8x384xf32> to vector<8x128xf32>
    %275 = vector.extract_strided_slice %232 {offsets = [0, 256], sizes = [8, 128], strides = [1, 1]} : vector<8x384xf32> to vector<8x128xf32>
    %276 = arith.addf %275, %9 : vector<8x128xf32>
    %277 = arith.mulf %265, %276 : vector<8x128xf32>
    %278 = arith.addf %274, %277 : vector<8x128xf32>
    %279 = math.tanh %278 : vector<8x128xf32>
    %280 = arith.subf %213, %279 : vector<8x128xf32>
    %281 = arith.mulf %273, %280 : vector<8x128xf32>
    %282 = arith.addf %279, %281 : vector<8x128xf32>
    %283 = arith.index_cast %219 : i32 to index
    %c0_72 = arith.constant 0 : index
    %284 = vector.load %arg4[%283, %c0_72] : memref<64x256xf32, #tpu.memory_space<vmem>>, vector<8x128xf32>
    tpu.vector_store %arg4[%283, %c0_72], %257 {strides = array<i32>} : memref<64x256xf32, #tpu.memory_space<vmem>>, vector<8x128xf32>,
    %285 = arith.index_cast %222 : i32 to index
    %c128_73 = arith.constant 128 : index
    %286 = vector.load %arg4[%285, %c128_73] : memref<64x256xf32, #tpu.memory_space<vmem>>, vector<8x128xf32>
    tpu.vector_store %arg4[%285, %c128_73], %282 {strides = array<i32>} : memref<64x256xf32, #tpu.memory_space<vmem>>, vector<8x128xf32>,
    %c4_i32 = arith.constant 4 : i32
    %c8_i32_74 = arith.constant 8 : i32
    %287 = arith.muli %c4_i32, %c8_i32_74 : i32
    %288 = tpu.assume_multiple %287, 8 : i32
    %c7_i32_75 = arith.constant 7 : i32
    %289 = arith.subi %c7_i32_75, %c4_i32 : i32
    %c8_i32_76 = arith.constant 8 : i32
    %290 = arith.muli %289, %c8_i32_76 : i32
    %291 = tpu.assume_multiple %290, 8 : i32
    %292 = arith.index_cast %288 : i32 to index
    %c0_77 = arith.constant 0 : index
    %293 = vector.load %arg6[%292, %c0_77] : memref<64x768xf32, #tpu.memory_space<vmem>>, vector<8x384xf32>
    %294 = arith.index_cast %291 : i32 to index
    %c384_78 = arith.constant 384 : index
    %295 = vector.load %arg6[%294, %c384_78] : memref<64x768xf32, #tpu.memory_space<vmem>>, vector<8x384xf32>
    %296 = arith.truncf %257 : vector<8x128xf32> to vector<8x128xbf16>
    %c0_79 = arith.constant 0 : index
    %c0_80 = arith.constant 0 : index
    %297 = vector.load %arg2[%c0_79, %c0_80] : memref<256x768xbf16, #tpu.memory_space<vmem>>, vector<128x384xbf16>
    %cst_81 = arith.constant dense<0.000000e+00> : vector<8x384xf32>
    %298 = tpu.matmul %296, %297, %cst_81 {dimension_numbers = #tpu.dot_dimension_numbers<[1], [0], [0], [1], [0, 0, 1, 1], [], []>} : vector<8x128xbf16>, vector<128x384xbf16>, vector<8x384xf32> -> vector<8x384xf32>
    %299 = arith.truncf %282 : vector<8x128xf32> to vector<8x128xbf16>
    %c128_82 = arith.constant 128 : index
    %c384_83 = arith.constant 384 : index
    %300 = vector.load %arg2[%c128_82, %c384_83] : memref<256x768xbf16, #tpu.memory_space<vmem>>, vector<128x384xbf16>
    %cst_84 = arith.constant dense<0.000000e+00> : vector<8x384xf32>
    %301 = tpu.matmul %299, %300, %cst_84 {dimension_numbers = #tpu.dot_dimension_numbers<[1], [0], [0], [1], [0, 0, 1, 1], [], []>} : vector<8x128xbf16>, vector<128x384xbf16>, vector<8x384xf32> -> vector<8x384xf32>
    %302 = vector.extract_strided_slice %293 {offsets = [0, 0], sizes = [8, 128], strides = [1, 1]} : vector<8x384xf32> to vector<8x128xf32>
    %303 = vector.extract_strided_slice %298 {offsets = [0, 0], sizes = [8, 128], strides = [1, 1]} : vector<8x384xf32> to vector<8x128xf32>
    %304 = arith.addf %302, %303 : vector<8x128xf32>
    %305 = arith.negf %304 : vector<8x128xf32>
    %306 = math.exp %305 : vector<8x128xf32>
    %cst_85 = arith.constant 1.000000e+00 : f32
    %307 = vector.broadcast %cst_85 : f32 to vector<8x128xf32>
    %308 = arith.addf %307, %306 : vector<8x128xf32>
    %309 = arith.divf %307, %308 : vector<8x128xf32>
    %310 = vector.extract_strided_slice %293 {offsets = [0, 128], sizes = [8, 128], strides = [1, 1]} : vector<8x384xf32> to vector<8x128xf32>
    %311 = vector.extract_strided_slice %298 {offsets = [0, 128], sizes = [8, 128], strides = [1, 1]} : vector<8x384xf32> to vector<8x128xf32>
    %312 = arith.addf %310, %311 : vector<8x128xf32>
    %313 = arith.negf %312 : vector<8x128xf32>
    %314 = math.exp %313 : vector<8x128xf32>
    %cst_86 = arith.constant 1.000000e+00 : f32
    %315 = vector.broadcast %cst_86 : f32 to vector<8x128xf32>
    %316 = arith.addf %315, %314 : vector<8x128xf32>
    %317 = arith.divf %315, %316 : vector<8x128xf32>
    %318 = vector.extract_strided_slice %293 {offsets = [0, 256], sizes = [8, 128], strides = [1, 1]} : vector<8x384xf32> to vector<8x128xf32>
    %319 = vector.extract_strided_slice %298 {offsets = [0, 256], sizes = [8, 128], strides = [1, 1]} : vector<8x384xf32> to vector<8x128xf32>
    %320 = arith.addf %319, %6 : vector<8x128xf32>
    %321 = arith.mulf %309, %320 : vector<8x128xf32>
    %322 = arith.addf %318, %321 : vector<8x128xf32>
    %323 = math.tanh %322 : vector<8x128xf32>
    %324 = arith.subf %257, %323 : vector<8x128xf32>
    %325 = arith.mulf %317, %324 : vector<8x128xf32>
    %326 = arith.addf %323, %325 : vector<8x128xf32>
    %327 = vector.extract_strided_slice %295 {offsets = [0, 0], sizes = [8, 128], strides = [1, 1]} : vector<8x384xf32> to vector<8x128xf32>
    %328 = vector.extract_strided_slice %301 {offsets = [0, 0], sizes = [8, 128], strides = [1, 1]} : vector<8x384xf32> to vector<8x128xf32>
    %329 = arith.addf %327, %328 : vector<8x128xf32>
    %330 = arith.negf %329 : vector<8x128xf32>
    %331 = math.exp %330 : vector<8x128xf32>
    %cst_87 = arith.constant 1.000000e+00 : f32
    %332 = vector.broadcast %cst_87 : f32 to vector<8x128xf32>
    %333 = arith.addf %332, %331 : vector<8x128xf32>
    %334 = arith.divf %332, %333 : vector<8x128xf32>
    %335 = vector.extract_strided_slice %295 {offsets = [0, 128], sizes = [8, 128], strides = [1, 1]} : vector<8x384xf32> to vector<8x128xf32>
    %336 = vector.extract_strided_slice %301 {offsets = [0, 128], sizes = [8, 128], strides = [1, 1]} : vector<8x384xf32> to vector<8x128xf32>
    %337 = arith.addf %335, %336 : vector<8x128xf32>
    %338 = arith.negf %337 : vector<8x128xf32>
    %339 = math.exp %338 : vector<8x128xf32>
    %cst_88 = arith.constant 1.000000e+00 : f32
    %340 = vector.broadcast %cst_88 : f32 to vector<8x128xf32>
    %341 = arith.addf %340, %339 : vector<8x128xf32>
    %342 = arith.divf %340, %341 : vector<8x128xf32>
    %343 = vector.extract_strided_slice %295 {offsets = [0, 256], sizes = [8, 128], strides = [1, 1]} : vector<8x384xf32> to vector<8x128xf32>
    %344 = vector.extract_strided_slice %301 {offsets = [0, 256], sizes = [8, 128], strides = [1, 1]} : vector<8x384xf32> to vector<8x128xf32>
    %345 = arith.addf %344, %9 : vector<8x128xf32>
    %346 = arith.mulf %334, %345 : vector<8x128xf32>
    %347 = arith.addf %343, %346 : vector<8x128xf32>
    %348 = math.tanh %347 : vector<8x128xf32>
    %349 = arith.subf %282, %348 : vector<8x128xf32>
    %350 = arith.mulf %342, %349 : vector<8x128xf32>
    %351 = arith.addf %348, %350 : vector<8x128xf32>
    %352 = arith.index_cast %288 : i32 to index
    %c0_89 = arith.constant 0 : index
    %353 = vector.load %arg4[%352, %c0_89] : memref<64x256xf32, #tpu.memory_space<vmem>>, vector<8x128xf32>
    tpu.vector_store %arg4[%352, %c0_89], %326 {strides = array<i32>} : memref<64x256xf32, #tpu.memory_space<vmem>>, vector<8x128xf32>,
    %354 = arith.index_cast %291 : i32 to index
    %c128_90 = arith.constant 128 : index
    %355 = vector.load %arg4[%354, %c128_90] : memref<64x256xf32, #tpu.memory_space<vmem>>, vector<8x128xf32>
    tpu.vector_store %arg4[%354, %c128_90], %351 {strides = array<i32>} : memref<64x256xf32, #tpu.memory_space<vmem>>, vector<8x128xf32>,
    %c5_i32 = arith.constant 5 : i32
    %c8_i32_91 = arith.constant 8 : i32
    %356 = arith.muli %c5_i32, %c8_i32_91 : i32
    %357 = tpu.assume_multiple %356, 8 : i32
    %c7_i32_92 = arith.constant 7 : i32
    %358 = arith.subi %c7_i32_92, %c5_i32 : i32
    %c8_i32_93 = arith.constant 8 : i32
    %359 = arith.muli %358, %c8_i32_93 : i32
    %360 = tpu.assume_multiple %359, 8 : i32
    %361 = arith.index_cast %357 : i32 to index
    %c0_94 = arith.constant 0 : index
    %362 = vector.load %arg6[%361, %c0_94] : memref<64x768xf32, #tpu.memory_space<vmem>>, vector<8x384xf32>
    %363 = arith.index_cast %360 : i32 to index
    %c384_95 = arith.constant 384 : index
    %364 = vector.load %arg6[%363, %c384_95] : memref<64x768xf32, #tpu.memory_space<vmem>>, vector<8x384xf32>
    %365 = arith.truncf %326 : vector<8x128xf32> to vector<8x128xbf16>
    %c0_96 = arith.constant 0 : index
    %c0_97 = arith.constant 0 : index
    %366 = vector.load %arg2[%c0_96, %c0_97] : memref<256x768xbf16, #tpu.memory_space<vmem>>, vector<128x384xbf16>
    %cst_98 = arith.constant dense<0.000000e+00> : vector<8x384xf32>
    %367 = tpu.matmul %365, %366, %cst_98 {dimension_numbers = #tpu.dot_dimension_numbers<[1], [0], [0], [1], [0, 0, 1, 1], [], []>} : vector<8x128xbf16>, vector<128x384xbf16>, vector<8x384xf32> -> vector<8x384xf32>
    %368 = arith.truncf %351 : vector<8x128xf32> to vector<8x128xbf16>
    %c128_99 = arith.constant 128 : index
    %c384_100 = arith.constant 384 : index
    %369 = vector.load %arg2[%c128_99, %c384_100] : memref<256x768xbf16, #tpu.memory_space<vmem>>, vector<128x384xbf16>
    %cst_101 = arith.constant dense<0.000000e+00> : vector<8x384xf32>
    %370 = tpu.matmul %368, %369, %cst_101 {dimension_numbers = #tpu.dot_dimension_numbers<[1], [0], [0], [1], [0, 0, 1, 1], [], []>} : vector<8x128xbf16>, vector<128x384xbf16>, vector<8x384xf32> -> vector<8x384xf32>
    %371 = vector.extract_strided_slice %362 {offsets = [0, 0], sizes = [8, 128], strides = [1, 1]} : vector<8x384xf32> to vector<8x128xf32>
    %372 = vector.extract_strided_slice %367 {offsets = [0, 0], sizes = [8, 128], strides = [1, 1]} : vector<8x384xf32> to vector<8x128xf32>
    %373 = arith.addf %371, %372 : vector<8x128xf32>
    %374 = arith.negf %373 : vector<8x128xf32>
    %375 = math.exp %374 : vector<8x128xf32>
    %cst_102 = arith.constant 1.000000e+00 : f32
    %376 = vector.broadcast %cst_102 : f32 to vector<8x128xf32>
    %377 = arith.addf %376, %375 : vector<8x128xf32>
    %378 = arith.divf %376, %377 : vector<8x128xf32>
    %379 = vector.extract_strided_slice %362 {offsets = [0, 128], sizes = [8, 128], strides = [1, 1]} : vector<8x384xf32> to vector<8x128xf32>
    %380 = vector.extract_strided_slice %367 {offsets = [0, 128], sizes = [8, 128], strides = [1, 1]} : vector<8x384xf32> to vector<8x128xf32>
    %381 = arith.addf %379, %380 : vector<8x128xf32>
    %382 = arith.negf %381 : vector<8x128xf32>
    %383 = math.exp %382 : vector<8x128xf32>
    %cst_103 = arith.constant 1.000000e+00 : f32
    %384 = vector.broadcast %cst_103 : f32 to vector<8x128xf32>
    %385 = arith.addf %384, %383 : vector<8x128xf32>
    %386 = arith.divf %384, %385 : vector<8x128xf32>
    %387 = vector.extract_strided_slice %362 {offsets = [0, 256], sizes = [8, 128], strides = [1, 1]} : vector<8x384xf32> to vector<8x128xf32>
    %388 = vector.extract_strided_slice %367 {offsets = [0, 256], sizes = [8, 128], strides = [1, 1]} : vector<8x384xf32> to vector<8x128xf32>
    %389 = arith.addf %388, %6 : vector<8x128xf32>
    %390 = arith.mulf %378, %389 : vector<8x128xf32>
    %391 = arith.addf %387, %390 : vector<8x128xf32>
    %392 = math.tanh %391 : vector<8x128xf32>
    %393 = arith.subf %326, %392 : vector<8x128xf32>
    %394 = arith.mulf %386, %393 : vector<8x128xf32>
    %395 = arith.addf %392, %394 : vector<8x128xf32>
    %396 = vector.extract_strided_slice %364 {offsets = [0, 0], sizes = [8, 128], strides = [1, 1]} : vector<8x384xf32> to vector<8x128xf32>
    %397 = vector.extract_strided_slice %370 {offsets = [0, 0], sizes = [8, 128], strides = [1, 1]} : vector<8x384xf32> to vector<8x128xf32>
    %398 = arith.addf %396, %397 : vector<8x128xf32>
    %399 = arith.negf %398 : vector<8x128xf32>
    %400 = math.exp %399 : vector<8x128xf32>
    %cst_104 = arith.constant 1.000000e+00 : f32
    %401 = vector.broadcast %cst_104 : f32 to vector<8x128xf32>
    %402 = arith.addf %401, %400 : vector<8x128xf32>
    %403 = arith.divf %401, %402 : vector<8x128xf32>
    %404 = vector.extract_strided_slice %364 {offsets = [0, 128], sizes = [8, 128], strides = [1, 1]} : vector<8x384xf32> to vector<8x128xf32>
    %405 = vector.extract_strided_slice %370 {offsets = [0, 128], sizes = [8, 128], strides = [1, 1]} : vector<8x384xf32> to vector<8x128xf32>
    %406 = arith.addf %404, %405 : vector<8x128xf32>
    %407 = arith.negf %406 : vector<8x128xf32>
    %408 = math.exp %407 : vector<8x128xf32>
    %cst_105 = arith.constant 1.000000e+00 : f32
    %409 = vector.broadcast %cst_105 : f32 to vector<8x128xf32>
    %410 = arith.addf %409, %408 : vector<8x128xf32>
    %411 = arith.divf %409, %410 : vector<8x128xf32>
    %412 = vector.extract_strided_slice %364 {offsets = [0, 256], sizes = [8, 128], strides = [1, 1]} : vector<8x384xf32> to vector<8x128xf32>
    %413 = vector.extract_strided_slice %370 {offsets = [0, 256], sizes = [8, 128], strides = [1, 1]} : vector<8x384xf32> to vector<8x128xf32>
    %414 = arith.addf %413, %9 : vector<8x128xf32>
    %415 = arith.mulf %403, %414 : vector<8x128xf32>
    %416 = arith.addf %412, %415 : vector<8x128xf32>
    %417 = math.tanh %416 : vector<8x128xf32>
    %418 = arith.subf %351, %417 : vector<8x128xf32>
    %419 = arith.mulf %411, %418 : vector<8x128xf32>
    %420 = arith.addf %417, %419 : vector<8x128xf32>
    %421 = arith.index_cast %357 : i32 to index
    %c0_106 = arith.constant 0 : index
    %422 = vector.load %arg4[%421, %c0_106] : memref<64x256xf32, #tpu.memory_space<vmem>>, vector<8x128xf32>
    tpu.vector_store %arg4[%421, %c0_106], %395 {strides = array<i32>} : memref<64x256xf32, #tpu.memory_space<vmem>>, vector<8x128xf32>,
    %423 = arith.index_cast %360 : i32 to index
    %c128_107 = arith.constant 128 : index
    %424 = vector.load %arg4[%423, %c128_107] : memref<64x256xf32, #tpu.memory_space<vmem>>, vector<8x128xf32>
    tpu.vector_store %arg4[%423, %c128_107], %420 {strides = array<i32>} : memref<64x256xf32, #tpu.memory_space<vmem>>, vector<8x128xf32>,
    %c6_i32 = arith.constant 6 : i32
    %c8_i32_108 = arith.constant 8 : i32
    %425 = arith.muli %c6_i32, %c8_i32_108 : i32
    %426 = tpu.assume_multiple %425, 8 : i32
    %c7_i32_109 = arith.constant 7 : i32
    %427 = arith.subi %c7_i32_109, %c6_i32 : i32
    %c8_i32_110 = arith.constant 8 : i32
    %428 = arith.muli %427, %c8_i32_110 : i32
    %429 = tpu.assume_multiple %428, 8 : i32
    %430 = arith.index_cast %426 : i32 to index
    %c0_111 = arith.constant 0 : index
    %431 = vector.load %arg6[%430, %c0_111] : memref<64x768xf32, #tpu.memory_space<vmem>>, vector<8x384xf32>
    %432 = arith.index_cast %429 : i32 to index
    %c384_112 = arith.constant 384 : index
    %433 = vector.load %arg6[%432, %c384_112] : memref<64x768xf32, #tpu.memory_space<vmem>>, vector<8x384xf32>
    %434 = arith.truncf %395 : vector<8x128xf32> to vector<8x128xbf16>
    %c0_113 = arith.constant 0 : index
    %c0_114 = arith.constant 0 : index
    %435 = vector.load %arg2[%c0_113, %c0_114] : memref<256x768xbf16, #tpu.memory_space<vmem>>, vector<128x384xbf16>
    %cst_115 = arith.constant dense<0.000000e+00> : vector<8x384xf32>
    %436 = tpu.matmul %434, %435, %cst_115 {dimension_numbers = #tpu.dot_dimension_numbers<[1], [0], [0], [1], [0, 0, 1, 1], [], []>} : vector<8x128xbf16>, vector<128x384xbf16>, vector<8x384xf32> -> vector<8x384xf32>
    %437 = arith.truncf %420 : vector<8x128xf32> to vector<8x128xbf16>
    %c128_116 = arith.constant 128 : index
    %c384_117 = arith.constant 384 : index
    %438 = vector.load %arg2[%c128_116, %c384_117] : memref<256x768xbf16, #tpu.memory_space<vmem>>, vector<128x384xbf16>
    %cst_118 = arith.constant dense<0.000000e+00> : vector<8x384xf32>
    %439 = tpu.matmul %437, %438, %cst_118 {dimension_numbers = #tpu.dot_dimension_numbers<[1], [0], [0], [1], [0, 0, 1, 1], [], []>} : vector<8x128xbf16>, vector<128x384xbf16>, vector<8x384xf32> -> vector<8x384xf32>
    %440 = vector.extract_strided_slice %431 {offsets = [0, 0], sizes = [8, 128], strides = [1, 1]} : vector<8x384xf32> to vector<8x128xf32>
    %441 = vector.extract_strided_slice %436 {offsets = [0, 0], sizes = [8, 128], strides = [1, 1]} : vector<8x384xf32> to vector<8x128xf32>
    %442 = arith.addf %440, %441 : vector<8x128xf32>
    %443 = arith.negf %442 : vector<8x128xf32>
    %444 = math.exp %443 : vector<8x128xf32>
    %cst_119 = arith.constant 1.000000e+00 : f32
    %445 = vector.broadcast %cst_119 : f32 to vector<8x128xf32>
    %446 = arith.addf %445, %444 : vector<8x128xf32>
    %447 = arith.divf %445, %446 : vector<8x128xf32>
    %448 = vector.extract_strided_slice %431 {offsets = [0, 128], sizes = [8, 128], strides = [1, 1]} : vector<8x384xf32> to vector<8x128xf32>
    %449 = vector.extract_strided_slice %436 {offsets = [0, 128], sizes = [8, 128], strides = [1, 1]} : vector<8x384xf32> to vector<8x128xf32>
    %450 = arith.addf %448, %449 : vector<8x128xf32>
    %451 = arith.negf %450 : vector<8x128xf32>
    %452 = math.exp %451 : vector<8x128xf32>
    %cst_120 = arith.constant 1.000000e+00 : f32
    %453 = vector.broadcast %cst_120 : f32 to vector<8x128xf32>
    %454 = arith.addf %453, %452 : vector<8x128xf32>
    %455 = arith.divf %453, %454 : vector<8x128xf32>
    %456 = vector.extract_strided_slice %431 {offsets = [0, 256], sizes = [8, 128], strides = [1, 1]} : vector<8x384xf32> to vector<8x128xf32>
    %457 = vector.extract_strided_slice %436 {offsets = [0, 256], sizes = [8, 128], strides = [1, 1]} : vector<8x384xf32> to vector<8x128xf32>
    %458 = arith.addf %457, %6 : vector<8x128xf32>
    %459 = arith.mulf %447, %458 : vector<8x128xf32>
    %460 = arith.addf %456, %459 : vector<8x128xf32>
    %461 = math.tanh %460 : vector<8x128xf32>
    %462 = arith.subf %395, %461 : vector<8x128xf32>
    %463 = arith.mulf %455, %462 : vector<8x128xf32>
    %464 = arith.addf %461, %463 : vector<8x128xf32>
    %465 = vector.extract_strided_slice %433 {offsets = [0, 0], sizes = [8, 128], strides = [1, 1]} : vector<8x384xf32> to vector<8x128xf32>
    %466 = vector.extract_strided_slice %439 {offsets = [0, 0], sizes = [8, 128], strides = [1, 1]} : vector<8x384xf32> to vector<8x128xf32>
    %467 = arith.addf %465, %466 : vector<8x128xf32>
    %468 = arith.negf %467 : vector<8x128xf32>
    %469 = math.exp %468 : vector<8x128xf32>
    %cst_121 = arith.constant 1.000000e+00 : f32
    %470 = vector.broadcast %cst_121 : f32 to vector<8x128xf32>
    %471 = arith.addf %470, %469 : vector<8x128xf32>
    %472 = arith.divf %470, %471 : vector<8x128xf32>
    %473 = vector.extract_strided_slice %433 {offsets = [0, 128], sizes = [8, 128], strides = [1, 1]} : vector<8x384xf32> to vector<8x128xf32>
    %474 = vector.extract_strided_slice %439 {offsets = [0, 128], sizes = [8, 128], strides = [1, 1]} : vector<8x384xf32> to vector<8x128xf32>
    %475 = arith.addf %473, %474 : vector<8x128xf32>
    %476 = arith.negf %475 : vector<8x128xf32>
    %477 = math.exp %476 : vector<8x128xf32>
    %cst_122 = arith.constant 1.000000e+00 : f32
    %478 = vector.broadcast %cst_122 : f32 to vector<8x128xf32>
    %479 = arith.addf %478, %477 : vector<8x128xf32>
    %480 = arith.divf %478, %479 : vector<8x128xf32>
    %481 = vector.extract_strided_slice %433 {offsets = [0, 256], sizes = [8, 128], strides = [1, 1]} : vector<8x384xf32> to vector<8x128xf32>
    %482 = vector.extract_strided_slice %439 {offsets = [0, 256], sizes = [8, 128], strides = [1, 1]} : vector<8x384xf32> to vector<8x128xf32>
    %483 = arith.addf %482, %9 : vector<8x128xf32>
    %484 = arith.mulf %472, %483 : vector<8x128xf32>
    %485 = arith.addf %481, %484 : vector<8x128xf32>
    %486 = math.tanh %485 : vector<8x128xf32>
    %487 = arith.subf %420, %486 : vector<8x128xf32>
    %488 = arith.mulf %480, %487 : vector<8x128xf32>
    %489 = arith.addf %486, %488 : vector<8x128xf32>
    %490 = arith.index_cast %426 : i32 to index
    %c0_123 = arith.constant 0 : index
    %491 = vector.load %arg4[%490, %c0_123] : memref<64x256xf32, #tpu.memory_space<vmem>>, vector<8x128xf32>
    tpu.vector_store %arg4[%490, %c0_123], %464 {strides = array<i32>} : memref<64x256xf32, #tpu.memory_space<vmem>>, vector<8x128xf32>,
    %492 = arith.index_cast %429 : i32 to index
    %c128_124 = arith.constant 128 : index
    %493 = vector.load %arg4[%492, %c128_124] : memref<64x256xf32, #tpu.memory_space<vmem>>, vector<8x128xf32>
    tpu.vector_store %arg4[%492, %c128_124], %489 {strides = array<i32>} : memref<64x256xf32, #tpu.memory_space<vmem>>, vector<8x128xf32>,
    %c7_i32_125 = arith.constant 7 : i32
    %c8_i32_126 = arith.constant 8 : i32
    %494 = arith.muli %c7_i32_125, %c8_i32_126 : i32
    %495 = tpu.assume_multiple %494, 8 : i32
    %c7_i32_127 = arith.constant 7 : i32
    %496 = arith.subi %c7_i32_127, %c7_i32_125 : i32
    %c8_i32_128 = arith.constant 8 : i32
    %497 = arith.muli %496, %c8_i32_128 : i32
    %498 = tpu.assume_multiple %497, 8 : i32
    %499 = arith.index_cast %495 : i32 to index
    %c0_129 = arith.constant 0 : index
    %500 = vector.load %arg6[%499, %c0_129] : memref<64x768xf32, #tpu.memory_space<vmem>>, vector<8x384xf32>
    %501 = arith.index_cast %498 : i32 to index
    %c384_130 = arith.constant 384 : index
    %502 = vector.load %arg6[%501, %c384_130] : memref<64x768xf32, #tpu.memory_space<vmem>>, vector<8x384xf32>
    %503 = arith.truncf %464 : vector<8x128xf32> to vector<8x128xbf16>
    %c0_131 = arith.constant 0 : index
    %c0_132 = arith.constant 0 : index
    %504 = vector.load %arg2[%c0_131, %c0_132] : memref<256x768xbf16, #tpu.memory_space<vmem>>, vector<128x384xbf16>
    %cst_133 = arith.constant dense<0.000000e+00> : vector<8x384xf32>
    %505 = tpu.matmul %503, %504, %cst_133 {dimension_numbers = #tpu.dot_dimension_numbers<[1], [0], [0], [1], [0, 0, 1, 1], [], []>} : vector<8x128xbf16>, vector<128x384xbf16>, vector<8x384xf32> -> vector<8x384xf32>
    %506 = arith.truncf %489 : vector<8x128xf32> to vector<8x128xbf16>
    %c128_134 = arith.constant 128 : index
    %c384_135 = arith.constant 384 : index
    %507 = vector.load %arg2[%c128_134, %c384_135] : memref<256x768xbf16, #tpu.memory_space<vmem>>, vector<128x384xbf16>
    %cst_136 = arith.constant dense<0.000000e+00> : vector<8x384xf32>
    %508 = tpu.matmul %506, %507, %cst_136 {dimension_numbers = #tpu.dot_dimension_numbers<[1], [0], [0], [1], [0, 0, 1, 1], [], []>} : vector<8x128xbf16>, vector<128x384xbf16>, vector<8x384xf32> -> vector<8x384xf32>
    %509 = vector.extract_strided_slice %500 {offsets = [0, 0], sizes = [8, 128], strides = [1, 1]} : vector<8x384xf32> to vector<8x128xf32>
    %510 = vector.extract_strided_slice %505 {offsets = [0, 0], sizes = [8, 128], strides = [1, 1]} : vector<8x384xf32> to vector<8x128xf32>
    %511 = arith.addf %509, %510 : vector<8x128xf32>
    %512 = arith.negf %511 : vector<8x128xf32>
    %513 = math.exp %512 : vector<8x128xf32>
    %cst_137 = arith.constant 1.000000e+00 : f32
    %514 = vector.broadcast %cst_137 : f32 to vector<8x128xf32>
    %515 = arith.addf %514, %513 : vector<8x128xf32>
    %516 = arith.divf %514, %515 : vector<8x128xf32>
    %517 = vector.extract_strided_slice %500 {offsets = [0, 128], sizes = [8, 128], strides = [1, 1]} : vector<8x384xf32> to vector<8x128xf32>
    %518 = vector.extract_strided_slice %505 {offsets = [0, 128], sizes = [8, 128], strides = [1, 1]} : vector<8x384xf32> to vector<8x128xf32>
    %519 = arith.addf %517, %518 : vector<8x128xf32>
    %520 = arith.negf %519 : vector<8x128xf32>
    %521 = math.exp %520 : vector<8x128xf32>
    %cst_138 = arith.constant 1.000000e+00 : f32
    %522 = vector.broadcast %cst_138 : f32 to vector<8x128xf32>
    %523 = arith.addf %522, %521 : vector<8x128xf32>
    %524 = arith.divf %522, %523 : vector<8x128xf32>
    %525 = vector.extract_strided_slice %500 {offsets = [0, 256], sizes = [8, 128], strides = [1, 1]} : vector<8x384xf32> to vector<8x128xf32>
    %526 = vector.extract_strided_slice %505 {offsets = [0, 256], sizes = [8, 128], strides = [1, 1]} : vector<8x384xf32> to vector<8x128xf32>
    %527 = arith.addf %526, %6 : vector<8x128xf32>
    %528 = arith.mulf %516, %527 : vector<8x128xf32>
    %529 = arith.addf %525, %528 : vector<8x128xf32>
    %530 = math.tanh %529 : vector<8x128xf32>
    %531 = arith.subf %464, %530 : vector<8x128xf32>
    %532 = arith.mulf %524, %531 : vector<8x128xf32>
    %533 = arith.addf %530, %532 : vector<8x128xf32>
    %534 = vector.extract_strided_slice %502 {offsets = [0, 0], sizes = [8, 128], strides = [1, 1]} : vector<8x384xf32> to vector<8x128xf32>
    %535 = vector.extract_strided_slice %508 {offsets = [0, 0], sizes = [8, 128], strides = [1, 1]} : vector<8x384xf32> to vector<8x128xf32>
    %536 = arith.addf %534, %535 : vector<8x128xf32>
    %537 = arith.negf %536 : vector<8x128xf32>
    %538 = math.exp %537 : vector<8x128xf32>
    %cst_139 = arith.constant 1.000000e+00 : f32
    %539 = vector.broadcast %cst_139 : f32 to vector<8x128xf32>
    %540 = arith.addf %539, %538 : vector<8x128xf32>
    %541 = arith.divf %539, %540 : vector<8x128xf32>
    %542 = vector.extract_strided_slice %502 {offsets = [0, 128], sizes = [8, 128], strides = [1, 1]} : vector<8x384xf32> to vector<8x128xf32>
    %543 = vector.extract_strided_slice %508 {offsets = [0, 128], sizes = [8, 128], strides = [1, 1]} : vector<8x384xf32> to vector<8x128xf32>
    %544 = arith.addf %542, %543 : vector<8x128xf32>
    %545 = arith.negf %544 : vector<8x128xf32>
    %546 = math.exp %545 : vector<8x128xf32>
    %cst_140 = arith.constant 1.000000e+00 : f32
    %547 = vector.broadcast %cst_140 : f32 to vector<8x128xf32>
    %548 = arith.addf %547, %546 : vector<8x128xf32>
    %549 = arith.divf %547, %548 : vector<8x128xf32>
    %550 = vector.extract_strided_slice %502 {offsets = [0, 256], sizes = [8, 128], strides = [1, 1]} : vector<8x384xf32> to vector<8x128xf32>
    %551 = vector.extract_strided_slice %508 {offsets = [0, 256], sizes = [8, 128], strides = [1, 1]} : vector<8x384xf32> to vector<8x128xf32>
    %552 = arith.addf %551, %9 : vector<8x128xf32>
    %553 = arith.mulf %541, %552 : vector<8x128xf32>
    %554 = arith.addf %550, %553 : vector<8x128xf32>
    %555 = math.tanh %554 : vector<8x128xf32>
    %556 = arith.subf %489, %555 : vector<8x128xf32>
    %557 = arith.mulf %549, %556 : vector<8x128xf32>
    %558 = arith.addf %555, %557 : vector<8x128xf32>
    %559 = arith.index_cast %495 : i32 to index
    %c0_141 = arith.constant 0 : index
    %560 = vector.load %arg4[%559, %c0_141] : memref<64x256xf32, #tpu.memory_space<vmem>>, vector<8x128xf32>
    tpu.vector_store %arg4[%559, %c0_141], %533 {strides = array<i32>} : memref<64x256xf32, #tpu.memory_space<vmem>>, vector<8x128xf32>,
    %561 = arith.index_cast %498 : i32 to index
    %c128_142 = arith.constant 128 : index
    %562 = vector.load %arg4[%561, %c128_142] : memref<64x256xf32, #tpu.memory_space<vmem>>, vector<8x128xf32>
    tpu.vector_store %arg4[%561, %c128_142], %558 {strides = array<i32>} : memref<64x256xf32, #tpu.memory_space<vmem>>, vector<8x128xf32>,
    %c8_i32_143 = arith.constant 8 : i32
    %c0_144 = arith.constant 0 : index
    %c0_145 = arith.constant 0 : index
    %c0_146 = arith.constant 0 : index
    %563 = vector.load %arg5[%c0_144, %c0_145, %c0_146] : memref<2x8x128xf32, #tpu.memory_space<vmem>>, vector<1x8x128xf32>
    %564 = vector.shape_cast %563 : vector<1x8x128xf32> to vector<8x128xf32>
    %565 = vector.shape_cast %533 : vector<8x128xf32> to vector<1x8x128xf32>
    tpu.vector_store %arg5[%c0_144, %c0_145, %c0_146], %565 {strides = array<i32>} : memref<2x8x128xf32, #tpu.memory_space<vmem>>, vector<1x8x128xf32>,
    %c1 = arith.constant 1 : index
    %c0_147 = arith.constant 0 : index
    %c0_148 = arith.constant 0 : index
    %566 = vector.load %arg5[%c1, %c0_147, %c0_148] : memref<2x8x128xf32, #tpu.memory_space<vmem>>, vector<1x8x128xf32>
    %567 = vector.shape_cast %566 : vector<1x8x128xf32> to vector<8x128xf32>
    %568 = vector.shape_cast %558 : vector<8x128xf32> to vector<1x8x128xf32>
    tpu.vector_store %arg5[%c1, %c0_147, %c0_148], %568 {strides = array<i32>} : memref<2x8x128xf32, #tpu.memory_space<vmem>>, vector<1x8x128xf32>,
    return
  }
}

</mosaic_0001>

<bundles_post_ra>
// kernel: gru_layer.1
= control target key start
LH: loop header
LB: loop body
LE: loop exit
PB: predicated region body
PF: predicated region fallthrough
CT: control target
= control target key end

     0   :  { %vm7580_vm0 = vmmov 0   ;;  %s9753_s1 = inlined_call_operand.vmem [shape: bf16[384,768], index: 1, kind: input, shape index: {}]   ;;  %s9754_s0 = inlined_call_operand.vmem [shape: bf16[64,384], index: 0, kind: input, shape index: {}]   ;;  %s9755_s2 = inlined_call_operand.vmem [shape: bf16[256,768], index: 2, kind: input, shape index: {}]   ;;  %s9756_s3 = inlined_call_operand.vmem [shape: f32[1,256], index: 3, kind: input, shape index: {}]   ;;  %s9757_s4 = inlined_call_operand.vmem [shape: f32[64,256], index: 4, kind: output, shape index: {0}]   ;;  %s9758_s5 = inlined_call_operand.vmem [shape: f32[2,8,128], index: 5, kind: output, shape index: {1}]  }
   0x1   :  { %v6911_v0 = vld [vmem:[%s9753_s1 + $0x4] ss:$24 sps:$4 sm:$0xff]   ;;  %v6915_v2 = vld [vmem:[%s9753_s1] ss:$24 sps:$4 sm:$0xff]   ;;  %v6917_v4 = vld [vmem:[%s9753_s1 + $0x34] ss:$24 sps:$4 sm:$0xff]  }
   0x2   :  { %v6913_v1 = vld [vmem:[%s9753_s1 + $0xc] ss:$24 sps:$4 sm:$0xff]   ;;  %964 = vmatprep.subr.bf16.mxu0 %v6911_v0  ;;  %v6916_v3 = vld [vmem:[%s9753_s1 + $0x8] ss:$24 sps:$4 sm:$0xff]   ;;  %v6919_v5 = vld [vmem:[%s9753_s1 + $0x3c] ss:$24 sps:$4 sm:$0xff]  }
   0x3   :  { %1110 = vmatprep.subr.bf16.mxu1 %v6913_v1  ;;  %965 = vmatpush1.bf16.msra.mxu0 %v6915_v2  ;;  %v6921_v6 = vld [vmem:[%s9753_s1 + $0x30] ss:$24 sps:$4 sm:$0xff]   ;;  %v6923_v8 = vld [vmem:[%s9753_s1 + $0x64] ss:$24 sps:$4 sm:$0xff]   ;;  %v6927_v10 = vld [vmem:[%s9753_s1 + $0x60] ss:$24 sps:$4 sm:$0xff]  }
   0x4   :  { %1111 = vmatpush1.bf16.msra.mxu1 %v6916_v3  ;;  %966 = vmatprep.subr.bf16.mxu0 %v6917_v4  ;;  %v6922_v7 = vld [vmem:[%s9753_s1 + $0x38] ss:$24 sps:$4 sm:$0xff]   ;;  %v6925_v9 = vld [vmem:[%s9753_s1 + $0x6c] ss:$24 sps:$4 sm:$0xff]   ;;  %v6928_v11 = vld [vmem:[%s9753_s1 + $0x68] ss:$24 sps:$4 sm:$0xff]  }
   0x5   :  { %1112 = vmatprep.subr.bf16.mxu1 %v6919_v5  ;;  %v6929_v12 = vld [vmem:[%s9753_s1 + $0x94] ss:$24 sps:$4 sm:$0xff]   ;;  %v6933_v14 = vld [vmem:[%s9753_s1 + $0x90] ss:$24 sps:$4 sm:$0xff]   ;;  %v6935_v16 = vld [vmem:[%s9753_s1 + $0xc4] ss:$24 sps:$4 sm:$0xff]  }
   0x6   :  { %v6931_v13 = vld [vmem:[%s9753_s1 + $0x9c] ss:$24 sps:$4 sm:$0xff]   ;;  %v6934_v15 = vld [vmem:[%s9753_s1 + $0x98] ss:$24 sps:$4 sm:$0xff]   ;;  %v6937_v17 = vld [vmem:[%s9753_s1 + $0xcc] ss:$24 sps:$4 sm:$0xff]  }
   0x7   :  { %967 = vmatpush1.bf16.msra.mxu0 %v6921_v6  ;;  %v6939_v18 = vld [vmem:[%s9753_s1 + $0xc0] ss:$24 sps:$4 sm:$0xff]   ;;  %v6941_v20 = vld [vmem:[%s9753_s1 + $0xf4] ss:$24 sps:$4 sm:$0xff]   ;;  %v6945_v22 = vld [vmem:[%s9753_s1 + $0xf0] ss:$24 sps:$4 sm:$0xff]  }
   0x8   :  { %1113 = vmatpush1.bf16.msra.mxu1 %v6922_v7  ;;  %968 = vmatprep.subr.bf16.mxu0 %v6923_v8  ;;  %v6940_v19 = vld [vmem:[%s9753_s1 + $0xc8] ss:$24 sps:$4 sm:$0xff]   ;;  %v6943_v21 = vld [vmem:[%s9753_s1 + $0xfc] ss:$24 sps:$4 sm:$0xff]   ;;  %v6946_v23 = vld [vmem:[%s9753_s1 + $0xf8] ss:$24 sps:$4 sm:$0xff]  }
   0x9   :  { %1114 = vmatprep.subr.bf16.mxu1 %v6925_v9  ;;  %v6947_v24 = vld [vmem:[%s9753_s1 + $0x124] ss:$24 sps:$4 sm:$0xff]   ;;  %v6951_v26 = vld [vmem:[%s9753_s1 + $0x120] ss:$24 sps:$4 sm:$0xff]   ;;  %v6953_v28 = vld [vmem:[%s9753_s1 + $0x154] ss:$24 sps:$4 sm:$0xff]  }
   0xa   :  { %v6949_v25 = vld [vmem:[%s9753_s1 + $0x12c] ss:$24 sps:$4 sm:$0xff]   ;;  %v6952_v27 = vld [vmem:[%s9753_s1 + $0x128] ss:$24 sps:$4 sm:$0xff]   ;;  %v6955_v29 = vld [vmem:[%s9753_s1 + $0x15c] ss:$24 sps:$4 sm:$0xff]  }
   0xb   :  { %969 = vmatpush1.bf16.msra.mxu0 %v6927_v10  ;;  %v6957_v30 = vld [vmem:[%s9753_s1 + $0x150] ss:$24 sps:$4 sm:$0xff]   ;;  %v6959_v32 = vld [vmem:[%s9753_s1 + $0x184] ss:$24 sps:$4 sm:$0xff]   ;;  %v6963_v34 = vld [vmem:[%s9753_s1 + $0x180] ss:$24 sps:$4 sm:$0xff]  }
   0xc   :  { %1115 = vmatpush1.bf16.msra.mxu1 %v6928_v11  ;;  %970 = vmatprep.subr.bf16.mxu0 %v6929_v12  ;;  %v6958_v31 = vld [vmem:[%s9753_s1 + $0x158] ss:$24 sps:$4 sm:$0xff]   ;;  %v6961_v33 = vld [vmem:[%s9753_s1 + $0x18c] ss:$24 sps:$4 sm:$0xff]   ;;  %v6964_v35 = vld [vmem:[%s9753_s1 + $0x188] ss:$24 sps:$4 sm:$0xff]  }
   0xd   :  { %1116 = vmatprep.subr.bf16.mxu1 %v6931_v13  ;;  %v6965_v36 = vld [vmem:[%s9753_s1 + $0x1b4] ss:$24 sps:$4 sm:$0xff]   ;;  %v6969_v38 = vld [vmem:[%s9753_s1 + $0x1b0] ss:$24 sps:$4 sm:$0xff]   ;;  %v6971_v40 = vld [vmem:[%s9753_s1 + $0x1e4] ss:$24 sps:$4 sm:$0xff]  }
   0xe   :  { %v6967_v37 = vld [vmem:[%s9753_s1 + $0x1bc] ss:$24 sps:$4 sm:$0xff]   ;;  %v6970_v39 = vld [vmem:[%s9753_s1 + $0x1b8] ss:$24 sps:$4 sm:$0xff]   ;;  %v6973_v41 = vld [vmem:[%s9753_s1 + $0x1ec] ss:$24 sps:$4 sm:$0xff]  }
   0xf   :  { %971 = vmatpush1.bf16.msra.mxu0 %v6933_v14  ;;  %v6975_v42 = vld [vmem:[%s9753_s1 + $0x1e0] ss:$24 sps:$4 sm:$0xff]   ;;  %v6977_v44 = vld [vmem:[%s9753_s1 + $0x214] ss:$24 sps:$4 sm:$0xff]   ;;  %v6981_v46 = vld [vmem:[%s9753_s1 + $0x210] ss:$24 sps:$4 sm:$0xff]  }
  0x10   :  { %1117 = vmatpush1.bf16.msra.mxu1 %v6934_v15  ;;  %972 = vmatprep.subr.bf16.mxu0 %v6935_v16  ;;  %v6976_v43 = vld [vmem:[%s9753_s1 + $0x1e8] ss:$24 sps:$4 sm:$0xff]   ;;  %v6979_v45 = vld [vmem:[%s9753_s1 + $0x21c] ss:$24 sps:$4 sm:$0xff]   ;;  %v6982_v47 = vld [vmem:[%s9753_s1 + $0x218] ss:$24 sps:$4 sm:$0xff]  }
  0x11   :  { %1118 = vmatprep.subr.bf16.mxu1 %v6937_v17  ;;  %v7758_v48 = vld [vmem:[%s9754_s0 + $0x4] ss:$12 sps:$4 sm:$0xff]   ;;  %v6987_v51 = vld [vmem:[%s9753_s1 + $0x240] ss:$24 sps:$4 sm:$0xff]   ;;  %v6989_v53 = vld [vmem:[%s9753_s1 + $0x274] ss:$24 sps:$4 sm:$0xff]  }
  0x12   :  { %v6983_v49 = vld [vmem:[%s9753_s1 + $0x244] ss:$24 sps:$4 sm:$0xff]   ;;  %996 = vmatprep.mubr.bf16.mxu0 %v7758_v48  ;;  %1142 = vmatprep.mubr.bf16.mxu1 %v7758_v48  ;;  %v6988_v52 = vld [vmem:[%s9753_s1 + $0x248] ss:$24 sps:$4 sm:$0xff]   ;;  %v6994_v56 = vld [vmem:[%s9753_s1 + $0x278] ss:$24 sps:$4 sm:$0xff]  }
  0x13   :  { %973 = vmatpush1.bf16.msra.mxu0 %v6939_v18  ;;  %v6985_v50 = vld [vmem:[%s9753_s1 + $0x24c] ss:$24 sps:$4 sm:$0xff]   ;;  %v6991_v54 = vld [vmem:[%s9753_s1 + $0x27c] ss:$24 sps:$4 sm:$0xff]   ;;  %v6993_v55 = vld [vmem:[%s9753_s1 + $0x270] ss:$24 sps:$4 sm:$0xff]  }
  0x14   :  { %1119 = vmatpush1.bf16.msra.mxu1 %v6940_v19  ;;  %974 = vmatprep.subr.bf16.mxu0 %v6941_v20  ;;  %v6995_v57 = vld [vmem:[%s9753_s1 + $0x2a4] ss:$24 sps:$4 sm:$0xff]   ;;  %v6999_v59 = vld [vmem:[%s9753_s1 + $0x2a0] ss:$24 sps:$4 sm:$0xff]   ;;  %v7001_v61 = vld [vmem:[%s9753_s1 + $0x2d4] ss:$24 sps:$4 sm:$0xff]  }
  0x15   :  { %1120 = vmatprep.subr.bf16.mxu1 %v6943_v21  ;;  %v6997_v58 = vld [vmem:[%s9753_s1 + $0x2ac] ss:$24 sps:$4 sm:$0xff]   ;;  %v7000_v60 = vld [vmem:[%s9753_s1 + $0x2a8] ss:$24 sps:$4 sm:$0xff]   ;;  %v7003_v62 = vld [vmem:[%s9753_s1 + $0x2dc] ss:$24 sps:$4 sm:$0xff]  }
  0x16   :  { %v7005_v63 = vld [vmem:[%s9753_s1 + $0x2d0] ss:$24 sps:$4 sm:$0xff]   ;;  %v7012_v1 = vld [vmem:[%s9753_s1 + $0x304] ss:$24 sps:$4 sm:$0xff]   ;;  %v7819_v3 = vld [vmem:[%s9754_s0] ss:$12 sps:$4 sm:$0xff]  }
  0x17   :  { %975 = vmatpush1.bf16.msra.mxu0 %v6945_v22  ;;  %v7006_v0 = vld [vmem:[%s9753_s1 + $0x2d8] ss:$24 sps:$4 sm:$0xff]   ;;  %v7015_v2 = vld [vmem:[%s9753_s1 + $0x30c] ss:$24 sps:$4 sm:$0xff]   ;;  %v7013_v5 = vld [vmem:[%s9753_s1 + $0x308] ss:$24 sps:$4 sm:$0xff]  }
  0x18   :  { %1121 = vmatpush1.bf16.msra.mxu1 %v6946_v23  ;;  %976 = vmatprep.subr.bf16.mxu0 %v6947_v24  ;;  %v7010_v4 = vld [vmem:[%s9753_s1 + $0x300] ss:$24 sps:$4 sm:$0xff]   ;;  %v7018_v6 = vld [vmem:[%s9753_s1 + $0x334] ss:$24 sps:$4 sm:$0xff]   ;;  %v7836_v8 = vld [vmem:[%s9754_s0 + $0x1c] ss:$12 sps:$4 sm:$0xff]  }
  0x19   :  { %1122 = vmatprep.subr.bf16.mxu1 %v6949_v25  ;;  %v7021_v7 = vld [vmem:[%s9753_s1 + $0x33c] ss:$24 sps:$4 sm:$0xff]   ;;  %v7016_v9 = vld [vmem:[%s9753_s1 + $0x330] ss:$24 sps:$4 sm:$0xff]   ;;  %v7030_v12 = vld [vmem:[%s9753_s1 + $0x36c] ss:$24 sps:$4 sm:$0xff]  }
  0x1a   :  { %v7019_v10 = vld [vmem:[%s9753_s1 + $0x338] ss:$24 sps:$4 sm:$0xff]   ;;  %v7027_v11 = vld [vmem:[%s9753_s1 + $0x364] ss:$24 sps:$4 sm:$0xff]   ;;  %v7028_v15 = vld [vmem:[%s9753_s1 + $0x368] ss:$24 sps:$4 sm:$0xff]  }
  0x1b   :  { %977 = vmatpush1.bf16.msra.mxu0 %v6951_v26  ;;  %v7857_v13 = vld [vmem:[%s9754_s0 + $0x18] ss:$12 sps:$4 sm:$0xff]   ;;  %v7033_v16 = vld [vmem:[%s9753_s1 + $0x394] ss:$24 sps:$4 sm:$0xff]   ;;  %v7031_v19 = vld [vmem:[%s9753_s1 + $0x390] ss:$24 sps:$4 sm:$0xff]  }
  0x1c   :  { %1123 = vmatpush1.bf16.msra.mxu1 %v6952_v27  ;;  %978 = vmatprep.subr.bf16.mxu0 %v6953_v28  ;;  %v7025_v14 = vld [vmem:[%s9753_s1 + $0x360] ss:$24 sps:$4 sm:$0xff]   ;;  %v7036_v17 = vld [vmem:[%s9753_s1 + $0x39c] ss:$24 sps:$4 sm:$0xff]   ;;  %v7045_v22 = vld [vmem:[%s9753_s1 + $0x3cc] ss:$24 sps:$4 sm:$0xff]  }
  0x1d   :  { %1124 = vmatprep.subr.bf16.mxu1 %v6955_v29  ;;  %v7874_v18 = vld [vmem:[%s9754_s0 + $0x34] ss:$12 sps:$4 sm:$0xff]   ;;  %v7034_v20 = vld [vmem:[%s9753_s1 + $0x398] ss:$24 sps:$4 sm:$0xff]   ;;  %v7042_v21 = vld [vmem:[%s9753_s1 + $0x3c4] ss:$24 sps:$4 sm:$0xff]  }
  0x1e   :  { %v7895_v23 = vld [vmem:[%s9754_s0 + $0x30] ss:$12 sps:$4 sm:$0xff]   ;;  %v7040_v24 = vld [vmem:[%s9753_s1 + $0x3c0] ss:$24 sps:$4 sm:$0xff]   ;;  %v7048_v26 = vld [vmem:[%s9753_s1 + $0x3f4] ss:$24 sps:$4 sm:$0xff]  }
  0x1f   :  { %979 = vmatpush1.bf16.msra.mxu0 %v6957_v30  ;;  %v7043_v25 = vld [vmem:[%s9753_s1 + $0x3c8] ss:$24 sps:$4 sm:$0xff]   ;;  %v7051_v27 = vld [vmem:[%s9753_s1 + $0x3fc] ss:$24 sps:$4 sm:$0xff]   ;;  %v7912_v28 = vld [vmem:[%s9754_s0 + $0x4c] ss:$12 sps:$4 sm:$0xff]  }
  0x20   :  { %1125 = vmatpush1.bf16.msra.mxu1 %v6958_v31  ;;  %980 = vmatprep.subr.bf16.mxu0 %v6959_v32  ;;  %v7046_v29 = vld [vmem:[%s9753_s1 + $0x3f0] ss:$24 sps:$4 sm:$0xff]   ;;  %v7057_v31 = vld [vmem:[%s9753_s1 + $0x424] ss:$24 sps:$4 sm:$0xff]  }
  0x21   :  { %1126 = vmatprep.subr.bf16.mxu1 %v6961_v33  ;;  %v7049_v30 = vld [vmem:[%s9753_s1 + $0x3f8] ss:$24 sps:$4 sm:$0xff]   ;;  %v7060_v32 = vld [vmem:[%s9753_s1 + $0x42c] ss:$24 sps:$4 sm:$0xff]   ;;  %v7933_v33 = vld [vmem:[%s9754_s0 + $0x48] ss:$12 sps:$4 sm:$0xff]  }
  0x23   :  { %981 = vmatpush1.bf16.msra.mxu0 %v6963_v34  ;;  %v7055_v34 = vld [vmem:[%s9753_s1 + $0x420] ss:$24 sps:$4 sm:$0xff]  }
  0x24   :  { %1127 = vmatpush1.bf16.msra.mxu1 %v6964_v35  ;;  %982 = vmatprep.subr.bf16.mxu0 %v6965_v36  ;;  %v7058_v35 = vld [vmem:[%s9753_s1 + $0x428] ss:$24 sps:$4 sm:$0xff]   ;;  %v7063_v36 = vld [vmem:[%s9753_s1 + $0x454] ss:$24 sps:$4 sm:$0xff]  }
  0x25   :  { %1128 = vmatprep.subr.bf16.mxu1 %v6967_v37  ;;  %v7066_v37 = vld [vmem:[%s9753_s1 + $0x45c] ss:$24 sps:$4 sm:$0xff]  }
  0x27   :  { %983 = vmatpush1.bf16.msra.mxu0 %v6969_v38  ;;  %v7061_v38 = vld [vmem:[%s9753_s1 + $0x450] ss:$24 sps:$4 sm:$0xff]  }
  0x28   :  { %1129 = vmatpush1.bf16.msra.mxu1 %v6970_v39  ;;  %984 = vmatprep.subr.bf16.mxu0 %v6971_v40  ;;  %v7064_v39 = vld [vmem:[%s9753_s1 + $0x458] ss:$24 sps:$4 sm:$0xff]   ;;  %v7070_v40 = vld [vmem:[%s9753_s1 + $0x14] ss:$24 sps:$4 sm:$0xff]  }
  0x29   :  { %1130 = vmatprep.subr.bf16.mxu1 %v6973_v41  ;;  %v7961_v41 = vld [vmem:[%s9755_s2 + $0x4] ss:$24 sps:$4 sm:$0xff]  }
  0x2b   :  { %985 = vmatpush1.bf16.msra.mxu0 %v6975_v42  ;;  %v9759_v42 = vmov 0  }
  0x2c   :  { %1131 = vmatpush1.bf16.msra.mxu1 %v6976_v43  ;;  %986 = vmatprep.subr.bf16.mxu0 %v6977_v44  ;;  %v7968_v43 = vld [vmem:[%s9754_s0 + $0x8] ss:$12 sps:$4 sm:$0xff]  }
  0x2d   :  { %1132 = vmatprep.subr.bf16.mxu1 %v6979_v45  ;;  %v7068_v44 = vld [vmem:[%s9753_s1 + $0x10] ss:$24 sps:$4 sm:$0xff]   ;;  %v7976_v45 = vld [vmem:[%s9755_s2] ss:$24 sps:$4 sm:$0xff]  }
  0x2f   :  { %987 = vmatpush1.bf16.msra.mxu0 %v6981_v46  ;;  %v7076_v46 = vld [vmem:[%s9753_s1 + $0x44] ss:$24 sps:$4 sm:$0xff]  }
  0x30   :  { %1133 = vmatpush1.bf16.msra.mxu1 %v6982_v47  ;;  %988 = vmatprep.subr.bf16.mxu0 %v6983_v49  ;;  %v7985_v47 = vld [vmem:[%s9755_s2 + $0x34] ss:$24 sps:$4 sm:$0xff]   ;;  %v7074_v49 = vld [vmem:[%s9753_s1 + $0x40] ss:$24 sps:$4 sm:$0xff]  }
  0x31   :  { %1134 = vmatprep.subr.bf16.mxu1 %v6985_v50  ;;  %v7996_v50 = vld [vmem:[%s9755_s2 + $0x30] ss:$24 sps:$4 sm:$0xff]  }
  0x33   :  { %989 = vmatpush1.bf16.msra.mxu0 %v6987_v51  ;;  %v7083_v51 = vld [vmem:[%s9753_s1 + $0x74] ss:$24 sps:$4 sm:$0xff]  }
  0x34   :  { %1135 = vmatpush1.bf16.msra.mxu1 %v6988_v52  ;;  %990 = vmatprep.subr.bf16.mxu0 %v6989_v53  ;;  %v8005_v52 = vld [vmem:[%s9755_s2 + $0x64] ss:$24 sps:$4 sm:$0xff]   ;;  %v8012_v53 = vld [vmem:[%s9754_s0 + $0x20] ss:$12 sps:$4 sm:$0xff]  }
  0x35   :  { %1136 = vmatprep.subr.bf16.mxu1 %v6991_v54  ;;  %v7081_v54 = vld [vmem:[%s9753_s1 + $0x70] ss:$24 sps:$4 sm:$0xff]  }
  0x37   :  { %991 = vmatpush1.bf16.msra.mxu0 %v6993_v55  ;;  %v8020_v55 = vld [vmem:[%s9755_s2 + $0x60] ss:$24 sps:$4 sm:$0xff]  }
  0x38   :  { %1137 = vmatpush1.bf16.msra.mxu1 %v6994_v56  ;;  %992 = vmatprep.subr.bf16.mxu0 %v6995_v57  ;;  %v7089_v56 = vld [vmem:[%s9753_s1 + $0xa4] ss:$24 sps:$4 sm:$0xff]   ;;  %v8030_v57 = vld [vmem:[%s9755_s2 + $0x94] ss:$24 sps:$4 sm:$0xff]  }
  0x39   :  { %1138 = vmatprep.subr.bf16.mxu1 %v6997_v58  ;;  %v7087_v58 = vld [vmem:[%s9753_s1 + $0xa0] ss:$24 sps:$4 sm:$0xff]  }
  0x3b   :  { %993 = vmatpush1.bf16.msra.mxu0 %v6999_v59  ;;  %v8041_v59 = vld [vmem:[%s9755_s2 + $0x90] ss:$24 sps:$4 sm:$0xff]  }
  0x3c   :  { %1139 = vmatpush1.bf16.msra.mxu1 %v7000_v60  ;;  %994 = vmatprep.subr.bf16.mxu0 %v7001_v61  ;;  %v8047_v60 = vld [vmem:[%s9754_s0 + $0x38] ss:$12 sps:$4 sm:$0xff]   ;;  %v7096_v61 = vld [vmem:[%s9753_s1 + $0xd4] ss:$24 sps:$4 sm:$0xff]  }
  0x3d   :  { %1140 = vmatprep.subr.bf16.mxu1 %v7003_v62  ;;  %v8055_v62 = vld [vmem:[%s9755_s2 + $0xc4] ss:$24 sps:$4 sm:$0xff]  }
  0x3f   :  { %995 = vmatpush1.bf16.msra.mxu0 %v7005_v63  ;;  %v7094_v63 = vld [vmem:[%s9753_s1 + $0xd0] ss:$24 sps:$4 sm:$0xff]  }
  0x40   :  { %1141 = vmatpush1.bf16.msra.mxu1 %v7006_v0  ;;  %1037 = vmatprep.subr.bf16.mxu0 %v7012_v1  ;;  %v8065_v0 = vld [vmem:[%s9755_s2 + $0xc0] ss:$24 sps:$4 sm:$0xff]   ;;  %v7102_v1 = vld [vmem:[%s9753_s1 + $0x104] ss:$24 sps:$4 sm:$0xff]  }
  0x41   :  { %1183 = vmatprep.subr.bf16.mxu1 %v7015_v2  ;;  %v8075_v2 = vld [vmem:[%s9755_s2 + $0xf4] ss:$24 sps:$4 sm:$0xff]  }
  0x42   :  { %997 = vmatmul.mubr.bf16.vlgmr.msra.gmra.mrb[0].mxu0 %v7819_v3 }
  0x43   :  { %1143 = vmatmul.mubr.bf16.vlgmr.msra.gmra.mrb[0].mxu1 %v7819_v3  ;;  %1038 = vmatpush1.bf16.msra.mxu0 %v7010_v4  ;;  %v7100_v4 = vld [vmem:[%s9753_s1 + $0x100] ss:$24 sps:$4 sm:$0xff]  }
  0x44   :  { %1184 = vmatpush1.bf16.msra.mxu1 %v7013_v5  ;;  %1039 = vmatprep.subr.bf16.mxu0 %v7018_v6  ;;  %v8085_v5 = vld [vmem:[%s9755_s2 + $0xf0] ss:$24 sps:$4 sm:$0xff]   ;;  %v7109_v6 = vld [vmem:[%s9753_s1 + $0x134] ss:$24 sps:$4 sm:$0xff]  }
  0x45   :  { %1185 = vmatprep.subr.bf16.mxu1 %v7021_v7  ;;  %1006 = vmatprep.mubr.bf16.mxu0 %v7836_v8  ;;  %v8095_v7 = vld [vmem:[%s9755_s2 + $0x124] ss:$24 sps:$4 sm:$0xff]  }
  0x46   :  { %1152 = vmatprep.mubr.bf16.mxu1 %v7836_v8 }
  0x47   :  { %1040 = vmatpush1.bf16.msra.mxu0 %v7016_v9  ;;  %v8102_v9 = vld [vmem:[%s9754_s0 + $0x50] ss:$12 sps:$4 sm:$0xff]  }
  0x48   :  { %1186 = vmatpush1.bf16.msra.mxu1 %v7019_v10  ;;  %1041 = vmatprep.subr.bf16.mxu0 %v7027_v11  ;;  %v7107_v10 = vld [vmem:[%s9753_s1 + $0x130] ss:$24 sps:$4 sm:$0xff]   ;;  %v8110_v11 = vld [vmem:[%s9755_s2 + $0x120] ss:$24 sps:$4 sm:$0xff]  }
  0x49   :  { %1187 = vmatprep.subr.bf16.mxu1 %v7030_v12  ;;  %v7115_v12 = vld [vmem:[%s9753_s1 + $0x164] ss:$24 sps:$4 sm:$0xff]  }
  0x4a   :  { %1007 = vmatmul.mubr.bf16.gmra.mrb[4].mxu0 %v7857_v13 }
  0x4b   :  { %1153 = vmatmul.mubr.bf16.gmra.mrb[4].mxu1 %v7857_v13  ;;  %1042 = vmatpush1.bf16.msra.mxu0 %v7025_v14  ;;  %v8120_v14 = vld [vmem:[%s9755_s2 + $0x154] ss:$24 sps:$4 sm:$0xff]  }
  0x4c   :  { %1188 = vmatpush1.bf16.msra.mxu1 %v7028_v15  ;;  %1043 = vmatprep.subr.bf16.mxu0 %v7033_v16  ;;  %v7113_v15 = vld [vmem:[%s9753_s1 + $0x160] ss:$24 sps:$4 sm:$0xff]   ;;  %v8131_v16 = vld [vmem:[%s9755_s2 + $0x150] ss:$24 sps:$4 sm:$0xff]  }
  0x4d   :  { %1189 = vmatprep.subr.bf16.mxu1 %v7036_v17  ;;  %1016 = vmatprep.mubr.bf16.mxu0 %v7874_v18  ;;  %v7121_v17 = vld [vmem:[%s9753_s1 + $0x194] ss:$24 sps:$4 sm:$0xff]  }
  0x4e   :  { %1162 = vmatprep.mubr.bf16.mxu1 %v7874_v18 }
  0x4f   :  { %1044 = vmatpush1.bf16.msra.mxu0 %v7031_v19  ;;  %v7119_v19 = vld [vmem:[%s9753_s1 + $0x190] ss:$24 sps:$4 sm:$0xff]  }
  0x50   :  { %1190 = vmatpush1.bf16.msra.mxu1 %v7034_v20  ;;  %1045 = vmatprep.subr.bf16.mxu0 %v7042_v21  ;;  %v7122_v20 = vld [vmem:[%s9755_s2 + $0x8] ss:$24 sps:$4 sm:$0xff]   ;;  %v9761_v21 = vmov 0.0  }
  0x51   :  { %1191 = vmatprep.subr.bf16.mxu1 %v7045_v22  ;;  %v7125_v22 = vld [vmem:[%s9753_s1 + $0x1c4] ss:$24 sps:$4 sm:$0xff]  }
  0x52   :  { %1017 = vmatmul.mubr.bf16.gmra.mrb[8].mxu0 %v7895_v23 }
  0x53   :  { %1163 = vmatmul.mubr.bf16.gmra.mrb[8].mxu1 %v7895_v23  ;;  %1046 = vmatpush1.bf16.msra.mxu0 %v7040_v24  ;;  %v7126_v24 = vld [vmem:[%s9755_s2 + $0x38] ss:$24 sps:$4 sm:$0xff]  }
  0x54   :  { %1192 = vmatpush1.bf16.msra.mxu1 %v7043_v25  ;;  %1047 = vmatprep.subr.bf16.mxu0 %v7048_v26  ;;  %v7129_v25 = vld [vmem:[%s9753_s1 + $0x1f4] ss:$24 sps:$4 sm:$0xff]   ;;  %v7127_v26 = vld [vmem:[%s9753_s1 + $0x1f0] ss:$24 sps:$4 sm:$0xff]  }
  0x55   :  { %1193 = vmatprep.subr.bf16.mxu1 %v7051_v27  ;;  %1026 = vmatprep.mubr.bf16.mxu0 %v7912_v28  ;;  %v7130_v27 = vld [vmem:[%s9755_s2 + $0x68] ss:$24 sps:$4 sm:$0xff]  }
  0x56   :  { %1172 = vmatprep.mubr.bf16.mxu1 %v7912_v28 }
  0x57   :  { %1048 = vmatpush1.bf16.msra.mxu0 %v7046_v29  ;;  %v7133_v29 = vld [vmem:[%s9753_s1 + $0x224] ss:$24 sps:$4 sm:$0xff]  }
  0x58   :  { %1194 = vmatpush1.bf16.msra.mxu1 %v7049_v30  ;;  %1049 = vmatprep.subr.bf16.mxu0 %v7057_v31  ;;  %v7131_v30 = vld [vmem:[%s9753_s1 + $0x220] ss:$24 sps:$4 sm:$0xff]  }
  0x59   :  { %1195 = vmatprep.subr.bf16.mxu1 %v7060_v32  ;;  %v7134_v31 = vld [vmem:[%s9755_s2 + $0x98] ss:$24 sps:$4 sm:$0xff]   ;;  %v7137_v32 = vld [vmem:[%s9753_s1 + $0x254] ss:$24 sps:$4 sm:$0xff]  }
  0x5a   :  { %1027 = vmatmul.mubr.bf16.gmra.mrb[12].mxu0 %v7933_v33 }
  0x5b   :  { %1173 = vmatmul.mubr.bf16.gmra.mrb[12].mxu1 %v7933_v33  ;;  %1050 = vmatpush1.bf16.msra.mxu0 %v7055_v34  ;;  %v7135_v34 = vld [vmem:[%s9753_s1 + $0x250] ss:$24 sps:$4 sm:$0xff]  }
  0x5c   :  { %1196 = vmatpush1.bf16.msra.mxu1 %v7058_v35  ;;  %1051 = vmatprep.subr.bf16.mxu0 %v7063_v36  ;;  %v7138_v35 = vld [vmem:[%s9755_s2 + $0xc8] ss:$24 sps:$4 sm:$0xff]   ;;  %v7141_v36 = vld [vmem:[%s9753_s1 + $0x284] ss:$24 sps:$4 sm:$0xff]  }
  0x5d   :  { %1197 = vmatprep.subr.bf16.mxu1 %v7066_v37  ;;  %1069 = vmatprep.mubr.bf16.mxu0 %v9759_v42  ;;  %v7139_v37 = vld [vmem:[%s9753_s1 + $0x280] ss:$24 sps:$4 sm:$0xff]  }
  0x5e   :  { %1215 = vmatprep.mubr.bf16.mxu1 %v9759_v42 }
  0x5f   :  { %1052 = vmatpush1.bf16.msra.mxu0 %v7061_v38  ;;  %v7142_v38 = vld [vmem:[%s9755_s2 + $0xf8] ss:$24 sps:$4 sm:$0xff]  }
  0x60   :  { %1198 = vmatpush1.bf16.msra.mxu1 %v7064_v39  ;;  %1256 = vmatprep.subr.bf16.mxu0 %v7070_v40  ;;  %v7145_v39 = vld [vmem:[%s9753_s1 + $0x2b4] ss:$24 sps:$4 sm:$0xff]   ;;  %v7143_v40 = vld [vmem:[%s9753_s1 + $0x2b0] ss:$24 sps:$4 sm:$0xff]  }
  0x61   :  { %1636 = vmatprep.subr.bf16.mxu1 %v7961_v41 }
  0x62   :  { %1070 = vmatmul.mubr.bf16.vlgmr.msra.gmra.mrb[0].mxu0 %v7968_v43 }
  0x63   :  { %1216 = vmatmul.mubr.bf16.vlgmr.msra.gmra.mrb[0].mxu1 %v7968_v43  ;;  %1257 = vmatpush1.bf16.msra.mxu0 %v7068_v44  ;;  %v7146_v44 = vld [vmem:[%s9755_s2 + $0x128] ss:$24 sps:$4 sm:$0xff]  }
  0x64   :  { %1637 = vmatpush1.bf16.msra.mxu1 %v7976_v45  ;;  %1258 = vmatprep.subr.bf16.mxu0 %v7076_v46  ;;  %v7149_v46 = vld [vmem:[%s9753_s1 + $0x2e4] ss:$24 sps:$4 sm:$0xff]  }
  0x65   :  { %1638 = vmatprep.subr.bf16.mxu1 %v7985_v47  ;;  %1079 = vmatprep.mubr.bf16.mxu0 %v9759_v42 }
  0x66   :  { %1225 = vmatprep.mubr.bf16.mxu1 %v9759_v42 }
  0x67   :  { %1259 = vmatpush1.bf16.msra.mxu0 %v7074_v49  ;;  %v7147_v49 = vld [vmem:[%s9753_s1 + $0x2e0] ss:$24 sps:$4 sm:$0xff]  }
  0x68   :  { %1639 = vmatpush1.bf16.msra.mxu1 %v7996_v50  ;;  %1260 = vmatprep.subr.bf16.mxu0 %v7083_v51  ;;  %v7150_v51 = vld [vmem:[%s9755_s2 + $0x158] ss:$24 sps:$4 sm:$0xff]  }
  0x69   :  { %1640 = vmatprep.subr.bf16.mxu1 %v8005_v52 }
  0x6a   :  { %1080 = vmatmul.mubr.bf16.gmra.mrb[4].mxu0 %v8012_v53 }
  0x6b   :  { %1226 = vmatmul.mubr.bf16.gmra.mrb[4].mxu1 %v8012_v53  ;;  %1261 = vmatpush1.bf16.msra.mxu0 %v7081_v54  ;;  %v7153_v54 = vld [vmem:[%s9753_s1 + $0x314] ss:$24 sps:$4 sm:$0xff]  }
  0x6c   :  { %1641 = vmatpush1.bf16.msra.mxu1 %v8020_v55  ;;  %1262 = vmatprep.subr.bf16.mxu0 %v7089_v56  ;;  %v8225_v56 = vld [vmem:[%s9755_s2 + $0x190] ss:$24 sps:$4 sm:$0xff]  }
  0x6d   :  { %1642 = vmatprep.subr.bf16.mxu1 %v8030_v57  ;;  %1089 = vmatprep.mubr.bf16.mxu0 %v9759_v42 }
  0x6e   :  { %1235 = vmatprep.mubr.bf16.mxu1 %v9759_v42 }
  0x6f   :  { %1263 = vmatpush1.bf16.msra.mxu0 %v7087_v58  ;;  %v7151_v58 = vld [vmem:[%s9753_s1 + $0x310] ss:$24 sps:$4 sm:$0xff]  }
  0x70   :  { %1643 = vmatpush1.bf16.msra.mxu1 %v8041_v59  ;;  %1264 = vmatprep.subr.bf16.mxu0 %v7096_v61  ;;  %v8234_v61 = vld [vmem:[%s9755_s2 + $0x18c] ss:$24 sps:$4 sm:$0xff]  }
  0x71   :  { %1644 = vmatprep.subr.bf16.mxu1 %v8055_v62 }
  0x72   :  { %1090 = vmatmul.mubr.bf16.gmra.mrb[8].mxu0 %v8047_v60 }
  0x73   :  { %1236 = vmatmul.mubr.bf16.gmra.mrb[8].mxu1 %v8047_v60  ;;  %1265 = vmatpush1.bf16.msra.mxu0 %v7094_v63  ;;  %v7159_v63 = vld [vmem:[%s9753_s1 + $0x344] ss:$24 sps:$4 sm:$0xff]  }
  0x74   :  { %1645 = vmatpush1.bf16.msra.mxu1 %v8065_v0  ;;  %1266 = vmatprep.subr.bf16.mxu0 %v7102_v1  ;;  %v8242_v1 = vld [vmem:[%s9755_s2 + $0x1c0] ss:$24 sps:$4 sm:$0xff]  }
  0x75   :  { %1646 = vmatprep.subr.bf16.mxu1 %v8075_v2  ;;  %1099 = vmatprep.mubr.bf16.mxu0 %v9759_v42 }
  0x76   :  { %1245 = vmatprep.mubr.bf16.mxu1 %v9759_v42 }
  0x77   :  { %1267 = vmatpush1.bf16.msra.mxu0 %v7100_v4  ;;  %v7157_v4 = vld [vmem:[%s9753_s1 + $0x340] ss:$24 sps:$4 sm:$0xff]  }
  0x78   :  { %1647 = vmatpush1.bf16.msra.mxu1 %v8085_v5  ;;  %1268 = vmatprep.subr.bf16.mxu0 %v7109_v6  ;;  %v8251_v6 = vld [vmem:[%s9755_s2 + $0x1bc] ss:$24 sps:$4 sm:$0xff]  }
  0x79   :  { %1648 = vmatprep.subr.bf16.mxu1 %v8095_v7 }
  0x7a   :  { %1100 = vmatmul.mubr.bf16.gmra.mrb[12].mxu0 %v8102_v9 }
  0x7b   :  { %1246 = vmatmul.mubr.bf16.gmra.mrb[12].mxu1 %v8102_v9  ;;  %1269 = vmatpush1.bf16.msra.mxu0 %v7107_v10  ;;  %v7165_v10 = vld [vmem:[%s9753_s1 + $0x374] ss:$24 sps:$4 sm:$0xff]  }
  0x7c   :  { %1649 = vmatpush1.bf16.msra.mxu1 %v8110_v11  ;;  %1270 = vmatprep.subr.bf16.mxu0 %v7115_v12  ;;  %v8261_v12 = vld [vmem:[%s9755_s2 + $0x1f0] ss:$24 sps:$4 sm:$0xff]  }
  0x7d   :  { %1650 = vmatprep.subr.bf16.mxu1 %v8120_v14  ;;  %1668 = vmatprep.mubr.bf16.mxu1 %v9759_v42 }
  0x7e   :  { %1288 = vmatprep.mubr.bf16.mxu0 %v7758_v48  ;;  %v7123_v48 = vld [vmem:[%s9753_s1 + $0x1c0] ss:$24 sps:$4 sm:$0xff]  }
  0x7f   :  { %1271 = vmatpush1.bf16.msra.mxu0 %v7113_v15  ;;  %v8272_v15 = vld [vmem:[%s9755_s2 + $0x1ec] ss:$24 sps:$4 sm:$0xff]  }
  0x80   :  { %1651 = vmatpush1.bf16.msra.mxu1 %v8131_v16  ;;  %1272 = vmatprep.subr.bf16.mxu0 %v7121_v17  ;;  %v7171_v17 = vld [vmem:[%s9753_s1 + $0x3a4] ss:$24 sps:$4 sm:$0xff]  }
  0x81   :  { %6540 = vmatprep.subr.bf16.mxu1 %v9761_v21 }
  0x83   :  { %1669 = vmatmul.mubr.bf16.vlgmr.msra.gmra.mrb[16].mxu1 %v9759_v42  ;;  %1273 = vmatpush1.bf16.msra.mxu0 %v7119_v19  ;;  %v8281_v19 = vld [vmem:[%s9755_s2 + $0x220] ss:$24 sps:$4 sm:$0xff]  }
  0x84   :  { %6541 = vmatpush3.bf16.msra.mxu1 %v7122_v20  ;;  %1274 = vmatprep.subr.bf16.mxu0 %v7125_v22  ;;  %v8291_v20 = vld [vmem:[%s9755_s2 + $0x21c] ss:$24 sps:$4 sm:$0xff]  }
  0x85   :  { %6542 = vmatprep.subr.bf16.mxu1 %v9761_v21  ;;  %6556 = vmatprep.mubr.msk.bf16.mxu1 %vm7580_vm0, %v9761_v21  ;;  %v7177_v22 = vld [vmem:[%s9753_s1 + $0x3d4] ss:$24 sps:$4 sm:$0xff]  }
  0x87   :  { %1275 = vmatpush1.bf16.msra.mxu0 %v7123_v48  ;;  %v8300_v48 = vld [vmem:[%s9755_s2 + $0x250] ss:$24 sps:$4 sm:$0xff]  }
  0x88   :  { %6543 = vmatpush3.bf16.msra.mxu1 %v7126_v24  ;;  %1276 = vmatprep.subr.bf16.mxu0 %v7129_v25  ;;  %v8311_v24 = vld [vmem:[%s9755_s2 + $0x24c] ss:$24 sps:$4 sm:$0xff]  }
  0x89   :  { %6544 = vmatprep.subr.bf16.mxu1 %v9761_v21  ;;  %v7183_v25 = vld [vmem:[%s9753_s1 + $0x404] ss:$24 sps:$4 sm:$0xff]  }
  0x8b   :  { %1277 = vmatpush1.bf16.msra.mxu0 %v7127_v26  ;;  %v8319_v26 = vld [vmem:[%s9755_s2 + $0x280] ss:$24 sps:$4 sm:$0xff]  }
  0x8c   :  { %6545 = vmatpush3.bf16.msra.mxu1 %v7130_v27  ;;  %1278 = vmatprep.subr.bf16.mxu0 %v7133_v29  ;;  %v8329_v27 = vld [vmem:[%s9755_s2 + $0x27c] ss:$24 sps:$4 sm:$0xff]  }
  0x8d   :  { %6546 = vmatprep.subr.bf16.mxu1 %v9761_v21  ;;  %v7189_v29 = vld [vmem:[%s9753_s1 + $0x434] ss:$24 sps:$4 sm:$0xff]  }
  0x8f   :  { %1279 = vmatpush1.bf16.msra.mxu0 %v7131_v30  ;;  %v8338_v30 = vld [vmem:[%s9755_s2 + $0x2b0] ss:$24 sps:$4 sm:$0xff]  }
  0x90   :  { %6547 = vmatpush3.bf16.msra.mxu1 %v7134_v31  ;;  %1280 = vmatprep.subr.bf16.mxu0 %v7137_v32  ;;  %v8349_v31 = vld [vmem:[%s9755_s2 + $0x2ac] ss:$24 sps:$4 sm:$0xff]  }
  0x91   :  { %6548 = vmatprep.subr.bf16.mxu1 %v9761_v21  ;;  %v7195_v32 = vld [vmem:[%s9753_s1 + $0x464] ss:$24 sps:$4 sm:$0xff]  }
  0x93   :  { %1281 = vmatpush1.bf16.msra.mxu0 %v7135_v34  ;;  %v8357_v34 = vld [vmem:[%s9755_s2 + $0x2e0] ss:$24 sps:$4 sm:$0xff]  }
  0x94   :  { %6549 = vmatpush3.bf16.msra.mxu1 %v7138_v35  ;;  %1282 = vmatprep.subr.bf16.mxu0 %v7141_v36  ;;  %v8367_v35 = vld [vmem:[%s9755_s2 + $0x2dc] ss:$24 sps:$4 sm:$0xff]  }
  0x95   :  { %6550 = vmatprep.subr.bf16.mxu1 %v9761_v21  ;;  %v7199_v36 = vld [vmem:[%s9755_s2 + $0x194] ss:$24 sps:$4 sm:$0xff]  }
  0x97   :  { %1283 = vmatpush1.bf16.msra.mxu0 %v7139_v37  ;;  %v7201_v37 = vld [vmem:[%s9755_s2 + $0x1f4] ss:$24 sps:$4 sm:$0xff]  }
  0x98   :  { %6551 = vmatpush3.bf16.msra.mxu1 %v7142_v38  ;;  %1284 = vmatprep.subr.bf16.mxu0 %v7145_v39 }
  0x99   :  { %6552 = vmatprep.subr.bf16.mxu1 %v9761_v21 }
  0x9b   :  { %1285 = vmatpush1.bf16.msra.mxu0 %v7143_v40 }
  0x9c   :  { %6553 = vmatpush3.bf16.msra.mxu1 %v7146_v44  ;;  %1286 = vmatprep.subr.bf16.mxu0 %v7149_v46 }
  0x9d   :  { %6554 = vmatprep.subr.bf16.mxu1 %v9761_v21 }
  0x9f   :  { %1287 = vmatpush1.bf16.msra.mxu0 %v7147_v49 }
  0xa0   :  { %6555 = vmatpush3.bf16.msra.mxu1 %v7150_v51  ;;  %1329 = vmatprep.subr.bf16.mxu0 %v7153_v54 }
  0xa1   :  { %1877 = vmatprep.subr.bf16.mxu1 %v8225_v56 }
  0xa2   :  { %1289 = vmatmul.mubr.bf16.vlgmr.msra.gmra.mrb[16].mxu0 %v7819_v3  ;;  %v7163_v3 = vld [vmem:[%s9753_s1 + $0x370] ss:$24 sps:$4 sm:$0xff]  }
  0xa3   :  { %6557 = vmatmul.mubr.bf16.vlgmr.msra.gmra.mrb[20].mxu1 %v9759_v42  ;;  %1330 = vmatpush1.bf16.msra.mxu0 %v7151_v58 }
  0xa4   :  { %1878 = vmatpush1.bf16.msra.mxu1 %v8234_v61  ;;  %1331 = vmatprep.subr.bf16.mxu0 %v7159_v63 }
  0xa5   :  { %1879 = vmatprep.subr.bf16.mxu1 %v8242_v1  ;;  %1298 = vmatprep.mubr.bf16.mxu0 %v7836_v8  ;;  %v7169_v8 = vld [vmem:[%s9753_s1 + $0x3a0] ss:$24 sps:$4 sm:$0xff]  }
  0xa6   :  { %1909 = vmatprep.mubr.bf16.mxu1 %v9759_v42 }
  0xa7   :  { %1332 = vmatpush1.bf16.msra.mxu0 %v7157_v4 }
  0xa8   :  { %1880 = vmatpush1.bf16.msra.mxu1 %v8251_v6  ;;  %1333 = vmatprep.subr.bf16.mxu0 %v7165_v10 }
  0xa9   :  { %1881 = vmatprep.subr.bf16.mxu1 %v8261_v12 }
  0xaa   :  { %1299 = vmatmul.mubr.bf16.gmra.mrb[20].mxu0 %v7857_v13  ;;  %v7175_v13 = vld [vmem:[%s9753_s1 + $0x3d0] ss:$24 sps:$4 sm:$0xff]  }
  0xab   :  { %1334 = vmatpush1.bf16.msra.mxu0 %v7163_v3  ;;  %1308 = vmatprep.mubr.bf16.mxu0 %v7874_v18  ;;  %v7181_v18 = vld [vmem:[%s9753_s1 + $0x400] ss:$24 sps:$4 sm:$0xff]  }
  0xac   :  { %1882 = vmatpush1.bf16.msra.mxu1 %v8272_v15  ;;  %1335 = vmatprep.subr.bf16.mxu0 %v7171_v17 }
  0xad   :  { %1883 = vmatprep.subr.bf16.mxu1 %v8281_v19 }
  0xaf   :  { %1336 = vmatpush1.bf16.msra.mxu0 %v7169_v8 }
  0xb0   :  { %1884 = vmatpush1.bf16.msra.mxu1 %v8291_v20  ;;  %1337 = vmatprep.subr.bf16.mxu0 %v7177_v22 }
  0xb1   :  { %1885 = vmatprep.subr.bf16.mxu1 %v8300_v48 }
  0xb2   :  { %1309 = vmatmul.mubr.bf16.gmra.mrb[24].mxu0 %v7895_v23  ;;  %v7187_v23 = vld [vmem:[%s9753_s1 + $0x430] ss:$24 sps:$4 sm:$0xff]  }
  0xb3   :  { %1338 = vmatpush1.bf16.msra.mxu0 %v7175_v13  ;;  %1318 = vmatprep.mubr.bf16.mxu0 %v7912_v28  ;;  %v7193_v28 = vld [vmem:[%s9753_s1 + $0x460] ss:$24 sps:$4 sm:$0xff]  }
  0xb4   :  { %1886 = vmatpush1.bf16.msra.mxu1 %v8311_v24  ;;  %1339 = vmatprep.subr.bf16.mxu0 %v7183_v25 }
  0xb5   :  { %1887 = vmatprep.subr.bf16.mxu1 %v8319_v26 }
  0xb7   :  { %1340 = vmatpush1.bf16.msra.mxu0 %v7181_v18 }
  0xb8   :  { %1888 = vmatpush1.bf16.msra.mxu1 %v8329_v27  ;;  %1341 = vmatprep.subr.bf16.mxu0 %v7189_v29 }
  0xb9   :  { %1889 = vmatprep.subr.bf16.mxu1 %v8338_v30 }
  0xba   :  { %1319 = vmatmul.mubr.bf16.gmra.mrb[28].mxu0 %v7933_v33  ;;  %v7200_v33 = vld [vmem:[%s9755_s2 + $0x1c4] ss:$24 sps:$4 sm:$0xff]  }
  0xbb   :  { %1342 = vmatpush1.bf16.msra.mxu0 %v7187_v23  ;;  %1361 = vmatprep.mubr.bf16.mxu0 %v9759_v42 }
  0xbc   :  { %1890 = vmatpush1.bf16.msra.mxu1 %v8349_v31  ;;  %1343 = vmatprep.subr.bf16.mxu0 %v7195_v32 }
  0xbd   :  { %1891 = vmatprep.subr.bf16.mxu1 %v8357_v34 }
  0xbf   :  { %1344 = vmatpush1.bf16.msra.mxu0 %v7193_v28 }
  0xc0   :  { %1892 = vmatpush1.bf16.msra.mxu1 %v8367_v35  ;;  %6560 = vmatprep.subr.bf16.mxu0 %v9761_v21 }
  0xc1   :  { %2181 = vmatprep.subr.bf16.mxu1 %v7961_v41  ;;  %v7202_v41 = vld [vmem:[%s9755_s2 + $0x224] ss:$24 sps:$4 sm:$0xff]  }
  0xc2   :  { %1362 = vmatmul.mubr.bf16.vlgmr.msra.gmra.mrb[16].mxu0 %v7968_v43  ;;  %v7203_v43 = vld [vmem:[%s9755_s2 + $0x254] ss:$24 sps:$4 sm:$0xff]  }
  0xc3   :  { %1910 = vmatmul.mubr.bf16.vlgmr.msra.gmra.mrb[24].mxu1 %v9759_v42  ;;  %6561 = vmatpush3.bf16.msra.mxu0 %v7199_v36 }
  0xc4   :  { %1371 = vmatprep.mubr.bf16.mxu0 %v9759_v42  ;;  %6562 = vmatprep.subr.bf16.mxu0 %v9761_v21 }
  0xc5   :  { %2182 = vmatpush1.bf16.msra.mxu1 %v7976_v45  ;;  %2213 = vmatprep.mubr.bf16.mxu1 %v9759_v42  ;;  %v7204_v45 = vld [vmem:[%s9755_s2 + $0x284] ss:$24 sps:$4 sm:$0xff]  }
  0xc6   :  { %2183 = vmatprep.subr.bf16.mxu1 %v7985_v47  ;;  %v7205_v47 = vld [vmem:[%s9755_s2 + $0x2b4] ss:$24 sps:$4 sm:$0xff]  }
  0xc7   :  { %6563 = vmatpush3.bf16.msra.mxu0 %v7200_v33 }
  0xc8   :  { %6564 = vmatprep.subr.bf16.mxu0 %v9761_v21 }
  0xc9   :  { %2184 = vmatpush1.bf16.msra.mxu1 %v7996_v50  ;;  %v7206_v50 = vld [vmem:[%s9755_s2 + $0x2e4] ss:$24 sps:$4 sm:$0xff]  }
  0xca   :  { %2185 = vmatprep.subr.bf16.mxu1 %v8005_v52  ;;  %1372 = vmatmul.mubr.bf16.gmra.mrb[20].mxu0 %v8012_v53  ;;  %v7207_v52 = vld [vmem:[%s9755_s2 + $0x8] ss:$24 sps:$4 sm:$0xff]   ;;  %v7208_v53 = vld [vmem:[%s9755_s2 + $0x38] ss:$24 sps:$4 sm:$0xff]  }
  0xcb   :  { %6565 = vmatpush3.bf16.msra.mxu0 %v7201_v37  ;;  %1381 = vmatprep.mubr.bf16.mxu0 %v9759_v42 }
  0xcc   :  { %6566 = vmatprep.subr.bf16.mxu0 %v9761_v21 }
  0xcd   :  { %2186 = vmatpush1.bf16.msra.mxu1 %v8020_v55  ;;  %v7209_v55 = vld [vmem:[%s9755_s2 + $0x68] ss:$24 sps:$4 sm:$0xff]  }
  0xce   :  { %2187 = vmatprep.subr.bf16.mxu1 %v8030_v57  ;;  %v7210_v57 = vld [vmem:[%s9755_s2 + $0x98] ss:$24 sps:$4 sm:$0xff]  }
  0xcf   :  { %6567 = vmatpush3.bf16.msra.mxu0 %v7202_v41 }
  0xd0   :  { %6568 = vmatprep.subr.bf16.mxu0 %v9761_v21 }
  0xd1   :  { %2188 = vmatpush1.bf16.msra.mxu1 %v8041_v59  ;;  %v7211_v59 = vld [vmem:[%s9755_s2 + $0xc8] ss:$24 sps:$4 sm:$0xff]  }
  0xd2   :  { %2189 = vmatprep.subr.bf16.mxu1 %v8055_v62  ;;  %1382 = vmatmul.mubr.bf16.gmra.mrb[24].mxu0 %v8047_v60  ;;  %v7212_v60 = vld [vmem:[%s9755_s2 + $0xf8] ss:$24 sps:$4 sm:$0xff]   ;;  %v7213_v62 = vld [vmem:[%s9755_s2 + $0x128] ss:$24 sps:$4 sm:$0xff]  }
  0xd3   :  { %6569 = vmatpush3.bf16.msra.mxu0 %v7203_v43  ;;  %1391 = vmatprep.mubr.bf16.mxu0 %v9759_v42 }
  0xd4   :  { %6570 = vmatprep.subr.bf16.mxu0 %v9761_v21 }
  0xd5   :  { %2190 = vmatpush1.bf16.msra.mxu1 %v8065_v0  ;;  %v7214_v0 = vld [vmem:[%s9755_s2 + $0x158] ss:$24 sps:$4 sm:$0xff]  }
  0xd6   :  { %2191 = vmatprep.subr.bf16.mxu1 %v8075_v2 }
  0xd7   :  { %6571 = vmatpush3.bf16.msra.mxu0 %v7204_v45 }
  0xd8   :  { %6572 = vmatprep.subr.bf16.mxu0 %v9761_v21 }
  0xd9   :  { %2192 = vmatpush1.bf16.msra.mxu1 %v8085_v5 }
  0xda   :  { %2193 = vmatprep.subr.bf16.mxu1 %v8095_v7  ;;  %1392 = vmatmul.mubr.bf16.gmra.mrb[28].mxu0 %v8102_v9 }
  0xdb   :  { %6573 = vmatpush3.bf16.msra.mxu0 %v7205_v47  ;;  %6576 = vmatprep.mubr.msk.bf16.mxu0 %vm7580_vm0, %v9761_v21 }
  0xdc   :  { %6574 = vmatprep.subr.bf16.mxu0 %v9761_v21 }
  0xdd   :  { %2194 = vmatpush1.bf16.msra.mxu1 %v8110_v11 }
  0xde   :  { %2195 = vmatprep.subr.bf16.mxu1 %v8120_v14 }
  0xdf   :  { %6575 = vmatpush3.bf16.msra.mxu0 %v7206_v50 }
  0xe0   :  { %6580 = vmatprep.subr.bf16.mxu0 %v9761_v21 }
  0xe1   :  { %2196 = vmatpush1.bf16.msra.mxu1 %v8131_v16 }
  0xe2   :  { %2423 = vmatprep.subr.bf16.mxu1 %v8225_v56  ;;  %6577 = vmatmul.mubr.bf16.vlgmr.msra.gmra.mrb[32].mxu0 %v9759_v42 }
  0xe3   :  { %6596 = vmatprep.mubr.msk.bf16.mxu0 %vm7580_vm0, %v9761_v21  ;;  %6581 = vmatpush3.bf16.msra.mxu0 %v7207_v52 }
  0xe4   :  { %6582 = vmatprep.subr.bf16.mxu0 %v9761_v21 }
  0xe7   :  { %6583 = vmatpush3.bf16.msra.mxu0 %v7208_v53 }
  0xe8   :  { %6584 = vmatprep.subr.bf16.mxu0 %v9761_v21 }
  0xeb   :  { %6585 = vmatpush3.bf16.msra.mxu0 %v7209_v55 }
  0xec   :  { %6586 = vmatprep.subr.bf16.mxu0 %v9761_v21 }
  0xef   :  { %6587 = vmatpush3.bf16.msra.mxu0 %v7210_v57  ;;  %v8529_v57 = vld [vmem:[%s9756_s3] ss:$0 sm:$0xff] }
  0xf0   :  { %6588 = vmatprep.subr.bf16.mxu0 %v9761_v21 }
  0xf3   :  { %6589 = vmatpush3.bf16.msra.mxu0 %v7211_v59 }
  0xf4   :  { %6590 = vmatprep.subr.bf16.mxu0 %v9761_v21 }
  0xf7   :  { %6591 = vmatpush3.bf16.msra.mxu0 %v7212_v60 }
  0xf8   :  { %6592 = vmatprep.subr.bf16.mxu0 %v9761_v21 }
  0xfb   :  { %6593 = vmatpush3.bf16.msra.mxu0 %v7213_v62 }
  0xfc   :  { %6594 = vmatprep.subr.bf16.mxu0 %v9761_v21 }
  0xff   :  { %6595 = vmatpush3.bf16.msra.mxu0 %v7214_v0 }
 0x100   :  { %6600 = vmatprep.subr.bf16.mxu0 %v9761_v21 }
 0x135   :  { %v1071_v2 = vpop.f32.mrb[0].mxu0 }
 0x136   :  { %v1217_v5 = vpop.f32.mrb[0].mxu1  ;;  %v1073_v7 = vpop.f32.mrb[1].mxu0 }
 0x137   :  { %v8470_v9 = vpop.f32.mrb[1].mxu1  ;;  %v8472_v11 = vpop.f32.mrb[2].mxu0 }
 0x138   :  { %9763 = vst [vmem:[#allocation3_spill] sm:$0xff] %v8470_v9  ;;  %v8474_v14 = vpop.f32.mrb[2].mxu1  ;;  %v8476_v16 = vpop.f32.mrb[3].mxu0 }
 0x139   :  { %v8478_v38 = vpop.f32.mrb[3].mxu1 }
 0x13a   :  { %9764 = vst [vmem:[#allocation4_spill] sm:$0xff] %v8478_v38 }
 0x13d   :  { %v8480_v39 = vpop.f32.mrb[4].mxu0 }
 0x13e   :  { %v8482_v40 = vpop.f32.mrb[4].mxu1  ;;  %v8484_v44 = vpop.f32.mrb[5].mxu0 }
 0x13f   :  { %v8486_v46 = vpop.f32.mrb[5].mxu1  ;;  %v8488_v49 = vpop.f32.mrb[6].mxu0 }
 0x140   :  { %9765 = vst [vmem:[#allocation5_spill] sm:$0xff] %v8486_v46  ;;  %v8490_v51 = vpop.f32.mrb[6].mxu1  ;;  %v8492_v54 = vpop.f32.mrb[7].mxu0 }
 0x141   :  { %v8494_v56 = vpop.f32.mrb[7].mxu1 }
 0x142   :  { %9766 = vst [vmem:[#allocation6_spill] sm:$0xff] %v8494_v56 }
 0x145   :  { %v8496_v58 = vpop.f32.mrb[8].mxu0 }
 0x146   :  { %9767 = vst [vmem:[#allocation7_spill] sm:$0xff] %v8496_v58  ;;  %v8498_v63 = vpop.f32.mrb[8].mxu1  ;;  %v8500_v4 = vpop.f32.mrb[9].mxu0 }
 0x147   :  { %9768 = vst [vmem:[#allocation8_spill] sm:$0xff] %v8498_v63  ;;  %9769 = vst [vmem:[#allocation9_spill] sm:$0xff] %v8500_v4  ;;  %v8502_v10 = vpop.f32.mrb[9].mxu1  ;;  %v8504_v3 = vpop.f32.mrb[10].mxu0 }
 0x148   :  { %9770 = vst [vmem:[#allocation10_spill] sm:$0xff] %v8502_v10  ;;  %9771 = vst [vmem:[#allocation11_spill] sm:$0xff] %v8504_v3  ;;  %v8506_v17 = vpop.f32.mrb[10].mxu1  ;;  %v8508_v8 = vpop.f32.mrb[11].mxu0  ;;  %v8868_v3 = vld [vmem:[%s9755_s2 + $0x27c] ss:$24 sps:$4 sm:$0xff]  }
 0x149   :  { %9772 = vst [vmem:[#allocation12_spill] sm:$0xff] %v8506_v17  ;;  %9773 = vst [vmem:[#allocation13_spill] sm:$0xff] %v8508_v8  ;;  %v8510_v22 = vpop.f32.mrb[11].mxu1 }
 0x14d   :  { %v8512_v13 = vpop.f32.mrb[12].mxu0 }
 0x14e   :  { %9774 = vst [vmem:[#allocation14_spill] sm:$0xff] %v8512_v13  ;;  %v8514_v25 = vpop.f32.mrb[12].mxu1  ;;  %v8516_v18 = vpop.f32.mrb[13].mxu0 }
 0x14f   :  { %9775 = vst [vmem:[#allocation15_spill] sm:$0xff] %v8514_v25  ;;  %9776 = vst [vmem:[#allocation16_spill] sm:$0xff] %v8516_v18  ;;  %v8518_v29 = vpop.f32.mrb[13].mxu1  ;;  %v8520_v23 = vpop.f32.mrb[14].mxu0 }
 0x150   :  { %9777 = vst [vmem:[#allocation17_spill] sm:$0xff] %v8520_v23  ;;  %v8522_v32 = vpop.f32.mrb[14].mxu1  ;;  %v8524_v28 = vpop.f32.mrb[15].mxu0 }
 0x151   :  { %9778 = vst [vmem:[#allocation18_spill] sm:$0xff] %v8522_v32  ;;  %9779 = vst [vmem:[#allocation19_spill] sm:$0xff] %v8524_v28  ;;  %v1253_v36 = vpop.f32.mrb[15].mxu1 }
 0x156   :  { %v1670_v33 = vpop.f32.mrb[16].mxu1 }
 0x157   :  { %v1958_v37 = vadd.f32 %v1670_v33, %v1071_v2  ;;  %v1672_v41 = vpop.f32.mrb[17].mxu1 }
 0x158   :  { %v1965_v43 = vadd.f32 %v1672_v41, %v1073_v7  ;;  %v1674_v45 = vpop.f32.mrb[18].mxu1 }
 0x159   :  { %v6013_v47 = vmul.f32 -1.442695, %v1958_v37  ;;  %v1675_v50 = vpop.f32.mrb[19].mxu1 }
 0x15a   :  { %v6014_v53 = vmul.f32 -1.442695, %v1965_v43 }
 0x15b   :  { %7415 = vpow2.f32 %v6013_v47 }
 0x15c   :  { %7417 = vpow2.f32 %v6014_v53 }
 0x165   :  { %v7416_v52 = vpop.eup %7415 }
 0x166   :  { %v1962_v55 = vadd.f32 1.0, %v7416_v52  ;;  %v7418_v60 = vpop.eup %7417 }
 0x167   :  { %v1969_v41 = vadd.f32 1.0, %v7418_v60 }
 0x168   :  { %7419 = vrcp.f32 %v1962_v55  ;;  %v7215_v55 = vld [vmem:[%s9755_s2 + $0x194] ss:$24 sps:$4 sm:$0xff]  }
 0x172   :  { %v7420_v2 = vpop.eup %7419 }
 0x176   :  { %v1711_v59 = vpop.f32.mrb[20].mxu1 }
 0x177   :  { %v1972_v62 = vadd.f32 %v8529_v57, %v1711_v59  ;;  %v6558_v0 = vpop.f32.mrb[21].mxu1  ;;  %v7216_v59 = vld [vmem:[%s9755_s2 + $0x1c4] ss:$24 sps:$4 sm:$0xff]  }
 0x178   :  { %v1714_v7 = vpop.f32.mrb[22].mxu1 }
 0x179   :  { %v1973_v33 = vmul.f32 %v7420_v2, %v1972_v62  ;;  %v6559_v37 = vpop.f32.mrb[23].mxu1 }
 0x17b   :  { %v1974_v45 = vadd.f32 %v1973_v33, %v1217_v5 }
 0x17d   :  { %7421 = vtanh.f32 %v1974_v45 }
 0x17e   :  { %7423 = vrcp.f32 %v1969_v41 }
 0x187   :  { %v7422_v43 = vpop.eup %7421 }
 0x188   :  { %v1976_v47 = vsub.f32 0.0, %v7422_v43  ;;  %v7424_v50 = vpop.eup %7423 }
 0x18a   :  { %v1977_v52 = vmul.f32 %v7424_v50, %v1976_v47 }
 0x18c   :  { %v8532_v53 = vadd.f32 %v7422_v43, %v1977_v52 }
 0x18e   :  { %2003 = vst [vmem:[%s9757_s4] sm:$0xff] %v8532_v53  ;;  %v2020_v5 = vpack.c.bf16 %v8532_v53, %v8532_v53 }
 0x190   :  { %2214 = vmatmul.mubr.bf16.vlgmr.msra.gmra.mrb[28].mxu1 %v2020_v5  ;;  %6597 = vmatmul.mubr.bf16.vlgmr.msra.gmra.mrb[36].mxu0 %v2020_v5 }
 0x191   :  { %2424 = vmatpush1.bf16.msra.mxu1 %v8234_v61  ;;  %6601 = vmatpush3.bf16.msra.mxu0 %v7215_v55  ;;  %v7217_v61 = vld [vmem:[%s9755_s2 + $0x1f4] ss:$24 sps:$4 sm:$0xff]  }
 0x192   :  { %2425 = vmatprep.subr.bf16.mxu1 %v8242_v1  ;;  %6602 = vmatprep.subr.bf16.mxu0 %v9761_v21 }
 0x193   :  { %2455 = vmatprep.mubr.bf16.mxu1 %v9759_v42  ;;  %6616 = vmatprep.mubr.msk.bf16.mxu0 %vm7580_vm0, %v9761_v21 }
 0x195   :  { %2426 = vmatpush1.bf16.msra.mxu1 %v8251_v6  ;;  %6603 = vmatpush3.bf16.msra.mxu0 %v7216_v59  ;;  %v8556_v60 = vpop.f32.mrb[16].mxu0 }
 0x196   :  { %9780 = vst [vmem:[#allocation20_spill] sm:$0xff] %v8556_v60  ;;  %v1911_v62 = vpop.f32.mrb[24].mxu1  ;;  %2427 = vmatprep.subr.bf16.mxu1 %v8261_v12  ;;  %6604 = vmatprep.subr.bf16.mxu0 %v9761_v21  ;;  %v8560_v0 = vpop.f32.mrb[17].mxu0  ;;  %v7218_v12 = vld [vmem:[%s9755_s2 + $0x224] ss:$24 sps:$4 sm:$0xff]  }
 0x197   :  { %v1979_v1 = vadd.f32 %v1911_v62, %v1253_v36  ;;  %9781 = vst [vmem:[#allocation21_spill] sm:$0xff] %v8560_v0  ;;  %v1913_v2 = vpop.f32.mrb[25].mxu1  ;;  %v8562_v7 = vpop.f32.mrb[18].mxu0  ;;  %v7219_v36 = vld [vmem:[%s9755_s2 + $0x254] ss:$24 sps:$4 sm:$0xff]  }
 0x198   :  { %9782 = vst [vmem:[#allocation22_spill] sm:$0xff] %v8562_v7  ;;  %v1915_v33 = vpop.f32.mrb[26].mxu1  ;;  %v8564_v37 = vpop.f32.mrb[19].mxu0  ;;  %v7254_v0 = vld [vmem:[%s9755_s2 + $0x158] ss:$24 sps:$4 sm:$0xff]  }
 0x199   :  { %v6015_v6 = vmul.f32 -1.442695, %v1979_v1  ;;  %9783 = vst [vmem:[#allocation23_spill] sm:$0xff] %v8564_v37  ;;  %v1916_v41 = vpop.f32.mrb[27].mxu1  ;;  %2428 = vmatpush1.bf16.msra.mxu1 %v8272_v15  ;;  %6605 = vmatpush3.bf16.msra.mxu0 %v7217_v61 }
 0x19a   :  { %2429 = vmatprep.subr.bf16.mxu1 %v8281_v19  ;;  %6606 = vmatprep.subr.bf16.mxu0 %v9761_v21 }
 0x19b   :  { %7425 = vpow2.f32 %v6015_v6 }
 0x19d   :  { %2430 = vmatpush1.bf16.msra.mxu1 %v8291_v20  ;;  %6607 = vmatpush3.bf16.msra.mxu0 %v7218_v12  ;;  %v8576_v45 = vpop.f32.mrb[20].mxu0  ;;  %v7220_v20 = vld [vmem:[%s9755_s2 + $0x284] ss:$24 sps:$4 sm:$0xff]  }
 0x19e   :  { %9784 = vst [vmem:[#allocation24_spill] sm:$0xff] %v8576_v45  ;;  %2431 = vmatprep.subr.bf16.mxu1 %v8300_v48  ;;  %6608 = vmatprep.subr.bf16.mxu0 %v9761_v21  ;;  %v8580_v15 = vpop.f32.mrb[21].mxu0  ;;  %v7221_v48 = vld [vmem:[%s9755_s2 + $0x2b4] ss:$24 sps:$4 sm:$0xff]  }
 0x19f   :  { %9785 = vst [vmem:[#allocation25_spill] sm:$0xff] %v8580_v15  ;;  %v8582_v43 = vpop.f32.mrb[22].mxu0 }
 0x1a0   :  { %9786 = vst [vmem:[#allocation26_spill] sm:$0xff] %v8582_v43  ;;  %v8584_v19 = vpop.f32.mrb[23].mxu0 }
 0x1a1   :  { %9787 = vst [vmem:[#allocation27_spill] sm:$0xff] %v8584_v19  ;;  %2432 = vmatpush1.bf16.msra.mxu1 %v8311_v24  ;;  %6609 = vmatpush3.bf16.msra.mxu0 %v7219_v36  ;;  %v7278_v19 = vld [vmem:[%s9755_s2 + $0x284] ss:$24 sps:$4 sm:$0xff]  }
 0x1a2   :  { %2433 = vmatprep.subr.bf16.mxu1 %v8319_v26  ;;  %6610 = vmatprep.subr.bf16.mxu0 %v9761_v21 }
 0x1a5   :  { %2434 = vmatpush1.bf16.msra.mxu1 %v8329_v27  ;;  %6611 = vmatpush3.bf16.msra.mxu0 %v7220_v20  ;;  %v8596_v47 = vpop.f32.mrb[24].mxu0  ;;  %v7426_v24 = vpop.eup %7425  ;;  %v7222_v27 = vld [vmem:[%s9755_s2 + $0x2e4] ss:$24 sps:$4 sm:$0xff]  }
 0x1a6   :  { %9788 = vst [vmem:[#allocation28_spill] sm:$0xff] %v8596_v47  ;;  %2435 = vmatprep.subr.bf16.mxu1 %v8338_v30  ;;  %6612 = vmatprep.subr.bf16.mxu0 %v9761_v21  ;;  %v8600_v50 = vpop.f32.mrb[25].mxu0  ;;  %v1983_v55 = vadd.f32 1.0, %v7426_v24 }
 0x1a7   :  { %9789 = vst [vmem:[#allocation29_spill] sm:$0xff] %v8600_v50  ;;  %v8602_v52 = vpop.f32.mrb[26].mxu0 }
 0x1a8   :  { %v8604_v26 = vpop.f32.mrb[27].mxu0  ;;  %7427 = vrcp.f32 %v1983_v55 }
 0x1a9   :  { %2436 = vmatpush1.bf16.msra.mxu1 %v8349_v31  ;;  %6613 = vmatpush3.bf16.msra.mxu0 %v7221_v48 }
 0x1aa   :  { %2437 = vmatprep.subr.bf16.mxu1 %v8357_v34  ;;  %6614 = vmatprep.subr.bf16.mxu0 %v9761_v21  ;;  %v8621_v34 = vld [vmem:[%s9756_s3 + $0x1] ss:$0 sm:$0xff] }
 0x1ad   :  { %2438 = vmatpush1.bf16.msra.mxu1 %v8367_v35  ;;  %6615 = vmatpush3.bf16.msra.mxu0 %v7222_v27  ;;  %v8613_v30 = vpop.f32.mrb[28].mxu0 }
 0x1ae   :  { %6620 = vmatprep.subr.bf16.mxu0 %v9761_v21  ;;  %v8616_v5 = vpop.f32.mrb[29].mxu0 }
 0x1af   :  { %v1397_v31 = vpop.f32.mrb[30].mxu0 }
 0x1b0   :  { %v1986_v59 = vadd.f32 %v1913_v2, %v1397_v31  ;;  %v1399_v61 = vpop.f32.mrb[31].mxu0 }
 0x1b2   :  { %v6016_v62 = vmul.f32 -1.442695, %v1986_v59  ;;  %v7428_v6 = vpop.eup %7427 }
 0x1b4   :  { %7429 = vpow2.f32 %v6016_v62 }
 0x1b5   :  { %v1952_v1 = vpop.f32.mrb[32].mxu0 }
 0x1b6   :  { %v1993_v35 = vadd.f32 %v8621_v34, %v1952_v1  ;;  %v6578_v33 = vpop.f32.mrb[33].mxu0  ;;  %v8643_v1 = vld [vmem:[%s9755_s2] ss:$24 sps:$4 sm:$0xff]  }
 0x1b7   :  { %v1955_v41 = vpop.f32.mrb[34].mxu0  ;;  %v8653_v33 = vld [vmem:[%s9755_s2 + $0x34] ss:$24 sps:$4 sm:$0xff]  }
 0x1b8   :  { %v1994_v12 = vmul.f32 %v7428_v6, %v1993_v35  ;;  %v6579_v36 = vpop.f32.mrb[35].mxu0  ;;  %v7226_v35 = vld [vmem:[%s9755_s2 + $0x8] ss:$24 sps:$4 sm:$0xff]   ;;  %v7230_v41 = vld [vmem:[%s9755_s2 + $0x38] ss:$24 sps:$4 sm:$0xff]  }
 0x1b9   :  { %v8659_v6 = vld [vmem:[%s9755_s2 + $0x30] ss:$24 sps:$4 sm:$0xff]   ;;  %v8675_v36 = vld [vmem:[%s9755_s2 + $0x60] ss:$24 sps:$4 sm:$0xff]  }
 0x1ba   :  { %v1995_v20 = vadd.f32 %v1994_v12, %v1399_v61  ;;  %v8638_v61 = vld [vmem:[%s9755_s2 + $0x4] ss:$24 sps:$4 sm:$0xff]  }
 0x1bb   :  { %2727 = vmatprep.subr.bf16.mxu1 %v8638_v61  ;;  %v8669_v12 = vld [vmem:[%s9755_s2 + $0x64] ss:$24 sps:$4 sm:$0xff]  }
 0x1bc   :  { %7431 = vtanh.f32 %v1995_v20  ;;  %v7234_v20 = vld [vmem:[%s9755_s2 + $0x68] ss:$24 sps:$4 sm:$0xff]  }
 0x1be   :  { %v7430_v48 = vpop.eup %7429 }
 0x1bf   :  { %v1990_v2 = vadd.f32 1.0, %v7430_v48  ;;  %v8685_v48 = vld [vmem:[%s9755_s2 + $0x94] ss:$24 sps:$4 sm:$0xff]  }
 0x1c1   :  { %7433 = vrcp.f32 %v1990_v2  ;;  %v8691_v2 = vld [vmem:[%s9755_s2 + $0x90] ss:$24 sps:$4 sm:$0xff]  }
 0x1c6   :  { %v7432_v24 = vpop.eup %7431 }
 0x1c7   :  { %v1997_v27 = vsub.f32 0.0, %v7432_v24 }
 0x1cb   :  { %v7434_v55 = vpop.eup %7433 }
 0x1cc   :  { %v1998_v31 = vmul.f32 %v7434_v55, %v1997_v27  ;;  %v8701_v27 = vld [vmem:[%s9755_s2 + $0xc0] ss:$24 sps:$4 sm:$0xff]   ;;  %v8706_v55 = vld [vmem:[%s9755_s2 + $0xc4] ss:$24 sps:$4 sm:$0xff]  }
 0x1ce   :  { %v8624_v59 = vadd.f32 %v7432_v24, %v1998_v31  ;;  %v7238_v24 = vld [vmem:[%s9755_s2 + $0x98] ss:$24 sps:$4 sm:$0xff]   ;;  %v7242_v31 = vld [vmem:[%s9755_s2 + $0xc8] ss:$24 sps:$4 sm:$0xff]  }
 0x1d0   :  { %6017 = vst [vmem:[%s9757_s4 + $0x78] sm:$0xff] %v8624_v59  ;;  %v2262_v62 = vpack.c.bf16 %v8624_v59, %v8624_v59 }
 0x1d2   :  { %2456 = vmatmul.mubr.bf16.vlgmr.msra.gmra.mrb[32].mxu1 %v2262_v62  ;;  %6617 = vmatmul.mubr.bf16.vlgmr.msra.gmra.mrb[40].mxu0 %v2262_v62  ;;  %v8715_v62 = vld [vmem:[%s9755_s2 + $0xf4] ss:$24 sps:$4 sm:$0xff]  }
 0x1d3   :  { %2759 = vmatprep.mubr.bf16.mxu1 %v9759_v42  ;;  %6636 = vmatprep.mubr.msk.bf16.mxu0 %vm7580_vm0, %v9761_v21  ;;  %v8748_v42 = vld [vmem:[%s9755_s2 + $0x154] ss:$24 sps:$4 sm:$0xff]  }
 0x1d4   :  { %2728 = vmatpush1.bf16.msra.mxu1 %v8643_v1  ;;  %6621 = vmatpush3.bf16.msra.mxu0 %v7226_v35  ;;  %v8722_v35 = vld [vmem:[%s9755_s2 + $0xf0] ss:$24 sps:$4 sm:$0xff]  }
 0x1d5   :  { %6622 = vmatprep.subr.bf16.mxu0 %v9761_v21  ;;  %2729 = vmatprep.subr.bf16.mxu1 %v8653_v33 }
 0x1d8   :  { %2730 = vmatpush1.bf16.msra.mxu1 %v8659_v6  ;;  %6623 = vmatpush3.bf16.msra.mxu0 %v7230_v41  ;;  %v7246_v41 = vld [vmem:[%s9755_s2 + $0xf8] ss:$24 sps:$4 sm:$0xff]  }
 0x1d9   :  { %6624 = vmatprep.subr.bf16.mxu0 %v9761_v21  ;;  %2731 = vmatprep.subr.bf16.mxu1 %v8669_v12 }
 0x1dc   :  { %2732 = vmatpush1.bf16.msra.mxu1 %v8675_v36  ;;  %6625 = vmatpush3.bf16.msra.mxu0 %v7234_v20  ;;  %v8732_v20 = vld [vmem:[%s9755_s2 + $0x124] ss:$24 sps:$4 sm:$0xff]  }
 0x1dd   :  { %6626 = vmatprep.subr.bf16.mxu0 %v9761_v21  ;;  %2733 = vmatprep.subr.bf16.mxu1 %v8685_v48 }
 0x1e0   :  { %2734 = vmatpush1.bf16.msra.mxu1 %v8691_v2  ;;  %6627 = vmatpush3.bf16.msra.mxu0 %v7238_v24  ;;  %v8738_v24 = vld [vmem:[%s9755_s2 + $0x120] ss:$24 sps:$4 sm:$0xff]  }
 0x1e1   :  { %6628 = vmatprep.subr.bf16.mxu0 %v9761_v21  ;;  %2735 = vmatprep.subr.bf16.mxu1 %v8706_v55 }
 0x1e4   :  { %2736 = vmatpush1.bf16.msra.mxu1 %v8701_v27  ;;  %6629 = vmatpush3.bf16.msra.mxu0 %v7242_v31  ;;  %v7250_v31 = vld [vmem:[%s9755_s2 + $0x128] ss:$24 sps:$4 sm:$0xff]  }
 0x1e5   :  { %2737 = vmatprep.subr.bf16.mxu1 %v8715_v62  ;;  %6630 = vmatprep.subr.bf16.mxu0 %v9761_v21 }
 0x1e8   :  { %2738 = vmatpush1.bf16.msra.mxu1 %v8722_v35  ;;  %6631 = vmatpush3.bf16.msra.mxu0 %v7246_v41  ;;  %v8754_v41 = vld [vmem:[%s9755_s2 + $0x150] ss:$24 sps:$4 sm:$0xff]  }
 0x1e9   :  { %2739 = vmatprep.subr.bf16.mxu1 %v8732_v20  ;;  %6632 = vmatprep.subr.bf16.mxu0 %v9761_v21 }
 0x1ec   :  { %2740 = vmatpush1.bf16.msra.mxu1 %v8738_v24  ;;  %6633 = vmatpush3.bf16.msra.mxu0 %v7250_v31  ;;  %v8766_v31 = vld [vmem:[%s9755_s2 + $0x190] ss:$24 sps:$4 sm:$0xff]  }
 0x1ed   :  { %2741 = vmatprep.subr.bf16.mxu1 %v8748_v42  ;;  %6634 = vmatprep.subr.bf16.mxu0 %v9761_v21 }
 0x1f0   :  { %2742 = vmatpush1.bf16.msra.mxu1 %v8754_v41  ;;  %6635 = vmatpush3.bf16.msra.mxu0 %v7254_v0 }
 0x1f1   :  { %6640 = vmatprep.subr.bf16.mxu0 %v9761_v21  ;;  %2969 = vmatprep.subr.bf16.mxu1 %v8766_v31 }
 0x263   :  { %v2215_v60 = vpop.f32.mrb[28].mxu1  ;;  %v2256_v9 = vpop.f32.mrb[36].mxu0 }
 0x264   :  { %v2504_v32 = vadd.f32 %v2215_v60, %v8472_v11  ;;  %v2217_v28 = vpop.f32.mrb[29].mxu1  ;;  %v6598_v23 = vpop.f32.mrb[37].mxu0  ;;  %v2518_v46 = vadd.f32 %v8529_v57, %v2256_v9  ;;  %v7258_v9 = vld [vmem:[%s9755_s2 + $0x194] ss:$24 sps:$4 sm:$0xff]  }
 0x265   :  { %v2511_v37 = vadd.f32 %v2217_v28, %v8476_v16  ;;  %v2219_v7 = vpop.f32.mrb[30].mxu1  ;;  %v2259_v38 = vpop.f32.mrb[38].mxu0  ;;  %v9790_v28 = vmov 0.0  }
 0x266   :  { %v6066_v0 = vmul.f32 -1.442695, %v2504_v32  ;;  %v2220_v25 = vpop.f32.mrb[31].mxu1  ;;  %v6599_v21 = vpop.f32.mrb[39].mxu0  ;;  %v9791_v7 = vmov 0  }
 0x267   :  { %v6067_v18 = vmul.f32 -1.442695, %v2511_v37  ;;  %v8818_v37 = vld [vmem:[%s9755_s2 + $0x1ec] ss:$24 sps:$4 sm:$0xff]  }
 0x268   :  { %7435 = vpow2.f32 %v6066_v0  ;;  %v8834_v0 = vld [vmem:[%s9755_s2 + $0x21c] ss:$24 sps:$4 sm:$0xff]  }
 0x269   :  { %7437 = vpow2.f32 %v6067_v18  ;;  %v7262_v18 = vld [vmem:[%s9755_s2 + $0x1c4] ss:$24 sps:$4 sm:$0xff]  }
 0x272   :  { %v7436_v13 = vpop.eup %7435 }
 0x273   :  { %v2508_v15 = vadd.f32 1.0, %v7436_v13  ;;  %v7438_v45 = vpop.eup %7437  ;;  %v8779_v13 = vld [vmem:[%s9755_s2 + $0x18c] ss:$24 sps:$4 sm:$0xff]  }
 0x274   :  { %v2515_v60 = vadd.f32 1.0, %v7438_v45  ;;  %v7266_v45 = vld [vmem:[%s9755_s2 + $0x1f4] ss:$24 sps:$4 sm:$0xff]  }
 0x275   :  { %7439 = vrcp.f32 %v2508_v15  ;;  %v8828_v15 = vld [vmem:[%s9755_s2 + $0x220] ss:$24 sps:$4 sm:$0xff]  }
 0x27f   :  { %v7440_v17 = vpop.eup %7439 }
 0x280   :  { %v2519_v11 = vmul.f32 %v7440_v17, %v2518_v46  ;;  %v8793_v46 = vld [vmem:[%s9755_s2 + $0x1c0] ss:$24 sps:$4 sm:$0xff]   ;;  %v8799_v17 = vld [vmem:[%s9755_s2 + $0x1bc] ss:$24 sps:$4 sm:$0xff]  }
 0x282   :  { %v2520_v23 = vadd.f32 %v2519_v11, %v8474_v14  ;;  %v7270_v11 = vld [vmem:[%s9755_s2 + $0x224] ss:$24 sps:$4 sm:$0xff]  }
 0x284   :  { %7441 = vtanh.f32 %v2520_v23  ;;  %v8844_v23 = vld [vmem:[%s9755_s2 + $0x250] ss:$24 sps:$4 sm:$0xff]  }
 0x285   :  { %7443 = vrcp.f32 %v2515_v60  ;;  %v8850_v60 = vld [vmem:[%s9755_s2 + $0x24c] ss:$24 sps:$4 sm:$0xff]  }
 0x28e   :  { %v7442_v16 = vpop.eup %7441 }
 0x28f   :  { %v2522_v38 = vsub.f32 %v8532_v53, %v7442_v16  ;;  %v7444_v21 = vpop.eup %7443  ;;  %v8809_v53 = vld [vmem:[%s9755_s2 + $0x1f0] ss:$24 sps:$4 sm:$0xff]  }
 0x291   :  { %v2523_v25 = vmul.f32 %v7444_v21, %v2522_v38  ;;  %v8860_v38 = vld [vmem:[%s9755_s2 + $0x280] ss:$24 sps:$4 sm:$0xff]  }
 0x293   :  { %v8774_v32 = vadd.f32 %v7442_v16, %v2523_v25  ;;  %v7274_v16 = vld [vmem:[%s9755_s2 + $0x254] ss:$24 sps:$4 sm:$0xff]  }
 0x295   :  { %6070 = vst [vmem:[%s9757_s4 + $0x10] sm:$0xff] %v8774_v32  ;;  %v2566_v14 = vpack.c.bf16 %v8774_v32, %v8774_v32 }
 0x297   :  { %2760 = vmatmul.mubr.bf16.vlgmr.msra.gmra.mrb[36].mxu1 %v2566_v14  ;;  %6637 = vmatmul.mubr.bf16.vlgmr.msra.gmra.mrb[44].mxu0 %v2566_v14 }
 0x298   :  { %2970 = vmatpush1.bf16.msra.mxu1 %v8779_v13  ;;  %6641 = vmatpush3.bf16.msra.mxu0 %v7258_v9 }
 0x299   :  { %2971 = vmatprep.subr.bf16.mxu1 %v8793_v46  ;;  %6642 = vmatprep.subr.bf16.mxu0 %v9790_v28 }
 0x29a   :  { %3001 = vmatprep.mubr.bf16.mxu1 %v9791_v7  ;;  %6656 = vmatprep.mubr.msk.bf16.mxu0 %vm7580_vm0, %v9790_v28 }
 0x29c   :  { %2972 = vmatpush1.bf16.msra.mxu1 %v8799_v17  ;;  %6643 = vmatpush3.bf16.msra.mxu0 %v7262_v18 }
 0x29d   :  { %2973 = vmatprep.subr.bf16.mxu1 %v8809_v53  ;;  %6644 = vmatprep.subr.bf16.mxu0 %v9790_v28 }
 0x2a0   :  { %2974 = vmatpush1.bf16.msra.mxu1 %v8818_v37  ;;  %6645 = vmatpush3.bf16.msra.mxu0 %v7266_v45 }
 0x2a1   :  { %2975 = vmatprep.subr.bf16.mxu1 %v8828_v15  ;;  %6646 = vmatprep.subr.bf16.mxu0 %v9790_v28 }
 0x2a4   :  { %2976 = vmatpush1.bf16.msra.mxu1 %v8834_v0  ;;  %6647 = vmatpush3.bf16.msra.mxu0 %v7270_v11 }
 0x2a5   :  { %2977 = vmatprep.subr.bf16.mxu1 %v8844_v23  ;;  %6648 = vmatprep.subr.bf16.mxu0 %v9790_v28  ;;  %v2457_v21 = vpop.f32.mrb[32].mxu1  ;;  %v2498_v25 = vpop.f32.mrb[40].mxu0 }
 0x2a6   :  { %v2525_v9 = vadd.f32 %v2457_v21, %v8518_v29  ;;  %v2459_v14 = vpop.f32.mrb[33].mxu1  ;;  %v6618_v18 = vpop.f32.mrb[41].mxu0 }
 0x2a7   :  { %v2532_v45 = vadd.f32 %v2459_v14, %v8613_v30  ;;  %v2461_v11 = vpop.f32.mrb[34].mxu1  ;;  %v2501_v8 = vpop.f32.mrb[42].mxu0  ;;  %v8884_v30 = vld [vmem:[%s9755_s2 + $0x2ac] ss:$24 sps:$4 sm:$0xff]  }
 0x2a8   :  { %2978 = vmatpush1.bf16.msra.mxu1 %v8850_v60  ;;  %6649 = vmatpush3.bf16.msra.mxu0 %v7274_v16  ;;  %v6068_v43 = vmul.f32 -1.442695, %v2525_v9  ;;  %v2462_v29 = vpop.f32.mrb[35].mxu1  ;;  %v6619_v21 = vpop.f32.mrb[43].mxu0  ;;  %v8878_v8 = vld [vmem:[%s9755_s2 + $0x2b0] ss:$24 sps:$4 sm:$0xff]  }
 0x2a9   :  { %2979 = vmatprep.subr.bf16.mxu1 %v8860_v38  ;;  %6650 = vmatprep.subr.bf16.mxu0 %v9790_v28  ;;  %v7282_v16 = vld [vmem:[%s9755_s2 + $0x2b4] ss:$24 sps:$4 sm:$0xff]   ;;  %v7286_v9 = vld [vmem:[%s9755_s2 + $0x2e4] ss:$24 sps:$4 sm:$0xff]   ;;  %v6069_v14 = vmul.f32 -1.442695, %v2532_v45  ;;  %v2539_v21 = vadd.f32 %v8621_v34, %v2498_v25 }
 0x2aa   :  { %7445 = vpow2.f32 %v6068_v43  ;;  %v8894_v43 = vld [vmem:[%s9755_s2 + $0x2e0] ss:$24 sps:$4 sm:$0xff]  }
 0x2ab   :  { %7447 = vpow2.f32 %v6069_v14  ;;  %v7294_v14 = vld [vmem:[%s9755_s2 + $0x158] ss:$24 sps:$4 sm:$0xff]  }
 0x2ac   :  { %2980 = vmatpush1.bf16.msra.mxu1 %v8868_v3  ;;  %6651 = vmatpush3.bf16.msra.mxu0 %v7278_v19  ;;  %v8900_v19 = vld [vmem:[%s9755_s2 + $0x2dc] ss:$24 sps:$4 sm:$0xff]  }
 0x2ad   :  { %2981 = vmatprep.subr.bf16.mxu1 %v8878_v8  ;;  %6652 = vmatprep.subr.bf16.mxu0 %v9790_v28 }
 0x2b0   :  { %2982 = vmatpush1.bf16.msra.mxu1 %v8884_v30  ;;  %6653 = vmatpush3.bf16.msra.mxu0 %v7282_v16 }
 0x2b1   :  { %2983 = vmatprep.subr.bf16.mxu1 %v8894_v43  ;;  %6654 = vmatprep.subr.bf16.mxu0 %v9790_v28 }
 0x2b4   :  { %2984 = vmatpush1.bf16.msra.mxu1 %v8900_v19  ;;  %6655 = vmatpush3.bf16.msra.mxu0 %v7286_v9  ;;  %v7446_v18 = vpop.eup %7445 }
 0x2b5   :  { %3273 = vmatprep.subr.bf16.mxu1 %v8638_v61  ;;  %6660 = vmatprep.subr.bf16.mxu0 %v9790_v28  ;;  %v2529_v11 = vadd.f32 1.0, %v7446_v18  ;;  %v7448_v29 = vpop.eup %7447 }
 0x2b6   :  { %v2536_v4 = vadd.f32 1.0, %v7448_v29 }
 0x2b7   :  { %7449 = vrcp.f32 %v2529_v11 }
 0x2c1   :  { %v7450_v16 = vpop.eup %7449 }
 0x2c2   :  { %v2540_v56 = vmul.f32 %v7450_v16, %v2539_v21 }
 0x2c4   :  { %v2541_v63 = vadd.f32 %v2540_v56, %v8616_v5  ;;  %v7287_v56 = vld [vmem:[%s9755_s2 + $0x8] ss:$24 sps:$4 sm:$0xff]   ;;  %v7292_v5 = vld [vmem:[%s9755_s2 + $0xf8] ss:$24 sps:$4 sm:$0xff]  }
 0x2c6   :  { %7451 = vtanh.f32 %v2541_v63  ;;  %v7289_v63 = vld [vmem:[%s9755_s2 + $0x68] ss:$24 sps:$4 sm:$0xff]  }
 0x2c7   :  { %7453 = vrcp.f32 %v2536_v4  ;;  %v7290_v4 = vld [vmem:[%s9755_s2 + $0x98] ss:$24 sps:$4 sm:$0xff]  }
 0x2d0   :  { %v7452_v45 = vpop.eup %7451 }
 0x2d1   :  { %v2543_v9 = vsub.f32 %v8624_v59, %v7452_v45  ;;  %v7454_v58 = vpop.eup %7453  ;;  %v7293_v59 = vld [vmem:[%s9755_s2 + $0x128] ss:$24 sps:$4 sm:$0xff]  }
 0x2d3   :  { %v2544_v50 = vmul.f32 %v7454_v58, %v2543_v9  ;;  %v7288_v58 = vld [vmem:[%s9755_s2 + $0x38] ss:$24 sps:$4 sm:$0xff]  }
 0x2d5   :  { %v8913_v47 = vadd.f32 %v7452_v45, %v2544_v50  ;;  %v7291_v50 = vld [vmem:[%s9755_s2 + $0xc8] ss:$24 sps:$4 sm:$0xff]  }
 0x2d7   :  { %6071 = vst [vmem:[%s9757_s4 + $0x68] sm:$0xff] %v8913_v47  ;;  %v2808_v25 = vpack.c.bf16 %v8913_v47, %v8913_v47 }
 0x2d9   :  { %3002 = vmatmul.mubr.bf16.vlgmr.msra.gmra.mrb[40].mxu1 %v2808_v25  ;;  %6657 = vmatmul.mubr.bf16.vlgmr.msra.gmra.mrb[48].mxu0 %v2808_v25 }
 0x2da   :  { %3274 = vmatpush1.bf16.msra.mxu1 %v8643_v1  ;;  %3305 = vmatprep.mubr.bf16.mxu1 %v9791_v7 }
 0x2db   :  { %3275 = vmatprep.subr.bf16.mxu1 %v8653_v33  ;;  %6676 = vmatprep.mubr.msk.bf16.mxu0 %vm7580_vm0, %v9790_v28 }
 0x2dc   :  { %6661 = vmatpush3.bf16.msra.mxu0 %v7287_v56 }
 0x2dd   :  { %6662 = vmatprep.subr.bf16.mxu0 %v9790_v28 }
 0x2de   :  { %3276 = vmatpush1.bf16.msra.mxu1 %v8659_v6 }
 0x2df   :  { %3277 = vmatprep.subr.bf16.mxu1 %v8669_v12 }
 0x2e0   :  { %6663 = vmatpush3.bf16.msra.mxu0 %v7288_v58 }
 0x2e1   :  { %6664 = vmatprep.subr.bf16.mxu0 %v9790_v28 }
 0x2e2   :  { %3278 = vmatpush1.bf16.msra.mxu1 %v8675_v36 }
 0x2e3   :  { %3279 = vmatprep.subr.bf16.mxu1 %v8685_v48 }
 0x2e4   :  { %6665 = vmatpush3.bf16.msra.mxu0 %v7289_v63 }
 0x2e5   :  { %6666 = vmatprep.subr.bf16.mxu0 %v9790_v28 }
 0x2e6   :  { %3280 = vmatpush1.bf16.msra.mxu1 %v8691_v2 }
 0x2e7   :  { %3281 = vmatprep.subr.bf16.mxu1 %v8706_v55 }
 0x2e8   :  { %6667 = vmatpush3.bf16.msra.mxu0 %v7290_v4 }
 0x2e9   :  { %6668 = vmatprep.subr.bf16.mxu0 %v9790_v28 }
 0x2ea   :  { %3282 = vmatpush1.bf16.msra.mxu1 %v8701_v27 }
 0x2eb   :  { %3283 = vmatprep.subr.bf16.mxu1 %v8715_v62 }
 0x2ec   :  { %6669 = vmatpush3.bf16.msra.mxu0 %v7291_v50 }
 0x2ed   :  { %6670 = vmatprep.subr.bf16.mxu0 %v9790_v28 }
 0x2ee   :  { %3284 = vmatpush1.bf16.msra.mxu1 %v8722_v35 }
 0x2ef   :  { %3285 = vmatprep.subr.bf16.mxu1 %v8732_v20 }
 0x2f0   :  { %6671 = vmatpush3.bf16.msra.mxu0 %v7292_v5 }
 0x2f1   :  { %6672 = vmatprep.subr.bf16.mxu0 %v9790_v28 }
 0x2f2   :  { %3286 = vmatpush1.bf16.msra.mxu1 %v8738_v24 }
 0x2f3   :  { %3287 = vmatprep.subr.bf16.mxu1 %v8748_v42 }
 0x2f4   :  { %6673 = vmatpush3.bf16.msra.mxu0 %v7293_v59 }
 0x2f5   :  { %6674 = vmatprep.subr.bf16.mxu0 %v9790_v28 }
 0x2f6   :  { %3288 = vmatpush1.bf16.msra.mxu1 %v8754_v41 }
 0x2f7   :  { %3515 = vmatprep.subr.bf16.mxu1 %v8766_v31 }
 0x2f8   :  { %6675 = vmatpush3.bf16.msra.mxu0 %v7294_v14 }
 0x2f9   :  { %6680 = vmatprep.subr.bf16.mxu0 %v9790_v28 }
 0x36a   :  { %v2761_v18 = vpop.f32.mrb[36].mxu1  ;;  %v2802_v11 = vpop.f32.mrb[44].mxu0 }
 0x36b   :  { %v3050_v29 = vadd.f32 %v2761_v18, %v8480_v39  ;;  %v2763_v21 = vpop.f32.mrb[37].mxu1  ;;  %v6638_v16 = vpop.f32.mrb[45].mxu0  ;;  %v3064_v14 = vadd.f32 %v8529_v57, %v2802_v11  ;;  %v7297_v57 = vld [vmem:[%s9755_s2 + $0x1f4] ss:$24 sps:$4 sm:$0xff]  }
 0x36c   :  { %v3057_v45 = vadd.f32 %v2763_v21, %v8484_v44  ;;  %v2765_v9 = vpop.f32.mrb[38].mxu1  ;;  %v2805_v25 = vpop.f32.mrb[46].mxu0  ;;  %v7299_v11 = vld [vmem:[%s9755_s2 + $0x254] ss:$24 sps:$4 sm:$0xff]  }
 0x36d   :  { %v6120_v56 = vmul.f32 -1.442695, %v3050_v29  ;;  %v2766_v58 = vpop.f32.mrb[39].mxu1  ;;  %v6639_v63 = vpop.f32.mrb[47].mxu0  ;;  %v7295_v25 = vld [vmem:[%s9755_s2 + $0x194] ss:$24 sps:$4 sm:$0xff]  }
 0x36e   :  { %v6121_v4 = vmul.f32 -1.442695, %v3057_v45 }
 0x36f   :  { %7455 = vpow2.f32 %v6120_v56 }
 0x370   :  { %7457 = vpow2.f32 %v6121_v4 }
 0x379   :  { %v7456_v50 = vpop.eup %7455 }
 0x37a   :  { %v3054_v5 = vadd.f32 1.0, %v7456_v50  ;;  %v7458_v59 = vpop.eup %7457 }
 0x37b   :  { %v3061_v16 = vadd.f32 1.0, %v7458_v59 }
 0x37c   :  { %7459 = vrcp.f32 %v3054_v5 }
 0x386   :  { %v7460_v10 = vpop.eup %7459 }
 0x387   :  { %v3065_v39 = vmul.f32 %v7460_v10, %v3064_v14  ;;  %v7296_v10 = vld [vmem:[%s9755_s2 + $0x1c4] ss:$24 sps:$4 sm:$0xff]  }
 0x389   :  { %v3066_v18 = vadd.f32 %v3065_v39, %v8482_v40  ;;  %v7300_v39 = vld [vmem:[%s9755_s2 + $0x284] ss:$24 sps:$4 sm:$0xff]  }
 0x38b   :  { %7461 = vtanh.f32 %v3066_v18 }
 0x38c   :  { %7463 = vrcp.f32 %v3061_v16 }
 0x395   :  { %v7462_v44 = vpop.eup %7461 }
 0x396   :  { %v3068_v29 = vsub.f32 %v8774_v32, %v7462_v44  ;;  %v7464_v21 = vpop.eup %7463  ;;  %v7298_v32 = vld [vmem:[%s9755_s2 + $0x224] ss:$24 sps:$4 sm:$0xff]  }
 0x398   :  { %v3069_v9 = vmul.f32 %v7464_v21, %v3068_v29 }
 0x39a   :  { %v8977_v45 = vadd.f32 %v7462_v44, %v3069_v9 }
 0x39c   :  { %6124 = vst [vmem:[%s9757_s4 + $0x20] sm:$0xff] %v8977_v45  ;;  %v3112_v40 = vpack.c.bf16 %v8977_v45, %v8977_v45 }
 0x39e   :  { %3306 = vmatmul.mubr.bf16.vlgmr.msra.gmra.mrb[44].mxu1 %v3112_v40  ;;  %6677 = vmatmul.mubr.bf16.vlgmr.msra.gmra.mrb[52].mxu0 %v3112_v40 }
 0x39f   :  { %3516 = vmatpush1.bf16.msra.mxu1 %v8779_v13  ;;  %6681 = vmatpush3.bf16.msra.mxu0 %v7295_v25 }
 0x3a0   :  { %3517 = vmatprep.subr.bf16.mxu1 %v8793_v46  ;;  %6682 = vmatprep.subr.bf16.mxu0 %v9790_v28 }
 0x3a1   :  { %3547 = vmatprep.mubr.bf16.mxu1 %v9791_v7  ;;  %6696 = vmatprep.mubr.msk.bf16.mxu0 %vm7580_vm0, %v9790_v28 }
 0x3a3   :  { %3518 = vmatpush1.bf16.msra.mxu1 %v8799_v17  ;;  %6683 = vmatpush3.bf16.msra.mxu0 %v7296_v10 }
 0x3a4   :  { %3519 = vmatprep.subr.bf16.mxu1 %v8809_v53  ;;  %6684 = vmatprep.subr.bf16.mxu0 %v9790_v28 }
 0x3a7   :  { %3520 = vmatpush1.bf16.msra.mxu1 %v8818_v37  ;;  %6685 = vmatpush3.bf16.msra.mxu0 %v7297_v57 }
 0x3a8   :  { %3521 = vmatprep.subr.bf16.mxu1 %v8828_v15  ;;  %6686 = vmatprep.subr.bf16.mxu0 %v9790_v28 }
 0x3ab   :  { %3522 = vmatpush1.bf16.msra.mxu1 %v8834_v0  ;;  %6687 = vmatpush3.bf16.msra.mxu0 %v7298_v32 }
 0x3ac   :  { %3523 = vmatprep.subr.bf16.mxu1 %v8844_v23  ;;  %6688 = vmatprep.subr.bf16.mxu0 %v9790_v28  ;;  %v3003_v56 = vpop.f32.mrb[40].mxu1  ;;  %v3044_v58 = vpop.f32.mrb[48].mxu0 }
 0x3ad   :  { %v3071_v63 = vadd.f32 %v3003_v56, %v8510_v22  ;;  %v3005_v4 = vpop.f32.mrb[41].mxu1  ;;  %v6658_v50 = vpop.f32.mrb[49].mxu0  ;;  %v7301_v22 = vld [vmem:[%s9755_s2 + $0x2b4] ss:$24 sps:$4 sm:$0xff]   ;;  %v3085_v40 = vadd.f32 %v8621_v34, %v3044_v58 }
 0x3ae   :  { %v3078_v5 = vadd.f32 %v3005_v4, %v8602_v52  ;;  %v3007_v59 = vpop.f32.mrb[42].mxu1  ;;  %v3047_v14 = vpop.f32.mrb[50].mxu0  ;;  %v7302_v52 = vld [vmem:[%s9755_s2 + $0x2e4] ss:$24 sps:$4 sm:$0xff]  }
 0x3af   :  { %3524 = vmatpush1.bf16.msra.mxu1 %v8850_v60  ;;  %6689 = vmatpush3.bf16.msra.mxu0 %v7299_v11  ;;  %v6122_v18 = vmul.f32 -1.442695, %v3071_v63  ;;  %v3008_v16 = vpop.f32.mrb[43].mxu1  ;;  %v6659_v44 = vpop.f32.mrb[51].mxu0 }
 0x3b0   :  { %3525 = vmatprep.subr.bf16.mxu1 %v8860_v38  ;;  %6690 = vmatprep.subr.bf16.mxu0 %v9790_v28  ;;  %v6123_v29 = vmul.f32 -1.442695, %v3078_v5 }
 0x3b1   :  { %7465 = vpow2.f32 %v6122_v18 }
 0x3b2   :  { %7467 = vpow2.f32 %v6123_v29 }
 0x3b3   :  { %3526 = vmatpush1.bf16.msra.mxu1 %v8868_v3  ;;  %6691 = vmatpush3.bf16.msra.mxu0 %v7300_v39 }
 0x3b4   :  { %3527 = vmatprep.subr.bf16.mxu1 %v8878_v8  ;;  %6692 = vmatprep.subr.bf16.mxu0 %v9790_v28 }
 0x3b7   :  { %3528 = vmatpush1.bf16.msra.mxu1 %v8884_v30  ;;  %6693 = vmatpush3.bf16.msra.mxu0 %v7301_v22 }
 0x3b8   :  { %3529 = vmatprep.subr.bf16.mxu1 %v8894_v43  ;;  %6694 = vmatprep.subr.bf16.mxu0 %v9790_v28 }
 0x3bb   :  { %3530 = vmatpush1.bf16.msra.mxu1 %v8900_v19  ;;  %6695 = vmatpush3.bf16.msra.mxu0 %v7302_v52  ;;  %v7466_v21 = vpop.eup %7465 }
 0x3bc   :  { %3813 = vmatprep.subr.bf16.mxu1 %v8638_v61  ;;  %6700 = vmatprep.subr.bf16.mxu0 %v9790_v28  ;;  %v3075_v9 = vadd.f32 1.0, %v7466_v21  ;;  %v7468_v25 = vpop.eup %7467 }
 0x3bd   :  { %v3082_v11 = vadd.f32 1.0, %v7468_v25 }
 0x3be   :  { %7469 = vrcp.f32 %v3075_v9 }
 0x3c8   :  { %v7470_v10 = vpop.eup %7469 }
 0x3c9   :  { %v3086_v57 = vmul.f32 %v7470_v10, %v3085_v40  ;;  %v7311_v10 = vld [vmem:[%s9755_s2 + $0x194] ss:$24 sps:$4 sm:$0xff]  }
 0x3cb   :  { %v3087_v32 = vadd.f32 %v3086_v57, %v8604_v26  ;;  %v7304_v26 = vld [vmem:[%s9755_s2 + $0x38] ss:$24 sps:$4 sm:$0xff]  }
 0x3cc   :  { %v9792_v57 = vld [vmem:[#allocation10_spill] sm:$0xff] }
 0x3cd   :  { %7471 = vtanh.f32 %v3087_v32 }
 0x3ce   :  { %7473 = vrcp.f32 %v3082_v11 }
 0x3d7   :  { %v7472_v56 = vpop.eup %7471 }
 0x3d8   :  { %v3089_v63 = vsub.f32 %v8913_v47, %v7472_v56  ;;  %v7474_v4 = vpop.eup %7473  ;;  %v7303_v47 = vld [vmem:[%s9755_s2 + $0x8] ss:$24 sps:$4 sm:$0xff]  }
 0x3da   :  { %v3090_v61 = vmul.f32 %v7474_v4, %v3089_v63 }
 0x3dc   :  { %v9041_v50 = vadd.f32 %v7472_v56, %v3090_v61 }
 0x3de   :  { %6125 = vst [vmem:[%s9757_s4 + $0x58] sm:$0xff] %v9041_v50  ;;  %v3354_v58 = vpack.c.bf16 %v9041_v50, %v9041_v50 }
 0x3e0   :  { %3548 = vmatmul.mubr.bf16.vlgmr.msra.gmra.mrb[48].mxu1 %v3354_v58  ;;  %6697 = vmatmul.mubr.bf16.vlgmr.msra.gmra.mrb[56].mxu0 %v3354_v58 }
 0x3e1   :  { %3814 = vmatpush1.bf16.msra.mxu1 %v8643_v1  ;;  %3845 = vmatprep.mubr.bf16.mxu1 %v9791_v7  ;;  %v7306_v1 = vld [vmem:[%s9755_s2 + $0x98] ss:$24 sps:$4 sm:$0xff]  }
 0x3e2   :  { %3815 = vmatprep.subr.bf16.mxu1 %v8653_v33  ;;  %6716 = vmatprep.mubr.msk.bf16.mxu0 %vm7580_vm0, %v9790_v28  ;;  %v7307_v33 = vld [vmem:[%s9755_s2 + $0xc8] ss:$24 sps:$4 sm:$0xff]  }
 0x3e3   :  { %6701 = vmatpush3.bf16.msra.mxu0 %v7303_v47 }
 0x3e4   :  { %6702 = vmatprep.subr.bf16.mxu0 %v9790_v28 }
 0x3e5   :  { %3816 = vmatpush1.bf16.msra.mxu1 %v8659_v6  ;;  %v7308_v6 = vld [vmem:[%s9755_s2 + $0xf8] ss:$24 sps:$4 sm:$0xff]  }
 0x3e6   :  { %3817 = vmatprep.subr.bf16.mxu1 %v8669_v12  ;;  %v7309_v12 = vld [vmem:[%s9755_s2 + $0x128] ss:$24 sps:$4 sm:$0xff]  }
 0x3e7   :  { %6703 = vmatpush3.bf16.msra.mxu0 %v7304_v26 }
 0x3e8   :  { %6704 = vmatprep.subr.bf16.mxu0 %v9790_v28 }
 0x3e9   :  { %3818 = vmatpush1.bf16.msra.mxu1 %v8675_v36  ;;  %v7310_v36 = vld [vmem:[%s9755_s2 + $0x158] ss:$24 sps:$4 sm:$0xff]  }
 0x3ea   :  { %3819 = vmatprep.subr.bf16.mxu1 %v8685_v48 }
 0x3ed   :  { %3820 = vmatpush1.bf16.msra.mxu1 %v8691_v2 }
 0x3ee   :  { %3821 = vmatprep.subr.bf16.mxu1 %v8706_v55 }
 0x3f1   :  { %3822 = vmatpush1.bf16.msra.mxu1 %v8701_v27 }
 0x3f2   :  { %3823 = vmatprep.subr.bf16.mxu1 %v8715_v62 }
 0x3f5   :  { %3824 = vmatpush1.bf16.msra.mxu1 %v8722_v35 }
 0x3f6   :  { %3825 = vmatprep.subr.bf16.mxu1 %v8732_v20 }
 0x3f9   :  { %3826 = vmatpush1.bf16.msra.mxu1 %v8738_v24 }
 0x3fa   :  { %3827 = vmatprep.subr.bf16.mxu1 %v8748_v42  ;;  %v7305_v42 = vld [vmem:[%s9755_s2 + $0x68] ss:$24 sps:$4 sm:$0xff]  }
 0x3fb   :  { %6705 = vmatpush3.bf16.msra.mxu0 %v7305_v42 }
 0x3fc   :  { %6706 = vmatprep.subr.bf16.mxu0 %v9790_v28 }
 0x3fd   :  { %3828 = vmatpush1.bf16.msra.mxu1 %v8754_v41 }
 0x3fe   :  { %4055 = vmatprep.subr.bf16.mxu1 %v8766_v31 }
 0x3ff   :  { %6707 = vmatpush3.bf16.msra.mxu0 %v7306_v1 }
 0x400   :  { %6708 = vmatprep.subr.bf16.mxu0 %v9790_v28 }
 0x403   :  { %6709 = vmatpush3.bf16.msra.mxu0 %v7307_v33 }
 0x404   :  { %6710 = vmatprep.subr.bf16.mxu0 %v9790_v28 }
 0x407   :  { %6711 = vmatpush3.bf16.msra.mxu0 %v7308_v6  ;;  %v9794_v6 = vld [vmem:[#allocation29_spill] sm:$0xff] }
 0x408   :  { %6712 = vmatprep.subr.bf16.mxu0 %v9790_v28 }
 0x40b   :  { %6713 = vmatpush3.bf16.msra.mxu0 %v7309_v12 }
 0x40c   :  { %6714 = vmatprep.subr.bf16.mxu0 %v9790_v28 }
 0x40f   :  { %6715 = vmatpush3.bf16.msra.mxu0 %v7310_v36 }
 0x410   :  { %6720 = vmatprep.subr.bf16.mxu0 %v9790_v28 }
 0x471   :  { %v3307_v48 = vpop.f32.mrb[44].mxu1  ;;  %v3348_v2 = vpop.f32.mrb[52].mxu0 }
 0x472   :  { %v3596_v27 = vadd.f32 %v3307_v48, %v8488_v49  ;;  %v3309_v55 = vpop.f32.mrb[45].mxu1  ;;  %v6678_v62 = vpop.f32.mrb[53].mxu0  ;;  %v9105_v49 = vld [vmem:[%s9756_s3] ss:$0 sm:$0xff] }
 0x473   :  { %v3603_v35 = vadd.f32 %v3309_v55, %v8492_v54  ;;  %v3311_v20 = vpop.f32.mrb[46].mxu1  ;;  %v3351_v24 = vpop.f32.mrb[54].mxu0  ;;  %v3610_v16 = vadd.f32 %v9105_v49, %v3348_v2  ;;  %v9192_v55 = vld [vmem:[%s9755_s2] ss:$24 sps:$4 sm:$0xff]  }
 0x474   :  { %v6174_v41 = vmul.f32 -1.442695, %v3596_v27  ;;  %v3312_v31 = vpop.f32.mrb[47].mxu1  ;;  %v6679_v5 = vpop.f32.mrb[55].mxu0  ;;  %v7322_v62 = vld [vmem:[%s9755_s2 + $0x8] ss:$24 sps:$4 sm:$0xff]  }
 0x475   :  { %v6175_v59 = vmul.f32 -1.442695, %v3603_v35  ;;  %v9202_v35 = vld [vmem:[%s9755_s2 + $0x34] ss:$24 sps:$4 sm:$0xff]   ;;  %v9208_v20 = vld [vmem:[%s9755_s2 + $0x30] ss:$24 sps:$4 sm:$0xff]  }
 0x476   :  { %7475 = vpow2.f32 %v6174_v41  ;;  %v7326_v24 = vld [vmem:[%s9755_s2 + $0x38] ss:$24 sps:$4 sm:$0xff]   ;;  %v9218_v41 = vld [vmem:[%s9755_s2 + $0x64] ss:$24 sps:$4 sm:$0xff]   ;;  %v7330_v5 = vld [vmem:[%s9755_s2 + $0x68] ss:$24 sps:$4 sm:$0xff]  }
 0x477   :  { %7477 = vpow2.f32 %v6175_v59  ;;  %v9224_v31 = vld [vmem:[%s9755_s2 + $0x60] ss:$24 sps:$4 sm:$0xff]   ;;  %v9234_v59 = vld [vmem:[%s9755_s2 + $0x94] ss:$24 sps:$4 sm:$0xff]  }
 0x480   :  { %v7476_v14 = vpop.eup %7475 }
 0x481   :  { %v3600_v39 = vadd.f32 1.0, %v7476_v14  ;;  %v7478_v18 = vpop.eup %7477  ;;  %v9240_v14 = vld [vmem:[%s9755_s2 + $0x90] ss:$24 sps:$4 sm:$0xff]  }
 0x482   :  { %v3607_v52 = vadd.f32 1.0, %v7478_v18  ;;  %v9250_v18 = vld [vmem:[%s9755_s2 + $0xc0] ss:$24 sps:$4 sm:$0xff]  }
 0x483   :  { %7479 = vrcp.f32 %v3600_v39  ;;  %v7334_v39 = vld [vmem:[%s9755_s2 + $0x98] ss:$24 sps:$4 sm:$0xff]  }
 0x48d   :  { %v7480_v54 = vpop.eup %7479 }
 0x48e   :  { %v3611_v44 = vmul.f32 %v7480_v54, %v3610_v16  ;;  %v9255_v16 = vld [vmem:[%s9755_s2 + $0xc4] ss:$24 sps:$4 sm:$0xff]   ;;  %v7338_v54 = vld [vmem:[%s9755_s2 + $0xc8] ss:$24 sps:$4 sm:$0xff]  }
 0x490   :  { %v3612_v22 = vadd.f32 %v3611_v44, %v8490_v51  ;;  %v9264_v44 = vld [vmem:[%s9755_s2 + $0xf4] ss:$24 sps:$4 sm:$0xff]  }
 0x492   :  { %7481 = vtanh.f32 %v3612_v22  ;;  %v9271_v22 = vld [vmem:[%s9755_s2 + $0xf0] ss:$24 sps:$4 sm:$0xff]  }
 0x493   :  { %7483 = vrcp.f32 %v3607_v52  ;;  %v7342_v52 = vld [vmem:[%s9755_s2 + $0xf8] ss:$24 sps:$4 sm:$0xff]  }
 0x49c   :  { %v7482_v29 = vpop.eup %7481 }
 0x49d   :  { %v3614_v21 = vsub.f32 %v8977_v45, %v7482_v29  ;;  %v7484_v9 = vpop.eup %7483  ;;  %v7312_v45 = vld [vmem:[%s9755_s2 + $0x1c4] ss:$24 sps:$4 sm:$0xff]  }
 0x49f   :  { %v3615_v25 = vmul.f32 %v7484_v9, %v3614_v21  ;;  %v9287_v21 = vld [vmem:[%s9755_s2 + $0x120] ss:$24 sps:$4 sm:$0xff]  }
 0x4a0   :  { %v7346_v9 = vld [vmem:[%s9755_s2 + $0x128] ss:$24 sps:$4 sm:$0xff]  }
 0x4a1   :  { %v9110_v40 = vadd.f32 %v7482_v29, %v3615_v25  ;;  %v9281_v29 = vld [vmem:[%s9755_s2 + $0x124] ss:$24 sps:$4 sm:$0xff]   ;;  %v9297_v25 = vld [vmem:[%s9755_s2 + $0x154] ss:$24 sps:$4 sm:$0xff]  }
 0x4a3   :  { %6178 = vst [vmem:[%s9757_s4 + $0x30] sm:$0xff] %v9110_v40  ;;  %v3652_v51 = vpack.c.bf16 %v9110_v40, %v9110_v40 }
 0x4a5   :  { %3846 = vmatmul.mubr.bf16.vlgmr.msra.gmra.mrb[52].mxu1 %v3652_v51  ;;  %6717 = vmatmul.mubr.bf16.vlgmr.msra.gmra.mrb[60].mxu0 %v3652_v51  ;;  %v7350_v51 = vld [vmem:[%s9755_s2 + $0x158] ss:$24 sps:$4 sm:$0xff]  }
 0x4a6   :  { %4056 = vmatpush1.bf16.msra.mxu1 %v8779_v13  ;;  %6721 = vmatpush3.bf16.msra.mxu0 %v7311_v10  ;;  %v7313_v13 = vld [vmem:[%s9755_s2 + $0x1f4] ss:$24 sps:$4 sm:$0xff]   ;;  %v9303_v10 = vld [vmem:[%s9755_s2 + $0x150] ss:$24 sps:$4 sm:$0xff]  }
 0x4a7   :  { %4057 = vmatprep.subr.bf16.mxu1 %v8793_v46  ;;  %6722 = vmatprep.subr.bf16.mxu0 %v9790_v28  ;;  %v7314_v46 = vld [vmem:[%s9755_s2 + $0x224] ss:$24 sps:$4 sm:$0xff]  }
 0x4a8   :  { %4087 = vmatprep.mubr.bf16.mxu1 %v9791_v7  ;;  %6736 = vmatprep.mubr.msk.bf16.mxu0 %vm7580_vm0, %v9790_v28 }
 0x4aa   :  { %4058 = vmatpush1.bf16.msra.mxu1 %v8799_v17  ;;  %6723 = vmatpush3.bf16.msra.mxu0 %v7312_v45  ;;  %v7315_v17 = vld [vmem:[%s9755_s2 + $0x254] ss:$24 sps:$4 sm:$0xff]   ;;  %v9315_v45 = vld [vmem:[%s9755_s2 + $0x190] ss:$24 sps:$4 sm:$0xff]  }
 0x4ab   :  { %4059 = vmatprep.subr.bf16.mxu1 %v8809_v53  ;;  %6724 = vmatprep.subr.bf16.mxu0 %v9790_v28 }
 0x4ae   :  { %4060 = vmatpush1.bf16.msra.mxu1 %v8818_v37  ;;  %6725 = vmatpush3.bf16.msra.mxu0 %v7313_v13 }
 0x4af   :  { %4061 = vmatprep.subr.bf16.mxu1 %v8828_v15  ;;  %6726 = vmatprep.subr.bf16.mxu0 %v9790_v28  ;;  %v9793_v15 = vld [vmem:[#allocation28_spill] sm:$0xff] }
 0x4b2   :  { %4062 = vmatpush1.bf16.msra.mxu1 %v8834_v0  ;;  %6727 = vmatpush3.bf16.msra.mxu0 %v7314_v46  ;;  %v7316_v0 = vld [vmem:[%s9755_s2 + $0x284] ss:$24 sps:$4 sm:$0xff]  }
 0x4b3   :  { %4063 = vmatprep.subr.bf16.mxu1 %v8844_v23  ;;  %6728 = vmatprep.subr.bf16.mxu0 %v9790_v28  ;;  %v3549_v53 = vpop.f32.mrb[48].mxu1  ;;  %v3590_v37 = vpop.f32.mrb[56].mxu0 }
 0x4b4   :  { %v3617_v32 = vadd.f32 %v3549_v53, %v9792_v57  ;;  %v3551_v11 = vpop.f32.mrb[49].mxu1  ;;  %v6698_v56 = vpop.f32.mrb[57].mxu0  ;;  %v3631_v42 = vadd.f32 %v8621_v34, %v3590_v37 }
 0x4b5   :  { %v3624_v63 = vadd.f32 %v3551_v11, %v9793_v15  ;;  %v3553_v4 = vpop.f32.mrb[50].mxu1  ;;  %v3593_v61 = vpop.f32.mrb[58].mxu0 }
 0x4b6   :  { %4064 = vmatpush1.bf16.msra.mxu1 %v8850_v60  ;;  %6729 = vmatpush3.bf16.msra.mxu0 %v7315_v17  ;;  %v6176_v23 = vmul.f32 -1.442695, %v3617_v32  ;;  %v3554_v58 = vpop.f32.mrb[51].mxu1  ;;  %v6699_v47 = vpop.f32.mrb[59].mxu0  ;;  %v7317_v60 = vld [vmem:[%s9755_s2 + $0x2b4] ss:$24 sps:$4 sm:$0xff]  }
 0x4b7   :  { %4065 = vmatprep.subr.bf16.mxu1 %v8860_v38  ;;  %6730 = vmatprep.subr.bf16.mxu0 %v9790_v28  ;;  %v7318_v38 = vld [vmem:[%s9755_s2 + $0x2e4] ss:$24 sps:$4 sm:$0xff]   ;;  %v9796_v32 = vld [vmem:[#allocation9_spill] sm:$0xff] }
 0x4b8   :  { %7485 = vpow2.f32 %v6176_v23  ;;  %v9795_v17 = vld [vmem:[#allocation7_spill] sm:$0xff] }
 0x4ba   :  { %4066 = vmatpush1.bf16.msra.mxu1 %v8868_v3  ;;  %6731 = vmatpush3.bf16.msra.mxu0 %v7316_v0  ;;  %v6177_v3 = vmul.f32 -1.442695, %v3624_v63 }
 0x4bb   :  { %4067 = vmatprep.subr.bf16.mxu1 %v8878_v8  ;;  %6732 = vmatprep.subr.bf16.mxu0 %v9790_v28 }
 0x4bc   :  { %7487 = vpow2.f32 %v6177_v3 }
 0x4be   :  { %4068 = vmatpush1.bf16.msra.mxu1 %v8884_v30  ;;  %6733 = vmatpush3.bf16.msra.mxu0 %v7317_v60 }
 0x4bf   :  { %4069 = vmatprep.subr.bf16.mxu1 %v8894_v43  ;;  %6734 = vmatprep.subr.bf16.mxu0 %v9790_v28 }
 0x4c2   :  { %4070 = vmatpush1.bf16.msra.mxu1 %v8900_v19  ;;  %6735 = vmatpush3.bf16.msra.mxu0 %v7318_v38  ;;  %v7486_v26 = vpop.eup %7485 }
 0x4c3   :  { %6740 = vmatprep.subr.bf16.mxu0 %v9790_v28  ;;  %v3621_v8 = vadd.f32 1.0, %v7486_v26  ;;  %v9797_v26 = vld [vmem:[#allocation8_spill] sm:$0xff] }
 0x4c5   :  { %7489 = vrcp.f32 %v3621_v8 }
 0x4c6   :  { %v7488_v30 = vpop.eup %7487 }
 0x4c7   :  { %v3628_v43 = vadd.f32 1.0, %v7488_v30 }
 0x4cf   :  { %v7490_v1 = vpop.eup %7489 }
 0x4d0   :  { %v3632_v33 = vmul.f32 %v7490_v1, %v3631_v42 }
 0x4d2   :  { %v3633_v12 = vadd.f32 %v3632_v33, %v9794_v6 }
 0x4d4   :  { %7491 = vtanh.f32 %v3633_v12 }
 0x4d5   :  { %7493 = vrcp.f32 %v3628_v43  ;;  %v9328_v43 = vld [vmem:[%s9755_s2 + $0x18c] ss:$24 sps:$4 sm:$0xff]  }
 0x4de   :  { %v7492_v36 = vpop.eup %7491 }
 0x4df   :  { %v3635_v19 = vsub.f32 %v9041_v50, %v7492_v36  ;;  %v7494_v48 = vpop.eup %7493  ;;  %v9187_v50 = vld [vmem:[%s9755_s2 + $0x4] ss:$24 sps:$4 sm:$0xff]  }
 0x4e0   :  { %4347 = vmatprep.subr.bf16.mxu1 %v9187_v50 }
 0x4e1   :  { %v3636_v2 = vmul.f32 %v7494_v48, %v3635_v19  ;;  %v9342_v19 = vld [vmem:[%s9755_s2 + $0x1c0] ss:$24 sps:$4 sm:$0xff]   ;;  %v9348_v48 = vld [vmem:[%s9755_s2 + $0x1bc] ss:$24 sps:$4 sm:$0xff]  }
 0x4e3   :  { %v9173_v27 = vadd.f32 %v7492_v36, %v3636_v2  ;;  %v7354_v36 = vld [vmem:[%s9755_s2 + $0x194] ss:$24 sps:$4 sm:$0xff]   ;;  %v7358_v2 = vld [vmem:[%s9755_s2 + $0x1c4] ss:$24 sps:$4 sm:$0xff]  }
 0x4e5   :  { %6179 = vst [vmem:[%s9757_s4 + $0x48] sm:$0xff] %v9173_v27  ;;  %v3894_v34 = vpack.c.bf16 %v9173_v27, %v9173_v27 }
 0x4e7   :  { %4088 = vmatmul.mubr.bf16.vlgmr.msra.gmra.mrb[56].mxu1 %v3894_v34  ;;  %6737 = vmatmul.mubr.bf16.vlgmr.msra.gmra.mrb[64].mxu0 %v3894_v34  ;;  %v9358_v34 = vld [vmem:[%s9755_s2 + $0x1f0] ss:$24 sps:$4 sm:$0xff]  }
 0x4e8   :  { %4379 = vmatprep.mubr.bf16.mxu1 %v9791_v7  ;;  %6756 = vmatprep.mubr.msk.bf16.mxu0 %vm7580_vm0, %v9790_v28 }
 0x4e9   :  { %4348 = vmatpush1.bf16.msra.mxu1 %v9192_v55  ;;  %6741 = vmatpush3.bf16.msra.mxu0 %v7322_v62  ;;  %v9367_v62 = vld [vmem:[%s9755_s2 + $0x1ec] ss:$24 sps:$4 sm:$0xff]  }
 0x4ea   :  { %6742 = vmatprep.subr.bf16.mxu0 %v9790_v28  ;;  %4349 = vmatprep.subr.bf16.mxu1 %v9202_v35 }
 0x4ed   :  { %4350 = vmatpush1.bf16.msra.mxu1 %v9208_v20  ;;  %6743 = vmatpush3.bf16.msra.mxu0 %v7326_v24  ;;  %v7362_v24 = vld [vmem:[%s9755_s2 + $0x1f4] ss:$24 sps:$4 sm:$0xff]  }
 0x4ee   :  { %6744 = vmatprep.subr.bf16.mxu0 %v9790_v28  ;;  %4351 = vmatprep.subr.bf16.mxu1 %v9218_v41 }
 0x4f1   :  { %4352 = vmatpush1.bf16.msra.mxu1 %v9224_v31  ;;  %6745 = vmatpush3.bf16.msra.mxu0 %v7330_v5  ;;  %v9377_v5 = vld [vmem:[%s9755_s2 + $0x220] ss:$24 sps:$4 sm:$0xff]  }
 0x4f2   :  { %6746 = vmatprep.subr.bf16.mxu0 %v9790_v28  ;;  %4353 = vmatprep.subr.bf16.mxu1 %v9234_v59 }
 0x4f5   :  { %4354 = vmatpush1.bf16.msra.mxu1 %v9240_v14  ;;  %6747 = vmatpush3.bf16.msra.mxu0 %v7334_v39  ;;  %v9383_v39 = vld [vmem:[%s9755_s2 + $0x21c] ss:$24 sps:$4 sm:$0xff]  }
 0x4f6   :  { %6748 = vmatprep.subr.bf16.mxu0 %v9790_v28  ;;  %4355 = vmatprep.subr.bf16.mxu1 %v9255_v16 }
 0x4f9   :  { %4356 = vmatpush1.bf16.msra.mxu1 %v9250_v18  ;;  %6749 = vmatpush3.bf16.msra.mxu0 %v7338_v54  ;;  %v7366_v54 = vld [vmem:[%s9755_s2 + $0x224] ss:$24 sps:$4 sm:$0xff]  }
 0x4fa   :  { %4357 = vmatprep.subr.bf16.mxu1 %v9264_v44  ;;  %6750 = vmatprep.subr.bf16.mxu0 %v9790_v28 }
 0x4fd   :  { %4358 = vmatpush1.bf16.msra.mxu1 %v9271_v22  ;;  %6751 = vmatpush3.bf16.msra.mxu0 %v7342_v52  ;;  %v9393_v52 = vld [vmem:[%s9755_s2 + $0x250] ss:$24 sps:$4 sm:$0xff]  }
 0x4fe   :  { %4359 = vmatprep.subr.bf16.mxu1 %v9281_v29  ;;  %6752 = vmatprep.subr.bf16.mxu0 %v9790_v28 }
 0x501   :  { %4360 = vmatpush1.bf16.msra.mxu1 %v9287_v21  ;;  %6753 = vmatpush3.bf16.msra.mxu0 %v7346_v9  ;;  %v9399_v9 = vld [vmem:[%s9755_s2 + $0x24c] ss:$24 sps:$4 sm:$0xff]  }
 0x502   :  { %4361 = vmatprep.subr.bf16.mxu1 %v9297_v25  ;;  %6754 = vmatprep.subr.bf16.mxu0 %v9790_v28 }
 0x505   :  { %4362 = vmatpush1.bf16.msra.mxu1 %v9303_v10  ;;  %6755 = vmatpush3.bf16.msra.mxu0 %v7350_v51  ;;  %v7370_v51 = vld [vmem:[%s9755_s2 + $0x254] ss:$24 sps:$4 sm:$0xff]  }
 0x506   :  { %6760 = vmatprep.subr.bf16.mxu0 %v9790_v28  ;;  %4589 = vmatprep.subr.bf16.mxu1 %v9315_v45 }
 0x578   :  { %v3847_v13 = vpop.f32.mrb[52].mxu1  ;;  %v3888_v46 = vpop.f32.mrb[60].mxu0 }
 0x579   :  { %v4136_v53 = vadd.f32 %v3847_v13, %v9795_v17  ;;  %v3849_v37 = vpop.f32.mrb[53].mxu1  ;;  %v6718_v57 = vpop.f32.mrb[61].mxu0  ;;  %v4150_v60 = vadd.f32 %v9105_v49, %v3888_v46  ;;  %v9409_v13 = vld [vmem:[%s9755_s2 + $0x280] ss:$24 sps:$4 sm:$0xff]  }
 0x57a   :  { %v4143_v11 = vadd.f32 %v3849_v37, %v9796_v32  ;;  %v3851_v56 = vpop.f32.mrb[54].mxu1  ;;  %v3891_v15 = vpop.f32.mrb[62].mxu0 }
 0x57b   :  { %v6228_v63 = vmul.f32 -1.442695, %v4136_v53  ;;  %v3852_v4 = vpop.f32.mrb[55].mxu1  ;;  %v6719_v61 = vpop.f32.mrb[63].mxu0  ;;  %v9798_v53 = vld [vmem:[#allocation6_spill] sm:$0xff] }
 0x57c   :  { %v6229_v0 = vmul.f32 -1.442695, %v4143_v11  ;;  %v9799_v11 = vld [vmem:[#allocation26_spill] sm:$0xff] }
 0x57d   :  { %7495 = vpow2.f32 %v6228_v63  ;;  %v9417_v4 = vld [vmem:[%s9755_s2 + $0x27c] ss:$24 sps:$4 sm:$0xff]  }
 0x57e   :  { %7497 = vpow2.f32 %v6229_v0  ;;  %v7374_v61 = vld [vmem:[%s9755_s2 + $0x284] ss:$24 sps:$4 sm:$0xff]  }
 0x587   :  { %v7496_v23 = vpop.eup %7495 }
 0x588   :  { %v4140_v58 = vadd.f32 1.0, %v7496_v23  ;;  %v7498_v47 = vpop.eup %7497 }
 0x589   :  { %v4147_v30 = vadd.f32 1.0, %v7498_v47  ;;  %v9427_v47 = vld [vmem:[%s9755_s2 + $0x2b0] ss:$24 sps:$4 sm:$0xff]  }
 0x58a   :  { %7499 = vrcp.f32 %v4140_v58 }
 0x594   :  { %v7500_v38 = vpop.eup %7499 }
 0x595   :  { %v4151_v3 = vmul.f32 %v7500_v38, %v4150_v60  ;;  %v9433_v60 = vld [vmem:[%s9755_s2 + $0x2ac] ss:$24 sps:$4 sm:$0xff]  }
 0x596   :  { %v7378_v38 = vld [vmem:[%s9755_s2 + $0x2b4] ss:$24 sps:$4 sm:$0xff]  }
 0x597   :  { %v4152_v8 = vadd.f32 %v4151_v3, %v9797_v26  ;;  %v9443_v3 = vld [vmem:[%s9755_s2 + $0x2e0] ss:$24 sps:$4 sm:$0xff]   ;;  %v9449_v26 = vld [vmem:[%s9755_s2 + $0x2dc] ss:$24 sps:$4 sm:$0xff]  }
 0x599   :  { %7501 = vtanh.f32 %v4152_v8  ;;  %v7382_v8 = vld [vmem:[%s9755_s2 + $0x2e4] ss:$24 sps:$4 sm:$0xff]  }
 0x59a   :  { %7503 = vrcp.f32 %v4147_v30 }
 0x5a3   :  { %v7502_v42 = vpop.eup %7501 }
 0x5a4   :  { %v4154_v1 = vsub.f32 %v9110_v40, %v7502_v42  ;;  %v7504_v33 = vpop.eup %7503 }
 0x5a6   :  { %v4155_v6 = vmul.f32 %v7504_v33, %v4154_v1 }
 0x5a8   :  { %v9323_v12 = vadd.f32 %v7502_v42, %v4155_v6  ;;  %v9462_v6 = vld [vmem:[%s9756_s3 + $0x1] ss:$0 sm:$0xff] }
 0x5aa   :  { %6232 = vst [vmem:[%s9757_s4 + $0x40] sm:$0xff] %v9323_v12  ;;  %v4186_v40 = vpack.c.bf16 %v9323_v12, %v9323_v12 }
 0x5ac   :  { %4380 = vmatmul.mubr.bf16.vlgmr.msra.gmra.mrb[60].mxu1 %v4186_v40  ;;  %6757 = vmatmul.mubr.bf16.vlgmr.msra.gmra.mrb[68].mxu0 %v4186_v40 }
 0x5ad   :  { %4590 = vmatpush1.bf16.msra.mxu1 %v9328_v43  ;;  %6761 = vmatpush3.bf16.msra.mxu0 %v7354_v36 }
 0x5ae   :  { %4591 = vmatprep.subr.bf16.mxu1 %v9342_v19  ;;  %6762 = vmatprep.subr.bf16.mxu0 %v9790_v28 }
 0x5af   :  { %4621 = vmatprep.mubr.bf16.mxu1 %v9791_v7  ;;  %6776 = vmatprep.mubr.msk.bf16.mxu0 %vm7580_vm0, %v9790_v28 }
 0x5b1   :  { %4592 = vmatpush1.bf16.msra.mxu1 %v9348_v48  ;;  %6763 = vmatpush3.bf16.msra.mxu0 %v7358_v2 }
 0x5b2   :  { %4593 = vmatprep.subr.bf16.mxu1 %v9358_v34  ;;  %6764 = vmatprep.subr.bf16.mxu0 %v9790_v28 }
 0x5b5   :  { %4594 = vmatpush1.bf16.msra.mxu1 %v9367_v62  ;;  %6765 = vmatpush3.bf16.msra.mxu0 %v7362_v24  ;;  %v9800_v24 = vld [vmem:[#allocation27_spill] sm:$0xff] }
 0x5b6   :  { %4595 = vmatprep.subr.bf16.mxu1 %v9377_v5  ;;  %6766 = vmatprep.subr.bf16.mxu0 %v9790_v28 }
 0x5b9   :  { %4596 = vmatpush1.bf16.msra.mxu1 %v9383_v39  ;;  %6767 = vmatpush3.bf16.msra.mxu0 %v7366_v54 }
 0x5ba   :  { %4597 = vmatprep.subr.bf16.mxu1 %v9393_v52  ;;  %6768 = vmatprep.subr.bf16.mxu0 %v9790_v28  ;;  %v4089_v46 = vpop.f32.mrb[56].mxu1  ;;  %v4130_v17 = vpop.f32.mrb[64].mxu0 }
 0x5bb   :  { %v4157_v37 = vadd.f32 %v4089_v46, %v9798_v53  ;;  %v4091_v57 = vpop.f32.mrb[57].mxu1  ;;  %v6738_v32 = vpop.f32.mrb[65].mxu0  ;;  %v4171_v36 = vadd.f32 %v9462_v6, %v4130_v17 }
 0x5bc   :  { %v4164_v56 = vadd.f32 %v4091_v57, %v9799_v11  ;;  %v4093_v15 = vpop.f32.mrb[58].mxu1  ;;  %v4133_v63 = vpop.f32.mrb[66].mxu0  ;;  %v7384_v11 = vld [vmem:[%s9755_s2 + $0x38] ss:$24 sps:$4 sm:$0xff]  }
 0x5bd   :  { %4598 = vmatpush1.bf16.msra.mxu1 %v9399_v9  ;;  %6769 = vmatpush3.bf16.msra.mxu0 %v7370_v51  ;;  %v6230_v0 = vmul.f32 -1.442695, %v4157_v37  ;;  %v4094_v23 = vpop.f32.mrb[59].mxu1  ;;  %v6739_v58 = vpop.f32.mrb[67].mxu0  ;;  %v7386_v15 = vld [vmem:[%s9755_s2 + $0x98] ss:$24 sps:$4 sm:$0xff]  }
 0x5be   :  { %4599 = vmatprep.subr.bf16.mxu1 %v9409_v13  ;;  %6770 = vmatprep.subr.bf16.mxu0 %v9790_v28  ;;  %v6231_v30 = vmul.f32 -1.442695, %v4164_v56  ;;  %v7385_v56 = vld [vmem:[%s9755_s2 + $0x68] ss:$24 sps:$4 sm:$0xff]   ;;  %v7390_v23 = vld [vmem:[%s9755_s2 + $0x158] ss:$24 sps:$4 sm:$0xff]  }
 0x5bf   :  { %7505 = vpow2.f32 %v6230_v0  ;;  %v7387_v63 = vld [vmem:[%s9755_s2 + $0xc8] ss:$24 sps:$4 sm:$0xff]  }
 0x5c0   :  { %7507 = vpow2.f32 %v6231_v30  ;;  %v7389_v0 = vld [vmem:[%s9755_s2 + $0x128] ss:$24 sps:$4 sm:$0xff]  }
 0x5c1   :  { %4600 = vmatpush1.bf16.msra.mxu1 %v9417_v4  ;;  %6771 = vmatpush3.bf16.msra.mxu0 %v7374_v61  ;;  %v7388_v61 = vld [vmem:[%s9755_s2 + $0xf8] ss:$24 sps:$4 sm:$0xff]  }
 0x5c2   :  { %4601 = vmatprep.subr.bf16.mxu1 %v9427_v47  ;;  %6772 = vmatprep.subr.bf16.mxu0 %v9790_v28 }
 0x5c5   :  { %4602 = vmatpush1.bf16.msra.mxu1 %v9433_v60  ;;  %6773 = vmatpush3.bf16.msra.mxu0 %v7378_v38 }
 0x5c6   :  { %4603 = vmatprep.subr.bf16.mxu1 %v9443_v3  ;;  %6774 = vmatprep.subr.bf16.mxu0 %v9790_v28 }
 0x5c9   :  { %4604 = vmatpush1.bf16.msra.mxu1 %v9449_v26  ;;  %6775 = vmatpush3.bf16.msra.mxu0 %v7382_v8  ;;  %v7506_v42 = vpop.eup %7505  ;;  %v9801_v8 = vld [vmem:[#allocation11_spill] sm:$0xff] }
 0x5ca   :  { %4881 = vmatprep.subr.bf16.mxu1 %v9187_v50  ;;  %6780 = vmatprep.subr.bf16.mxu0 %v9790_v28  ;;  %v4161_v1 = vadd.f32 1.0, %v7506_v42  ;;  %v7508_v33 = vpop.eup %7507 }
 0x5cb   :  { %v4168_v51 = vadd.f32 1.0, %v7508_v33  ;;  %v9802_v33 = vld [vmem:[#allocation13_spill] sm:$0xff] }
 0x5cc   :  { %7509 = vrcp.f32 %v4161_v1 }
 0x5d6   :  { %v7510_v40 = vpop.eup %7509 }
 0x5d7   :  { %v4172_v2 = vmul.f32 %v7510_v40, %v4171_v36 }
 0x5d9   :  { %v4173_v54 = vadd.f32 %v4172_v2, %v9800_v24 }
 0x5db   :  { %7511 = vtanh.f32 %v4173_v54 }
 0x5dc   :  { %7513 = vrcp.f32 %v4168_v51 }
 0x5e5   :  { %v7512_v46 = vpop.eup %7511 }
 0x5e6   :  { %v4175_v53 = vsub.f32 %v9173_v27, %v7512_v46  ;;  %v7514_v37 = vpop.eup %7513  ;;  %v7383_v27 = vld [vmem:[%s9755_s2 + $0x8] ss:$24 sps:$4 sm:$0xff]  }
 0x5e8   :  { %v4176_v57 = vmul.f32 %v7514_v37, %v4175_v53 }
 0x5ea   :  { %v9467_v32 = vadd.f32 %v7512_v46, %v4176_v57 }
 0x5ec   :  { %6233 = vst [vmem:[%s9757_s4 + $0x38] sm:$0xff] %v9467_v32  ;;  %v4428_v17 = vpack.c.bf16 %v9467_v32, %v9467_v32 }
 0x5ee   :  { %4622 = vmatmul.mubr.bf16.vlgmr.msra.gmra.mrb[64].mxu1 %v4428_v17  ;;  %6777 = vmatmul.mubr.bf16.vlgmr.msra.gmra.mrb[72].mxu0 %v4428_v17 }
 0x5ef   :  { %4882 = vmatpush1.bf16.msra.mxu1 %v9192_v55  ;;  %4913 = vmatprep.mubr.bf16.mxu1 %v9791_v7 }
 0x5f0   :  { %4883 = vmatprep.subr.bf16.mxu1 %v9202_v35  ;;  %6796 = vmatprep.mubr.msk.bf16.mxu0 %vm7580_vm0, %v9790_v28 }
 0x5f1   :  { %6781 = vmatpush3.bf16.msra.mxu0 %v7383_v27 }
 0x5f2   :  { %6782 = vmatprep.subr.bf16.mxu0 %v9790_v28 }
 0x5f3   :  { %4884 = vmatpush1.bf16.msra.mxu1 %v9208_v20 }
 0x5f4   :  { %4885 = vmatprep.subr.bf16.mxu1 %v9218_v41 }
 0x5f5   :  { %6783 = vmatpush3.bf16.msra.mxu0 %v7384_v11 }
 0x5f6   :  { %6784 = vmatprep.subr.bf16.mxu0 %v9790_v28 }
 0x5f7   :  { %4886 = vmatpush1.bf16.msra.mxu1 %v9224_v31 }
 0x5f8   :  { %4887 = vmatprep.subr.bf16.mxu1 %v9234_v59 }
 0x5f9   :  { %6785 = vmatpush3.bf16.msra.mxu0 %v7385_v56  ;;  %v9803_v56 = vld [vmem:[#allocation12_spill] sm:$0xff] }
 0x5fa   :  { %6786 = vmatprep.subr.bf16.mxu0 %v9790_v28 }
 0x5fb   :  { %4888 = vmatpush1.bf16.msra.mxu1 %v9240_v14 }
 0x5fc   :  { %4889 = vmatprep.subr.bf16.mxu1 %v9255_v16 }
 0x5fd   :  { %6787 = vmatpush3.bf16.msra.mxu0 %v7386_v15 }
 0x5fe   :  { %6788 = vmatprep.subr.bf16.mxu0 %v9790_v28 }
 0x5ff   :  { %4890 = vmatpush1.bf16.msra.mxu1 %v9250_v18 }
 0x600   :  { %4891 = vmatprep.subr.bf16.mxu1 %v9264_v44 }
 0x601   :  { %6789 = vmatpush3.bf16.msra.mxu0 %v7387_v63 }
 0x602   :  { %6790 = vmatprep.subr.bf16.mxu0 %v9790_v28 }
 0x603   :  { %4892 = vmatpush1.bf16.msra.mxu1 %v9271_v22 }
 0x604   :  { %4893 = vmatprep.subr.bf16.mxu1 %v9281_v29 }
 0x605   :  { %6791 = vmatpush3.bf16.msra.mxu0 %v7388_v61 }
 0x606   :  { %6792 = vmatprep.subr.bf16.mxu0 %v9790_v28 }
 0x607   :  { %4894 = vmatpush1.bf16.msra.mxu1 %v9287_v21 }
 0x608   :  { %4895 = vmatprep.subr.bf16.mxu1 %v9297_v25 }
 0x609   :  { %6793 = vmatpush3.bf16.msra.mxu0 %v7389_v0 }
 0x60a   :  { %6794 = vmatprep.subr.bf16.mxu0 %v9790_v28 }
 0x60b   :  { %4896 = vmatpush1.bf16.msra.mxu1 %v9303_v10 }
 0x60c   :  { %5123 = vmatprep.subr.bf16.mxu1 %v9315_v45 }
 0x60d   :  { %6795 = vmatpush3.bf16.msra.mxu0 %v7390_v23 }
 0x60e   :  { %6800 = vmatprep.subr.bf16.mxu0 %v9790_v28 }
 0x67f   :  { %v4381_v58 = vpop.f32.mrb[60].mxu1  ;;  %v4422_v38 = vpop.f32.mrb[68].mxu0 }
 0x680   :  { %v4670_v30 = vadd.f32 %v4381_v58, %v9801_v8  ;;  %v4383_v42 = vpop.f32.mrb[61].mxu1  ;;  %v6758_v1 = vpop.f32.mrb[69].mxu0  ;;  %v4684_v17 = vadd.f32 %v9105_v49, %v4422_v38 }
 0x681   :  { %v4677_v36 = vadd.f32 %v4383_v42, %v9802_v33  ;;  %v4385_v40 = vpop.f32.mrb[62].mxu1  ;;  %v4425_v2 = vpop.f32.mrb[70].mxu0  ;;  %v7393_v42 = vld [vmem:[%s9755_s2 + $0x1f4] ss:$24 sps:$4 sm:$0xff]   ;;  %v7394_v1 = vld [vmem:[%s9755_s2 + $0x224] ss:$24 sps:$4 sm:$0xff]  }
 0x682   :  { %v6282_v24 = vmul.f32 -1.442695, %v4670_v30  ;;  %v4386_v54 = vpop.f32.mrb[63].mxu1  ;;  %v6759_v51 = vpop.f32.mrb[71].mxu0  ;;  %v7391_v30 = vld [vmem:[%s9755_s2 + $0x194] ss:$24 sps:$4 sm:$0xff]  }
 0x683   :  { %v6283_v46 = vmul.f32 -1.442695, %v4677_v36  ;;  %v7395_v33 = vld [vmem:[%s9755_s2 + $0x254] ss:$24 sps:$4 sm:$0xff]  }
 0x684   :  { %7515 = vpow2.f32 %v6282_v24  ;;  %v9804_v2 = vld [vmem:[#allocation5_spill] sm:$0xff] }
 0x685   :  { %7517 = vpow2.f32 %v6283_v46  ;;  %v9805_v46 = vld [vmem:[#allocation24_spill] sm:$0xff] }
 0x68e   :  { %v7516_v53 = vpop.eup %7515 }
 0x68f   :  { %v4674_v37 = vadd.f32 1.0, %v7516_v53  ;;  %v7518_v57 = vpop.eup %7517 }
 0x690   :  { %v4681_v63 = vadd.f32 1.0, %v7518_v57 }
 0x691   :  { %7519 = vrcp.f32 %v4674_v37 }
 0x69b   :  { %v7520_v27 = vpop.eup %7519 }
 0x69c   :  { %v4685_v11 = vmul.f32 %v7520_v27, %v4684_v17  ;;  %v7396_v17 = vld [vmem:[%s9755_s2 + $0x284] ss:$24 sps:$4 sm:$0xff]  }
 0x69e   :  { %v4686_v15 = vadd.f32 %v4685_v11, %v9803_v56 }
 0x6a0   :  { %7521 = vtanh.f32 %v4686_v15  ;;  %v7397_v15 = vld [vmem:[%s9755_s2 + $0x2b4] ss:$24 sps:$4 sm:$0xff]  }
 0x6a1   :  { %7523 = vrcp.f32 %v4681_v63  ;;  %v7398_v63 = vld [vmem:[%s9755_s2 + $0x2e4] ss:$24 sps:$4 sm:$0xff]  }
 0x6aa   :  { %v7522_v61 = vpop.eup %7521 }
 0x6ab   :  { %v4688_v0 = vsub.f32 %v9323_v12, %v7522_v61  ;;  %v7524_v23 = vpop.eup %7523  ;;  %v7392_v12 = vld [vmem:[%s9755_s2 + $0x1c4] ss:$24 sps:$4 sm:$0xff]  }
 0x6ad   :  { %v4689_v58 = vmul.f32 %v7524_v23, %v4688_v0 }
 0x6af   :  { %v9531_v8 = vadd.f32 %v7522_v61, %v4689_v58 }
 0x6b1   :  { %6286 = vst [vmem:[%s9757_s4 + $0x50] sm:$0xff] %v9531_v8  ;;  %v4720_v38 = vpack.c.bf16 %v9531_v8, %v9531_v8 }
 0x6b3   :  { %4914 = vmatmul.mubr.bf16.vlgmr.msra.gmra.mrb[68].mxu1 %v4720_v38  ;;  %6797 = vmatmul.mubr.bf16.vlgmr.msra.gmra.mrb[76].mxu0 %v4720_v38 }
 0x6b4   :  { %5124 = vmatpush1.bf16.msra.mxu1 %v9328_v43  ;;  %6801 = vmatpush3.bf16.msra.mxu0 %v7391_v30 }
 0x6b5   :  { %5125 = vmatprep.subr.bf16.mxu1 %v9342_v19  ;;  %6802 = vmatprep.subr.bf16.mxu0 %v9790_v28 }
 0x6b6   :  { %5155 = vmatprep.mubr.bf16.mxu1 %v9791_v7  ;;  %6816 = vmatprep.mubr.msk.bf16.mxu0 %vm7580_vm0, %v9790_v28 }
 0x6b8   :  { %5126 = vmatpush1.bf16.msra.mxu1 %v9348_v48  ;;  %6803 = vmatpush3.bf16.msra.mxu0 %v7392_v12 }
 0x6b9   :  { %5127 = vmatprep.subr.bf16.mxu1 %v9358_v34  ;;  %6804 = vmatprep.subr.bf16.mxu0 %v9790_v28 }
 0x6bc   :  { %5128 = vmatpush1.bf16.msra.mxu1 %v9367_v62  ;;  %6805 = vmatpush3.bf16.msra.mxu0 %v7393_v42  ;;  %v9806_v42 = vld [vmem:[#allocation25_spill] sm:$0xff] }
 0x6bd   :  { %5129 = vmatprep.subr.bf16.mxu1 %v9377_v5  ;;  %6806 = vmatprep.subr.bf16.mxu0 %v9790_v28 }
 0x6c0   :  { %5130 = vmatpush1.bf16.msra.mxu1 %v9383_v39  ;;  %6807 = vmatpush3.bf16.msra.mxu0 %v7394_v1 }
 0x6c1   :  { %5131 = vmatprep.subr.bf16.mxu1 %v9393_v52  ;;  %6808 = vmatprep.subr.bf16.mxu0 %v9790_v28  ;;  %v4623_v36 = vpop.f32.mrb[64].mxu1  ;;  %v4664_v40 = vpop.f32.mrb[72].mxu0 }
 0x6c2   :  { %v4691_v24 = vadd.f32 %v4623_v36, %v9804_v2  ;;  %v4625_v54 = vpop.f32.mrb[65].mxu1  ;;  %v6778_v51 = vpop.f32.mrb[73].mxu0  ;;  %v4705_v30 = vadd.f32 %v9462_v6, %v4664_v40 }
 0x6c3   :  { %v4698_v53 = vadd.f32 %v4625_v54, %v9805_v46  ;;  %v4627_v37 = vpop.f32.mrb[66].mxu1  ;;  %v4667_v57 = vpop.f32.mrb[74].mxu0 }
 0x6c4   :  { %5132 = vmatpush1.bf16.msra.mxu1 %v9399_v9  ;;  %6809 = vmatpush3.bf16.msra.mxu0 %v7395_v33  ;;  %v6284_v27 = vmul.f32 -1.442695, %v4691_v24  ;;  %v4628_v11 = vpop.f32.mrb[67].mxu1  ;;  %v6779_v56 = vpop.f32.mrb[75].mxu0 }
 0x6c5   :  { %5133 = vmatprep.subr.bf16.mxu1 %v9409_v13  ;;  %6810 = vmatprep.subr.bf16.mxu0 %v9790_v28  ;;  %v6285_v61 = vmul.f32 -1.442695, %v4698_v53 }
 0x6c6   :  { %7525 = vpow2.f32 %v6284_v27 }
 0x6c7   :  { %7527 = vpow2.f32 %v6285_v61  ;;  %v9809_v61 = vld [vmem:[#allocation15_spill] sm:$0xff] }
 0x6c8   :  { %5134 = vmatpush1.bf16.msra.mxu1 %v9417_v4  ;;  %6811 = vmatpush3.bf16.msra.mxu0 %v7396_v17 }
 0x6c9   :  { %5135 = vmatprep.subr.bf16.mxu1 %v9427_v47  ;;  %6812 = vmatprep.subr.bf16.mxu0 %v9790_v28 }
 0x6cc   :  { %5136 = vmatpush1.bf16.msra.mxu1 %v9433_v60  ;;  %6813 = vmatpush3.bf16.msra.mxu0 %v7397_v15 }
 0x6cd   :  { %5137 = vmatprep.subr.bf16.mxu1 %v9443_v3  ;;  %6814 = vmatprep.subr.bf16.mxu0 %v9790_v28 }
 0x6d0   :  { %5138 = vmatpush1.bf16.msra.mxu1 %v9449_v26  ;;  %6815 = vmatpush3.bf16.msra.mxu0 %v7398_v63  ;;  %v7526_v0 = vpop.eup %7525 }
 0x6d1   :  { %5415 = vmatprep.subr.bf16.mxu1 %v9187_v50  ;;  %6820 = vmatprep.subr.bf16.mxu0 %v9790_v28  ;;  %v4695_v23 = vadd.f32 1.0, %v7526_v0  ;;  %v7528_v58 = vpop.eup %7527 }
 0x6d2   :  { %v4702_v33 = vadd.f32 1.0, %v7528_v58 }
 0x6d3   :  { %7529 = vrcp.f32 %v4695_v23 }
 0x6dd   :  { %v7530_v38 = vpop.eup %7529 }
 0x6de   :  { %v4706_v12 = vmul.f32 %v7530_v38, %v4705_v30 }
 0x6e0   :  { %v4707_v1 = vadd.f32 %v4706_v12, %v9806_v42 }
 0x6e2   :  { %7531 = vtanh.f32 %v4707_v1  ;;  %v7407_v1 = vld [vmem:[%s9755_s2 + $0x194] ss:$24 sps:$4 sm:$0xff]  }
 0x6e3   :  { %7533 = vrcp.f32 %v4702_v33 }
 0x6ec   :  { %v7532_v36 = vpop.eup %7531 }
 0x6ed   :  { %v4709_v2 = vsub.f32 %v9467_v32, %v7532_v36  ;;  %v7534_v24 = vpop.eup %7533 }
 0x6ef   :  { %v4710_v50 = vmul.f32 %v7534_v24, %v4709_v2 }
 0x6f1   :  { %v9595_v54 = vadd.f32 %v7532_v36, %v4710_v50 }
 0x6f3   :  { %6287 = vst [vmem:[%s9757_s4 + $0x28] sm:$0xff] %v9595_v54  ;;  %v4962_v40 = vpack.c.bf16 %v9595_v54, %v9595_v54 }
 0x6f5   :  { %5156 = vmatmul.mubr.bf16.vlgmr.msra.gmra.mrb[72].mxu1 %v4962_v40  ;;  %6817 = vmatmul.mubr.bf16.vlgmr.msra.gmra.mrb[80].mxu0 %v4962_v40 }
 0x6f6   :  { %5416 = vmatpush1.bf16.msra.mxu1 %v9192_v55  ;;  %5447 = vmatprep.mubr.bf16.mxu1 %v9791_v7  ;;  %v7399_v55 = vld [vmem:[%s9755_s2 + $0x8] ss:$24 sps:$4 sm:$0xff]  }
 0x6f7   :  { %5417 = vmatprep.subr.bf16.mxu1 %v9202_v35  ;;  %6836 = vmatprep.mubr.msk.bf16.mxu0 %vm7580_vm0, %v9790_v28  ;;  %v7400_v35 = vld [vmem:[%s9755_s2 + $0x38] ss:$24 sps:$4 sm:$0xff]  }
 0x6f8   :  { %6821 = vmatpush3.bf16.msra.mxu0 %v7399_v55 }
 0x6f9   :  { %6822 = vmatprep.subr.bf16.mxu0 %v9790_v28 }
 0x6fa   :  { %5418 = vmatpush1.bf16.msra.mxu1 %v9208_v20  ;;  %v7401_v20 = vld [vmem:[%s9755_s2 + $0x68] ss:$24 sps:$4 sm:$0xff]  }
 0x6fb   :  { %5419 = vmatprep.subr.bf16.mxu1 %v9218_v41  ;;  %v7402_v41 = vld [vmem:[%s9755_s2 + $0x98] ss:$24 sps:$4 sm:$0xff]  }
 0x6fc   :  { %6823 = vmatpush3.bf16.msra.mxu0 %v7400_v35 }
 0x6fd   :  { %6824 = vmatprep.subr.bf16.mxu0 %v9790_v28 }
 0x6fe   :  { %5420 = vmatpush1.bf16.msra.mxu1 %v9224_v31  ;;  %v7403_v31 = vld [vmem:[%s9755_s2 + $0xc8] ss:$24 sps:$4 sm:$0xff]  }
 0x6ff   :  { %5421 = vmatprep.subr.bf16.mxu1 %v9234_v59  ;;  %v7404_v59 = vld [vmem:[%s9755_s2 + $0xf8] ss:$24 sps:$4 sm:$0xff]  }
 0x700   :  { %6825 = vmatpush3.bf16.msra.mxu0 %v7401_v20 }
 0x701   :  { %6826 = vmatprep.subr.bf16.mxu0 %v9790_v28 }
 0x702   :  { %5422 = vmatpush1.bf16.msra.mxu1 %v9240_v14  ;;  %v7405_v14 = vld [vmem:[%s9755_s2 + $0x128] ss:$24 sps:$4 sm:$0xff]  }
 0x703   :  { %5423 = vmatprep.subr.bf16.mxu1 %v9255_v16 }
 0x704   :  { %6827 = vmatpush3.bf16.msra.mxu0 %v7402_v41 }
 0x705   :  { %6828 = vmatprep.subr.bf16.mxu0 %v9790_v28 }
 0x706   :  { %5424 = vmatpush1.bf16.msra.mxu1 %v9250_v18  ;;  %v7406_v18 = vld [vmem:[%s9755_s2 + $0x158] ss:$24 sps:$4 sm:$0xff]  }
 0x707   :  { %5425 = vmatprep.subr.bf16.mxu1 %v9264_v44 }
 0x708   :  { %6829 = vmatpush3.bf16.msra.mxu0 %v7403_v31 }
 0x709   :  { %6830 = vmatprep.subr.bf16.mxu0 %v9790_v28 }
 0x70a   :  { %5426 = vmatpush1.bf16.msra.mxu1 %v9271_v22  ;;  %v9807_v22 = vld [vmem:[#allocation14_spill] sm:$0xff] }
 0x70b   :  { %5427 = vmatprep.subr.bf16.mxu1 %v9281_v29 }
 0x70c   :  { %6831 = vmatpush3.bf16.msra.mxu0 %v7404_v59 }
 0x70d   :  { %6832 = vmatprep.subr.bf16.mxu0 %v9790_v28 }
 0x70e   :  { %5428 = vmatpush1.bf16.msra.mxu1 %v9287_v21 }
 0x70f   :  { %5429 = vmatprep.subr.bf16.mxu1 %v9297_v25 }
 0x710   :  { %6833 = vmatpush3.bf16.msra.mxu0 %v7405_v14  ;;  %v9812_v14 = vld [vmem:[#allocation23_spill] sm:$0xff] }
 0x711   :  { %6834 = vmatprep.subr.bf16.mxu0 %v9790_v28 }
 0x712   :  { %5430 = vmatpush1.bf16.msra.mxu1 %v9303_v10  ;;  %v9808_v10 = vld [vmem:[#allocation16_spill] sm:$0xff] }
 0x713   :  { %5657 = vmatprep.subr.bf16.mxu1 %v9315_v45 }
 0x714   :  { %6835 = vmatpush3.bf16.msra.mxu0 %v7406_v18 }
 0x715   :  { %6840 = vmatprep.subr.bf16.mxu0 %v9790_v28 }
 0x786   :  { %v4915_v16 = vpop.f32.mrb[68].mxu1  ;;  %v4956_v44 = vpop.f32.mrb[76].mxu0 }
 0x787   :  { %v5204_v29 = vadd.f32 %v4915_v16, %v9807_v22  ;;  %v4917_v21 = vpop.f32.mrb[69].mxu1  ;;  %v6798_v25 = vpop.f32.mrb[77].mxu0  ;;  %v5218_v56 = vadd.f32 %v9105_v49, %v4956_v44 }
 0x788   :  { %v5211_v45 = vadd.f32 %v4917_v21, %v9808_v10  ;;  %v4919_v32 = vpop.f32.mrb[70].mxu1  ;;  %v4959_v51 = vpop.f32.mrb[78].mxu0  ;;  %v9813_v10 = vld [vmem:[#allocation17_spill] sm:$0xff] }
 0x789   :  { %v6336_v46 = vmul.f32 -1.442695, %v5204_v29  ;;  %v4920_v53 = vpop.f32.mrb[71].mxu1  ;;  %v6799_v37 = vpop.f32.mrb[79].mxu0  ;;  %v9814_v51 = vld [vmem:[#allocation19_spill] sm:$0xff] }
 0x78a   :  { %v6337_v57 = vmul.f32 -1.442695, %v5211_v45 }
 0x78b   :  { %7535 = vpow2.f32 %v6336_v46 }
 0x78c   :  { %7537 = vpow2.f32 %v6337_v57 }
 0x795   :  { %v7536_v17 = vpop.eup %7535 }
 0x796   :  { %v5208_v27 = vadd.f32 1.0, %v7536_v17  ;;  %v7538_v11 = vpop.eup %7537 }
 0x797   :  { %v5215_v23 = vadd.f32 1.0, %v7538_v11 }
 0x798   :  { %7539 = vrcp.f32 %v5208_v27 }
 0x7a2   :  { %v7540_v15 = vpop.eup %7539 }
 0x7a3   :  { %v5219_v63 = vmul.f32 %v7540_v15, %v5218_v56 }
 0x7a5   :  { %v5220_v0 = vadd.f32 %v5219_v63, %v9809_v61  ;;  %v7577_v61 = vld [vmem:[%s9756_s3] ss:$0 sm:$0xff] }
 0x7a7   :  { %7541 = vtanh.f32 %v5220_v0 }
 0x7a8   :  { %7543 = vrcp.f32 %v5215_v23 }
 0x7b1   :  { %v7542_v58 = vpop.eup %7541 }
 0x7b2   :  { %v5222_v30 = vsub.f32 %v9531_v8, %v7542_v58  ;;  %v7544_v38 = vpop.eup %7543  ;;  %v7408_v8 = vld [vmem:[%s9755_s2 + $0x1c4] ss:$24 sps:$4 sm:$0xff]  }
 0x7b4   :  { %v5223_v12 = vmul.f32 %v7544_v38, %v5222_v30  ;;  %v9815_v30 = vld [vmem:[#allocation18_spill] sm:$0xff] }
 0x7b6   :  { %v9659_v42 = vadd.f32 %v7542_v58, %v5223_v12 }
 0x7b8   :  { %6340 = vst [vmem:[%s9757_s4 + $0x60] sm:$0xff] %v9659_v42  ;;  %v5254_v49 = vpack.c.bf16 %v9659_v42, %v9659_v42 }
 0x7ba   :  { %5448 = vmatmul.mubr.bf16.vlgmr.msra.gmra.mrb[76].mxu1 %v5254_v49  ;;  %6837 = vmatmul.mubr.bf16.vlgmr.msra.gmra.mrb[84].mxu0 %v5254_v49 }
 0x7bb   :  { %5658 = vmatpush1.bf16.msra.mxu1 %v9328_v43  ;;  %6841 = vmatpush3.bf16.msra.mxu0 %v7407_v1  ;;  %v7409_v43 = vld [vmem:[%s9755_s2 + $0x1f4] ss:$24 sps:$4 sm:$0xff]  }
 0x7bc   :  { %5659 = vmatprep.subr.bf16.mxu1 %v9342_v19  ;;  %6842 = vmatprep.subr.bf16.mxu0 %v9790_v28  ;;  %v7411_v19 = vld [vmem:[%s9755_s2 + $0x254] ss:$24 sps:$4 sm:$0xff]  }
 0x7bd   :  { %5689 = vmatprep.mubr.bf16.mxu1 %v9791_v7  ;;  %6856 = vmatprep.mubr.msk.bf16.mxu0 %vm7580_vm0, %v9790_v28  ;;  %v7410_v7 = vld [vmem:[%s9755_s2 + $0x224] ss:$24 sps:$4 sm:$0xff]  }
 0x7bf   :  { %5660 = vmatpush1.bf16.msra.mxu1 %v9348_v48  ;;  %6843 = vmatpush3.bf16.msra.mxu0 %v7408_v8 }
 0x7c0   :  { %5661 = vmatprep.subr.bf16.mxu1 %v9358_v34  ;;  %6844 = vmatprep.subr.bf16.mxu0 %v9790_v28 }
 0x7c3   :  { %5662 = vmatpush1.bf16.msra.mxu1 %v9367_v62  ;;  %6845 = vmatpush3.bf16.msra.mxu0 %v7409_v43  ;;  %v9810_v62 = vld [vmem:[#allocation4_spill] sm:$0xff] }
 0x7c4   :  { %5663 = vmatprep.subr.bf16.mxu1 %v9377_v5  ;;  %6846 = vmatprep.subr.bf16.mxu0 %v9790_v28  ;;  %v9811_v5 = vld [vmem:[#allocation22_spill] sm:$0xff] }
 0x7c7   :  { %5664 = vmatpush1.bf16.msra.mxu1 %v9383_v39  ;;  %6847 = vmatpush3.bf16.msra.mxu0 %v7410_v7  ;;  %v7412_v39 = vld [vmem:[%s9755_s2 + $0x284] ss:$24 sps:$4 sm:$0xff]  }
 0x7c8   :  { %5665 = vmatprep.subr.bf16.mxu1 %v9393_v52  ;;  %6848 = vmatprep.subr.bf16.mxu0 %v9790_v28  ;;  %v5157_v48 = vpop.f32.mrb[72].mxu1  ;;  %v5198_v34 = vpop.f32.mrb[80].mxu0 }
 0x7c9   :  { %v5225_v33 = vadd.f32 %v5157_v48, %v9810_v62  ;;  %v5159_v36 = vpop.f32.mrb[73].mxu1  ;;  %v6818_v2 = vpop.f32.mrb[81].mxu0 }
 0x7ca   :  { %v5232_v24 = vadd.f32 %v5159_v36, %v9811_v5  ;;  %v5161_v50 = vpop.f32.mrb[74].mxu1  ;;  %v5201_v40 = vpop.f32.mrb[82].mxu0  ;;  %v9817_v2 = vld [vmem:[#allocation20_spill] sm:$0xff] }
 0x7cb   :  { %5666 = vmatpush1.bf16.msra.mxu1 %v9399_v9  ;;  %6849 = vmatpush3.bf16.msra.mxu0 %v7411_v19  ;;  %v6338_v52 = vmul.f32 -1.442695, %v5225_v33  ;;  %v5162_v55 = vpop.f32.mrb[75].mxu1  ;;  %v6819_v35 = vpop.f32.mrb[83].mxu0  ;;  %v7413_v9 = vld [vmem:[%s9755_s2 + $0x2b4] ss:$24 sps:$4 sm:$0xff]  }
 0x7cc   :  { %5667 = vmatprep.subr.bf16.mxu1 %v9409_v13  ;;  %6850 = vmatprep.subr.bf16.mxu0 %v9790_v28  ;;  %v7414_v13 = vld [vmem:[%s9755_s2 + $0x2e4] ss:$24 sps:$4 sm:$0xff]  }
 0x7cd   :  { %7545 = vpow2.f32 %v6338_v52 }
 0x7cf   :  { %5668 = vmatpush1.bf16.msra.mxu1 %v9417_v4  ;;  %6851 = vmatpush3.bf16.msra.mxu0 %v7412_v39  ;;  %v6339_v4 = vmul.f32 -1.442695, %v5232_v24 }
 0x7d0   :  { %5669 = vmatprep.subr.bf16.mxu1 %v9427_v47  ;;  %6852 = vmatprep.subr.bf16.mxu0 %v9790_v28 }
 0x7d1   :  { %7547 = vpow2.f32 %v6339_v4 }
 0x7d3   :  { %5670 = vmatpush1.bf16.msra.mxu1 %v9433_v60  ;;  %6853 = vmatpush3.bf16.msra.mxu0 %v7413_v9  ;;  %v5239_v60 = vadd.f32 %v9462_v6, %v5198_v34  ;;  %v9816_v34 = vld [vmem:[#allocation3_spill] sm:$0xff] }
 0x7d4   :  { %5671 = vmatprep.subr.bf16.mxu1 %v9443_v3  ;;  %6854 = vmatprep.subr.bf16.mxu0 %v9790_v28 }
 0x7d7   :  { %5672 = vmatpush1.bf16.msra.mxu1 %v9449_v26  ;;  %6855 = vmatpush3.bf16.msra.mxu0 %v7414_v13  ;;  %v7546_v20 = vpop.eup %7545 }
 0x7d8   :  { %v5229_v41 = vadd.f32 1.0, %v7546_v20 }
 0x7da   :  { %7549 = vrcp.f32 %v5229_v41  ;;  %v9818_v41 = vld [vmem:[#allocation21_spill] sm:$0xff] }
 0x7db   :  { %v7548_v47 = vpop.eup %7547 }
 0x7dc   :  { %v5236_v16 = vadd.f32 1.0, %v7548_v47 }
 0x7e4   :  { %v7550_v31 = vpop.eup %7549 }
 0x7e5   :  { %v5240_v59 = vmul.f32 %v7550_v31, %v5239_v60 }
 0x7e7   :  { %v5241_v18 = vadd.f32 %v5240_v59, %v9812_v14 }
 0x7e9   :  { %7551 = vtanh.f32 %v5241_v18 }
 0x7ea   :  { %7553 = vrcp.f32 %v5236_v16 }
 0x7f3   :  { %v7552_v3 = vpop.eup %7551 }
 0x7f4   :  { %v5243_v28 = vsub.f32 %v9595_v54, %v7552_v3  ;;  %v7554_v44 = vpop.eup %7553 }
 0x7f6   :  { %v5244_v26 = vmul.f32 %v7554_v44, %v5243_v28 }
 0x7f8   :  { %v9721_v22 = vadd.f32 %v7552_v3, %v5244_v26 }
 0x7fa   :  { %6341 = vst [vmem:[%s9757_s4 + $0x18] sm:$0xff] %v9721_v22  ;;  %v5496_v29 = vpack.c.bf16 %v9721_v22, %v9721_v22 }
 0x7fc   :  { %5690 = vmatmul.mubr.bf16.vlgmr.msra.gmra.mrb[80].mxu1 %v5496_v29  ;;  %6857 = vmatmul.mubr.bf16.vlgmr.msra.gmra.mrb[88].mxu0 %v5496_v29 }
 0x88d   :  { %v5449_v21 = vpop.f32.mrb[76].mxu1  ;;  %v5490_v25 = vpop.f32.mrb[84].mxu0 }
 0x88e   :  { %v5738_v45 = vadd.f32 %v5449_v21, %v9813_v10  ;;  %v5451_v32 = vpop.f32.mrb[77].mxu1  ;;  %v6838_v54 = vpop.f32.mrb[85].mxu0  ;;  %v5752_v0 = vadd.f32 %v7577_v61, %v5490_v25 }
 0x88f   :  { %v5745_v46 = vadd.f32 %v5451_v32, %v9814_v51  ;;  %v5453_v53 = vpop.f32.mrb[78].mxu1  ;;  %v5493_v37 = vpop.f32.mrb[86].mxu0 }
 0x890   :  { %v6390_v57 = vmul.f32 -1.442695, %v5738_v45  ;;  %v5454_v17 = vpop.f32.mrb[79].mxu1  ;;  %v6839_v27 = vpop.f32.mrb[87].mxu0 }
 0x891   :  { %v6391_v11 = vmul.f32 -1.442695, %v5745_v46 }
 0x892   :  { %7555 = vpow2.f32 %v6390_v57 }
 0x893   :  { %7557 = vpow2.f32 %v6391_v11 }
 0x89c   :  { %v7556_v56 = vpop.eup %7555 }
 0x89d   :  { %v5742_v15 = vadd.f32 1.0, %v7556_v56  ;;  %v7558_v63 = vpop.eup %7557 }
 0x89e   :  { %v5749_v12 = vadd.f32 1.0, %v7558_v63 }
 0x89f   :  { %7559 = vrcp.f32 %v5742_v15 }
 0x8a9   :  { %v7560_v23 = vpop.eup %7559 }
 0x8aa   :  { %v5753_v58 = vmul.f32 %v7560_v23, %v5752_v0 }
 0x8ac   :  { %v5754_v38 = vadd.f32 %v5753_v58, %v9815_v30 }
 0x8ae   :  { %7561 = vtanh.f32 %v5754_v38 }
 0x8af   :  { %7563 = vrcp.f32 %v5749_v12 }
 0x8b8   :  { %v7562_v1 = vpop.eup %7561 }
 0x8b9   :  { %v5756_v49 = vsub.f32 %v9659_v42, %v7562_v1  ;;  %v7564_v8 = vpop.eup %7563 }
 0x8bb   :  { %v5757_v43 = vmul.f32 %v7564_v8, %v5756_v49 }
 0x8bd   :  { %v5758_v7 = vadd.f32 %v7562_v1, %v5757_v43 }
 0x8bf   :  { %6394 = vst [vmem:[%s9757_s4 + $0x70] sm:$0xff] %v5758_v7  ;;  %5782 = vst [vmem:[%s9758_s5] sm:$0xff] %v5758_v7 }
 0x8cf   :  { %v5691_v19 = vpop.f32.mrb[80].mxu1  ;;  %v5732_v48 = vpop.f32.mrb[88].mxu0 }
 0x8d0   :  { %v5759_v62 = vadd.f32 %v5691_v19, %v9816_v34  ;;  %v5693_v33 = vpop.f32.mrb[81].mxu1  ;;  %v6858_v36 = vpop.f32.mrb[89].mxu0  ;;  %v5773_v13 = vadd.f32 %v9462_v6, %v5732_v48 }
 0x8d1   :  { %v5766_v5 = vadd.f32 %v5693_v33, %v9817_v2  ;;  %v5695_v42 = vpop.f32.mrb[82].mxu1  ;;  %v5735_v24 = vpop.f32.mrb[90].mxu0 }
 0x8d2   :  { %v6392_v50 = vmul.f32 -1.442695, %v5759_v62  ;;  %v5696_v40 = vpop.f32.mrb[83].mxu1  ;;  %v6859_v39 = vpop.f32.mrb[91].mxu0 }
 0x8d3   :  { %v6393_v52 = vmul.f32 -1.442695, %v5766_v5 }
 0x8d4   :  { %7565 = vpow2.f32 %v6392_v50 }
 0x8d5   :  { %7567 = vpow2.f32 %v6393_v52 }
 0x8de   :  { %v7566_v55 = vpop.eup %7565 }
 0x8df   :  { %v5763_v35 = vadd.f32 1.0, %v7566_v55  ;;  %v7568_v9 = vpop.eup %7567 }
 0x8e0   :  { %v5770_v60 = vadd.f32 1.0, %v7568_v9 }
 0x8e1   :  { %7569 = vrcp.f32 %v5763_v35 }
 0x8eb   :  { %v7570_v4 = vpop.eup %7569 }
 0x8ec   :  { %v5774_v20 = vmul.f32 %v7570_v4, %v5773_v13 }
 0x8ee   :  { %v5775_v47 = vadd.f32 %v5774_v20, %v9818_v41 }
 0x8f0   :  { %7571 = vtanh.f32 %v5775_v47 }
 0x8f1   :  { %7573 = vrcp.f32 %v5770_v60 }
 0x8fa   :  { %v7572_v31 = vpop.eup %7571 }
 0x8fb   :  { %v5777_v59 = vsub.f32 %v9721_v22, %v7572_v31  ;;  %v7574_v14 = vpop.eup %7573 }
 0x8fd   :  { %v5778_v18 = vmul.f32 %v7574_v14, %v5777_v59 }
 0x8ff   :  { %v5779_v16 = vadd.f32 %v7572_v31, %v5778_v18 }
 0x901   :  { %5781 = vst [vmem:[%s9757_s4 + $0x8] sm:$0xff] %v5779_v16  ;;  %6395 = vst [vmem:[%s9758_s5 + $0x8] sm:$0xff] %v5779_v16 }

</bundles_post_ra>
